<compile_context>
chip_gen: v7x
topology: tpu7x:2x2x1
jax: 0.10.0
libtpu: 0.0.40
codegen_flags: <defaults>
</compile_context>

<pallas_src>
import functools

import jax
import jax.numpy as jnp
import numpy as np
from jax.experimental import pallas as pl
from jax.experimental.pallas import tpu as pltpu

# ---- problem sizes --------------------------------------------------------
N_CAND = 8                          # config.num_candidates
C_IN, H, W = 3, 8, 8
D_FEAT = C_IN * H * W               # 192 (NOT padded)
N_CLASS = 16
SMOOTHED_TRAIN_LOSS = 2.3           # Environment.__init__ default
TB_DEFAULT = 16                     # env steps per grid iteration (M = TB*N = 128)

# ---- lane-dense output slab layout (one 128-lane tile per candidate row) ---
# Torch feature order [loss, loss_abs, loss_norm, probs, entropy, density,
# label] occupies lanes [0, N_CLASS+6); logits follow; loss_mean_no_filter is
# broadcast into lane MEAN_COL.  Everything of interest is one contiguous run.
OUT_LANES = 128
LOSS_COL = 0
LOSS_ABS_COL = 1
LOSS_NORM_COL = 2
PROB_COL = 3                         # softmax probs  -> lanes [3, 19)
ENTROPY_COL = PROB_COL + N_CLASS     # 19
DENSITY_COL = ENTROPY_COL + 1        # 20
LABEL_COL = DENSITY_COL + 1          # 21
FEAT_WIDTH = N_CLASS + 6             # 22
LOGITS_COL = FEAT_WIDTH              # logits         -> lanes [22, 38)
MEAN_COL = LOGITS_COL + N_CLASS      # 38


def env_features_kernel(x_ref, w_ref, b_ref, tgt_ref, smooth_ref, out_ref):
    tb, n, _ = out_ref.shape         # (TB, N, 128)
    c = N_CLASS

    x = x_ref[...]                   # (TB*N, D)  f32
    w = w_ref[...]                   # (D, 128)   f32, w duplicated at probs+logits lanes
    b = b_ref[...]                   # (1, 128)   f32
    tgt = tgt_ref[...]               # (TB, N, 1) int32
    smoothed_loss = smooth_ref[0]    # scalar from SMEM

    # --- model forward: one MXU pass, M = TB*N rows, K = D, N = 128 lanes ---
    logits_wide = jnp.dot(x, w, preferred_element_type=jnp.float32) + b    # (M, 128)
    logits_wide = logits_wide.reshape(tb, n, OUT_LANES)   # leading-dim split (free)

    lane = jax.lax.broadcasted_iota(jnp.int32, (tb, n, OUT_LANES), 2)
    class_mask = (lane >= PROB_COL) & (lane < PROB_COL + c)       # real class lanes
    logit_mask = (lane >= LOGITS_COL) & (lane < LOGITS_COL + c)   # logits copy lanes

    # --- masked log-softmax / softmax over the class lanes (exact divides) ---
    zmax = jnp.max(jnp.where(class_mask, logits_wide, -1e30), axis=-1, keepdims=True)
    ez = jnp.where(class_mask, jnp.exp(logits_wide - zmax), 0.0)
    se = jnp.sum(ez, axis=-1, keepdims=True)
    logp = logits_wide - (jnp.log(se) + zmax)       # valid on class lanes
    p = ez / se                                     # zero outside class lanes

    # --- nn.CrossEntropyLoss(reduction='none') ---
    # TODO(synk): out-of-range labels silently give loss=0 instead of raising.
    onehot = lane == (tgt + PROB_COL)
    loss = -jnp.sum(jnp.where(onehot, logp, 0.0), axis=-1, keepdims=True)   # (TB,N,1)

    # --- use_loss_abs ---
    loss_abs = loss - smoothed_loss

    # --- use_loss_norm: per env step, torch .std() unbiased (n-1) ---
    mu = jnp.sum(loss, axis=1, keepdims=True) / n                           # (TB,1,1)
    var = jnp.sum((loss - mu) ** 2, axis=1, keepdims=True) / (n - 1)
    loss_norm = (loss - mu) / (jnp.sqrt(var) + 1e-5)

    # --- use_entropy: Categorical(probs=p).entropy() ---
    entropy = -jnp.sum(p * logp, axis=-1, keepdims=True)

    # --- use_item_similarity via colsum identity (no (N,N) gram matmul):
    #     mean_j(simi[i,:] - eye[i,:]) == (normed_i . sum_j normed_j - 1) / N
    ss = jnp.sum(jnp.where(class_mask, logits_wide * logits_wide, 0.0),
                 axis=-1, keepdims=True)
    normed = jnp.where(class_mask, logits_wide, 0.0) / jnp.maximum(jnp.sqrt(ss), 1e-12)
    colsum = jnp.sum(normed, axis=1, keepdims=True)                         # (TB,1,128)
    item_density = (jnp.sum(normed * colsum, axis=-1, keepdims=True) - 1.0) / n

    # --- assemble the (TB, N, 128) slab in vregs; single unmasked store ---
    scalars = jnp.where(lane == LOSS_COL, loss, 0.0)
    scalars = jnp.where(lane == LOSS_ABS_COL, loss_abs, scalars)
    scalars = jnp.where(lane == LOSS_NORM_COL, loss_norm, scalars)
    scalars = jnp.where(lane == ENTROPY_COL, entropy, scalars)
    scalars = jnp.where(lane == DENSITY_COL, item_density, scalars)
    scalars = jnp.where(lane == LABEL_COL, tgt.astype(jnp.float32), scalars)
    scalars = jnp.where(lane == MEAN_COL, mu, scalars)
    # p lives on lanes [3,19), masked logits on [22,38), scalars elsewhere:
    # supports are disjoint so a plain sum composes the slab.
    out_ref[...] = p + jnp.where(logit_mask, logits_wide, 0.0) + scalars


@functools.partial(jax.jit, static_argnames=("tb",))
def environment_features(x_img, w, b, targets, smoothed_loss, *, tb=TB_DEFAULT):
    """Batched environment feature extraction.

    x_img:   (B, N, C_in, H, W) candidate images for B environment steps
    w, b:    (D, C), (C,)       synthetic linear classifier parameters
    targets: (B, N) int         labels
    Returns the (B, N, 128) slab; columns [0,22)=features (torch order),
    [22,38)=logits, 38=loss_mean_no_filter (broadcast over the N rows).
    """
    bsz, n = x_img.shape[0], x_img.shape[1]
    d = int(np.prod(x_img.shape[2:]))
    c = w.shape[1]
    assert c == N_CLASS and MEAN_COL < OUT_LANES
    assert bsz % tb == 0, "number of env steps must be a multiple of tb"
    assert (tb * n) % 8 == 0

    rows = bsz * n
    x = x_img.reshape(rows, d).astype(jnp.float32)     # flatten NCHW; no K padding

    # Classifier weights duplicated into the probs lanes [3,19) and the logits
    # lanes [22,38) of a 128-wide weight, so both 16-wide output blocks fall
    # out of a single MXU pass with no in-kernel lane placement.
    wf = w.astype(jnp.float32)
    bf = b.astype(jnp.float32)
    w_wide = jnp.zeros((d, OUT_LANES), jnp.float32)
    w_wide = w_wide.at[:, PROB_COL:PROB_COL + c].set(wf)
    w_wide = w_wide.at[:, LOGITS_COL:LOGITS_COL + c].set(wf)
    b_wide = jnp.zeros((1, OUT_LANES), jnp.float32)
    b_wide = b_wide.at[:, PROB_COL:PROB_COL + c].set(bf)
    b_wide = b_wide.at[:, LOGITS_COL:LOGITS_COL + c].set(bf)

    tgt = targets.astype(jnp.int32).reshape(bsz, n, 1)
    smooth = jnp.asarray(smoothed_loss, jnp.float32).reshape(1)

    grid = (bsz // tb,)     # keep even so v7x's two TensorCores both get work
    slab = pl.pallas_call(
        env_features_kernel,
        out_shape=jax.ShapeDtypeStruct((bsz, n, OUT_LANES), jnp.float32),
        grid=grid,
        in_specs=[
            pl.BlockSpec((tb * n, d), lambda i: (i, 0)),        # x rows for TB steps
            pl.BlockSpec((d, OUT_LANES), lambda i: (0, 0)),     # w_wide (fetched once)
            pl.BlockSpec((1, OUT_LANES), lambda i: (0, 0)),     # b_wide (fetched once)
            pl.BlockSpec((tb, n, 1), lambda i: (i, 0, 0)),      # int labels
            pl.BlockSpec(memory_space=pltpu.MemorySpace.SMEM),  # smoothed loss scalar
        ],
        out_specs=pl.BlockSpec((tb, n, OUT_LANES), lambda i: (i, 0, 0)),
        compiler_params=pltpu.CompilerParams(
            dimension_semantics=("parallel",)),
    )(x, w_wide, b_wide, tgt, smooth)
    return slab


# ---- pure-JAX reference (mirrors the PyTorch semantics) ---------------------
def _ref_one(x_img, w, b, targets, smoothed_loss):
    n = x_img.shape[0]
    hp = jax.lax.Precision.HIGHEST
    x = x_img.reshape(n, -1).astype(jnp.float32)
    logits = jnp.dot(x, w, precision=hp) + b.reshape(1, -1)
    logp = jax.nn.log_softmax(logits, axis=-1)
    p = jax.nn.softmax(logits, axis=-1)
    loss = -jnp.take_along_axis(logp, targets[:, None], axis=1)            # (N,1)
    loss_abs = loss - smoothed_loss
    mu = jnp.mean(loss)
    std = jnp.std(loss, ddof=1)
    loss_norm = (loss - mu) / (std + 1e-5)
    entropy = -jnp.sum(p * logp, axis=-1, keepdims=True)
    normed = logits / jnp.maximum(
        jnp.linalg.norm(logits, axis=-1, keepdims=True), 1e-12)
    simi = jnp.dot(normed, normed.T, precision=hp)
    item_density = jnp.mean(simi - jnp.eye(n), axis=-1, keepdims=True)
    feat = jnp.concatenate(
        [loss, loss_abs, loss_norm, p, entropy, item_density,
         targets.astype(jnp.float32)[:, None]], axis=1)
    return feat, logits, mu


@jax.jit
def environment_features_ref(x_img, w, b, targets, smoothed_loss):
    return jax.vmap(lambda xi, ti: _ref_one(xi, w, b, ti, smoothed_loss))(
        x_img, targets)


if __name__ == "__main__":
    key = jax.random.PRNGKey(0)
    kx, kw, kt = jax.random.split(key, 3)

    B = 64   # environment steps; grid = B // TB = 4 (even, >= 2)
    x_img = jax.random.normal(kx, (B, N_CAND, C_IN, H, W), dtype=jnp.float32)
    # nn.Linear-style init: weight ~ N(0, 0.01), bias = 0
    w = 0.01 * jax.random.normal(kw, (D_FEAT, N_CLASS), dtype=jnp.float32)
    b = jnp.zeros((N_CLASS,), dtype=jnp.float32)
    targets = jax.random.randint(kt, (B, N_CAND), 0, N_CLASS, dtype=jnp.int32)

    slab = environment_features(x_img, w, b, targets, SMOOTHED_TRAIN_LOSS)
    jax.block_until_ready(slab)

    feat_r, logits_r, mu_r = environment_features_ref(
        x_img, w, b, targets, SMOOTHED_TRAIN_LOSS)
    feat_r, logits_r, mu_r = map(np.asarray, (feat_r, logits_r, mu_r))

    slab_np = np.asarray(slab)
    feat_k = slab_np[:, :, :FEAT_WIDTH]
    logits_k = slab_np[:, :, LOGITS_COL:LOGITS_COL + N_CLASS]
    mu_k = slab_np[:, 0, MEAN_COL]

    # No approx EUP ops in the kernel -> tolerances only cover fp32
    # reassociation and transcendental-ulp differences.
    np.testing.assert_allclose(logits_k, logits_r, rtol=1e-4, atol=1e-5)
    np.testing.assert_allclose(feat_k, feat_r, rtol=1e-3, atol=1e-4)
    np.testing.assert_allclose(mu_k, mu_r, rtol=1e-4, atol=1e-5)
    print("KERNEL_OK")
</pallas_src>

<mosaic_0001>
module attributes {stable_mosaic.version = 11 : i64} {
  func.func @env_features_kernel(%arg0: i32, %arg1: memref<128x192xf32, #tpu.memory_space<vmem>>, %arg2: memref<192x128xf32, #tpu.memory_space<vmem>>, %arg3: memref<1x128xf32, #tpu.memory_space<vmem>>, %arg4: memref<16x8x1xi32, #tpu.memory_space<vmem>>, %arg5: memref<1xf32, #tpu.memory_space<smem>>, %arg6: memref<16x8x128xf32, #tpu.memory_space<vmem>>) attributes {dimension_semantics = [#tpu.dimension_semantics<parallel>], iteration_bounds = array<i64: 4>, scalar_prefetch = 0 : i64, scratch_operands = 0 : i64, tpu.core_type = #tpu.core_type<tc>, window_params = [{transform_indices = @transform_0, window_bounds = array<i64: 128, 192>}, {pipeline_mode = #tpu.pipeline_mode<synchronous>, transform_indices = @transform_1, window_bounds = array<i64: 192, 128>}, {pipeline_mode = #tpu.pipeline_mode<synchronous>, transform_indices = @transform_2, window_bounds = array<i64: 1, 128>}, {transform_indices = @transform_3, window_bounds = array<i64: 16, 8, 1>}, {transform_indices = @transform_4, window_bounds = array<i64: 1>}, {transform_indices = @transform_5, window_bounds = array<i64: 16, 8, 128>}]} {
    %c0 = arith.constant 0 : index
    %c0_0 = arith.constant 0 : index
    %0 = vector.load %arg1[%c0, %c0_0] : memref<128x192xf32, #tpu.memory_space<vmem>>, vector<128x192xf32>
    %c0_1 = arith.constant 0 : index
    %c0_2 = arith.constant 0 : index
    %1 = vector.load %arg2[%c0_1, %c0_2] : memref<192x128xf32, #tpu.memory_space<vmem>>, vector<192x128xf32>
    %c0_3 = arith.constant 0 : index
    %c0_4 = arith.constant 0 : index
    %2 = vector.load %arg3[%c0_3, %c0_4] : memref<1x128xf32, #tpu.memory_space<vmem>>, vector<1x128xf32>
    %c0_5 = arith.constant 0 : index
    %c0_6 = arith.constant 0 : index
    %c0_7 = arith.constant 0 : index
    %3 = vector.load %arg4[%c0_5, %c0_6, %c0_7] : memref<16x8x1xi32, #tpu.memory_space<vmem>>, vector<16x8x1xi32>
    %c0_8 = arith.constant 0 : index
    %4 = memref.load %arg5[%c0_8] : memref<1xf32, #tpu.memory_space<smem>>
    %cst = arith.constant dense<0.000000e+00> : vector<128x128xf32>
    %5 = tpu.matmul %0, %1, %cst {dimension_numbers = #tpu.dot_dimension_numbers<[1], [0], [0], [1], [0, 0, 1, 1], [], []>} : vector<128x192xf32>, vector<192x128xf32>, vector<128x128xf32> -> vector<128x128xf32>
    %6 = vector.broadcast %2 : vector<1x128xf32> to vector<128x128xf32>
    %7 = arith.addf %5, %6 : vector<128x128xf32>
    %8 = vector.shape_cast %7 : vector<128x128xf32> to vector<16x8x128xf32>
    %9 = tpu.iota {dimensions = array<i32: 2>} : vector<16x8x128xi32>
    %c3_i32 = arith.constant 3 : i32
    %10 = vector.broadcast %c3_i32 : i32 to vector<16x8x128xi32>
    %11 = arith.cmpi sge, %9, %10 : vector<16x8x128xi32>
    %c19_i32 = arith.constant 19 : i32
    %12 = vector.broadcast %c19_i32 : i32 to vector<16x8x128xi32>
    %13 = arith.cmpi slt, %9, %12 : vector<16x8x128xi32>
    %14 = arith.andi %11, %13 : vector<16x8x128xi1>
    %c22_i32 = arith.constant 22 : i32
    %15 = vector.broadcast %c22_i32 : i32 to vector<16x8x128xi32>
    %16 = arith.cmpi sge, %9, %15 : vector<16x8x128xi32>
    %c38_i32 = arith.constant 38 : i32
    %17 = vector.broadcast %c38_i32 : i32 to vector<16x8x128xi32>
    %18 = arith.cmpi slt, %9, %17 : vector<16x8x128xi32>
    %19 = arith.andi %16, %18 : vector<16x8x128xi1>
    %cst_9 = arith.constant -1.000000e+30 : f32
    %20 = vector.broadcast %cst_9 : f32 to vector<16x8x128xf32>
    %21 = arith.select %14, %8, %20 : vector<16x8x128xi1>, vector<16x8x128xf32>
    %cst_10 = arith.constant dense<0xFF800000> : vector<16x8xf32>
    %22 = vector.multi_reduction <maximumf>, %21, %cst_10 [2] : vector<16x8x128xf32> to vector<16x8xf32>
    %23 = vector.shape_cast %22 : vector<16x8xf32> to vector<16x8x1xf32>
    %24 = vector.broadcast %23 : vector<16x8x1xf32> to vector<16x8x128xf32>
    %25 = arith.subf %8, %24 : vector<16x8x128xf32>
    %26 = math.exp %25 : vector<16x8x128xf32>
    %cst_11 = arith.constant 0.000000e+00 : f32
    %27 = vector.broadcast %cst_11 : f32 to vector<16x8x128xf32>
    %28 = arith.select %14, %26, %27 : vector<16x8x128xi1>, vector<16x8x128xf32>
    %cst_12 = arith.constant dense<0.000000e+00> : vector<16x8xf32>
    %29 = vector.multi_reduction <add>, %28, %cst_12 [2] : vector<16x8x128xf32> to vector<16x8xf32>
    %30 = vector.shape_cast %29 : vector<16x8xf32> to vector<16x8x1xf32>
    %31 = math.log %30 : vector<16x8x1xf32>
    %32 = arith.addf %31, %23 : vector<16x8x1xf32>
    %33 = vector.broadcast %32 : vector<16x8x1xf32> to vector<16x8x128xf32>
    %34 = arith.subf %8, %33 : vector<16x8x128xf32>
    %35 = vector.broadcast %30 : vector<16x8x1xf32> to vector<16x8x128xf32>
    %36 = arith.divf %28, %35 : vector<16x8x128xf32>
    %c3_i32_13 = arith.constant 3 : i32
    %37 = vector.broadcast %c3_i32_13 : i32 to vector<16x8x1xi32>
    %38 = arith.addi %3, %37 : vector<16x8x1xi32>
    %39 = vector.broadcast %38 : vector<16x8x1xi32> to vector<16x8x128xi32>
    %40 = arith.cmpi eq, %9, %39 : vector<16x8x128xi32>
    %cst_14 = arith.constant 0.000000e+00 : f32
    %41 = vector.broadcast %cst_14 : f32 to vector<16x8x128xf32>
    %42 = arith.select %40, %34, %41 : vector<16x8x128xi1>, vector<16x8x128xf32>
    %cst_15 = arith.constant dense<0.000000e+00> : vector<16x8xf32>
    %43 = vector.multi_reduction <add>, %42, %cst_15 [2] : vector<16x8x128xf32> to vector<16x8xf32>
    %44 = vector.shape_cast %43 : vector<16x8xf32> to vector<16x8x1xf32>
    %cst_16 = arith.constant 0.000000e+00 : f32
    %45 = vector.broadcast %cst_16 : f32 to vector<16x8x1xf32>
    %46 = arith.subf %45, %44 : vector<16x8x1xf32>
    %47 = vector.broadcast %4 : f32 to vector<16x8x1xf32>
    %48 = arith.subf %46, %47 : vector<16x8x1xf32>
    %cst_17 = arith.constant dense<0.000000e+00> : vector<16x1xf32>
    %49 = vector.multi_reduction <add>, %46, %cst_17 [1] : vector<16x8x1xf32> to vector<16x1xf32>
    %50 = vector.shape_cast %49 : vector<16x1xf32> to vector<16x1x1xf32>
    %cst_18 = arith.constant 8.000000e+00 : f32
    %51 = vector.broadcast %cst_18 : f32 to vector<16x1x1xf32>
    %52 = arith.divf %50, %51 : vector<16x1x1xf32>
    %53 = vector.broadcast %52 : vector<16x1x1xf32> to vector<16x8x1xf32>
    %54 = arith.subf %46, %53 : vector<16x8x1xf32>
    %55 = arith.mulf %54, %54 : vector<16x8x1xf32>
    %cst_19 = arith.constant dense<0.000000e+00> : vector<16x1xf32>
    %56 = vector.multi_reduction <add>, %55, %cst_19 [1] : vector<16x8x1xf32> to vector<16x1xf32>
    %57 = vector.shape_cast %56 : vector<16x1xf32> to vector<16x1x1xf32>
    %cst_20 = arith.constant 7.000000e+00 : f32
    %58 = vector.broadcast %cst_20 : f32 to vector<16x1x1xf32>
    %59 = arith.divf %57, %58 : vector<16x1x1xf32>
    %60 = vector.broadcast %52 : vector<16x1x1xf32> to vector<16x8x1xf32>
    %61 = arith.subf %46, %60 : vector<16x8x1xf32>
    %62 = math.sqrt %59 : vector<16x1x1xf32>
    %cst_21 = arith.constant 9.99999974E-6 : f32
    %63 = vector.broadcast %cst_21 : f32 to vector<16x1x1xf32>
    %64 = arith.addf %62, %63 : vector<16x1x1xf32>
    %65 = vector.broadcast %64 : vector<16x1x1xf32> to vector<16x8x1xf32>
    %66 = arith.divf %61, %65 : vector<16x8x1xf32>
    %67 = arith.mulf %36, %34 : vector<16x8x128xf32>
    %cst_22 = arith.constant dense<0.000000e+00> : vector<16x8xf32>
    %68 = vector.multi_reduction <add>, %67, %cst_22 [2] : vector<16x8x128xf32> to vector<16x8xf32>
    %69 = vector.shape_cast %68 : vector<16x8xf32> to vector<16x8x1xf32>
    %cst_23 = arith.constant 0.000000e+00 : f32
    %70 = vector.broadcast %cst_23 : f32 to vector<16x8x1xf32>
    %71 = arith.subf %70, %69 : vector<16x8x1xf32>
    %72 = arith.mulf %8, %8 : vector<16x8x128xf32>
    %cst_24 = arith.constant 0.000000e+00 : f32
    %73 = vector.broadcast %cst_24 : f32 to vector<16x8x128xf32>
    %74 = arith.select %14, %72, %73 : vector<16x8x128xi1>, vector<16x8x128xf32>
    %cst_25 = arith.constant dense<0.000000e+00> : vector<16x8xf32>
    %75 = vector.multi_reduction <add>, %74, %cst_25 [2] : vector<16x8x128xf32> to vector<16x8xf32>
    %76 = vector.shape_cast %75 : vector<16x8xf32> to vector<16x8x1xf32>
    %cst_26 = arith.constant 0.000000e+00 : f32
    %77 = vector.broadcast %cst_26 : f32 to vector<16x8x128xf32>
    %78 = arith.select %14, %8, %77 : vector<16x8x128xi1>, vector<16x8x128xf32>
    %79 = math.sqrt %76 : vector<16x8x1xf32>
    %cst_27 = arith.constant 9.99999996E-13 : f32
    %80 = vector.broadcast %cst_27 : f32 to vector<16x8x1xf32>
    %81 = arith.maximumf %79, %80 : vector<16x8x1xf32>
    %82 = vector.broadcast %81 : vector<16x8x1xf32> to vector<16x8x128xf32>
    %83 = arith.divf %78, %82 : vector<16x8x128xf32>
    %cst_28 = arith.constant dense<0.000000e+00> : vector<16x128xf32>
    %84 = vector.multi_reduction <add>, %83, %cst_28 [1] : vector<16x8x128xf32> to vector<16x128xf32>
    %85 = vector.shape_cast %84 : vector<16x128xf32> to vector<16x1x128xf32>
    %86 = vector.broadcast %85 : vector<16x1x128xf32> to vector<16x8x128xf32>
    %87 = arith.mulf %83, %86 : vector<16x8x128xf32>
    %cst_29 = arith.constant dense<0.000000e+00> : vector<16x8xf32>
    %88 = vector.multi_reduction <add>, %87, %cst_29 [2] : vector<16x8x128xf32> to vector<16x8xf32>
    %89 = vector.shape_cast %88 : vector<16x8xf32> to vector<16x8x1xf32>
    %cst_30 = arith.constant 1.000000e+00 : f32
    %90 = vector.broadcast %cst_30 : f32 to vector<16x8x1xf32>
    %91 = arith.subf %89, %90 : vector<16x8x1xf32>
    %cst_31 = arith.constant 8.000000e+00 : f32
    %92 = vector.broadcast %cst_31 : f32 to vector<16x8x1xf32>
    %93 = arith.divf %91, %92 : vector<16x8x1xf32>
    %c0_i32 = arith.constant 0 : i32
    %94 = vector.broadcast %c0_i32 : i32 to vector<16x8x128xi32>
    %95 = arith.cmpi eq, %9, %94 : vector<16x8x128xi32>
    %cst_32 = arith.constant 0.000000e+00 : f32
    %96 = vector.shape_cast %46 : vector<16x8x1xf32> to vector<16x8x1xf32>
    %97 = vector.broadcast %96 : vector<16x8x1xf32> to vector<16x8x128xf32>
    %98 = vector.broadcast %cst_32 : f32 to vector<16x8x128xf32>
    %99 = arith.select %95, %97, %98 : vector<16x8x128xi1>, vector<16x8x128xf32>
    %c1_i32 = arith.constant 1 : i32
    %100 = vector.broadcast %c1_i32 : i32 to vector<16x8x128xi32>
    %101 = arith.cmpi eq, %9, %100 : vector<16x8x128xi32>
    %102 = vector.shape_cast %48 : vector<16x8x1xf32> to vector<16x8x1xf32>
    %103 = vector.broadcast %102 : vector<16x8x1xf32> to vector<16x8x128xf32>
    %104 = arith.select %101, %103, %99 : vector<16x8x128xi1>, vector<16x8x128xf32>
    %c2_i32 = arith.constant 2 : i32
    %105 = vector.broadcast %c2_i32 : i32 to vector<16x8x128xi32>
    %106 = arith.cmpi eq, %9, %105 : vector<16x8x128xi32>
    %107 = vector.shape_cast %66 : vector<16x8x1xf32> to vector<16x8x1xf32>
    %108 = vector.broadcast %107 : vector<16x8x1xf32> to vector<16x8x128xf32>
    %109 = arith.select %106, %108, %104 : vector<16x8x128xi1>, vector<16x8x128xf32>
    %c19_i32_33 = arith.constant 19 : i32
    %110 = vector.broadcast %c19_i32_33 : i32 to vector<16x8x128xi32>
    %111 = arith.cmpi eq, %9, %110 : vector<16x8x128xi32>
    %112 = vector.shape_cast %71 : vector<16x8x1xf32> to vector<16x8x1xf32>
    %113 = vector.broadcast %112 : vector<16x8x1xf32> to vector<16x8x128xf32>
    %114 = arith.select %111, %113, %109 : vector<16x8x128xi1>, vector<16x8x128xf32>
    %c20_i32 = arith.constant 20 : i32
    %115 = vector.broadcast %c20_i32 : i32 to vector<16x8x128xi32>
    %116 = arith.cmpi eq, %9, %115 : vector<16x8x128xi32>
    %117 = vector.shape_cast %93 : vector<16x8x1xf32> to vector<16x8x1xf32>
    %118 = vector.broadcast %117 : vector<16x8x1xf32> to vector<16x8x128xf32>
    %119 = arith.select %116, %118, %114 : vector<16x8x128xi1>, vector<16x8x128xf32>
    %c21_i32 = arith.constant 21 : i32
    %120 = vector.broadcast %c21_i32 : i32 to vector<16x8x128xi32>
    %121 = arith.cmpi eq, %9, %120 : vector<16x8x128xi32>
    %122 = arith.sitofp %3 : vector<16x8x1xi32> to vector<16x8x1xf32>
    %123 = vector.shape_cast %122 : vector<16x8x1xf32> to vector<16x8x1xf32>
    %124 = vector.broadcast %123 : vector<16x8x1xf32> to vector<16x8x128xf32>
    %125 = arith.select %121, %124, %119 : vector<16x8x128xi1>, vector<16x8x128xf32>
    %c38_i32_34 = arith.constant 38 : i32
    %126 = vector.broadcast %c38_i32_34 : i32 to vector<16x8x128xi32>
    %127 = arith.cmpi eq, %9, %126 : vector<16x8x128xi32>
    %128 = vector.shape_cast %52 : vector<16x1x1xf32> to vector<16x1x1xf32>
    %129 = vector.broadcast %128 : vector<16x1x1xf32> to vector<16x8x128xf32>
    %130 = arith.select %127, %129, %125 : vector<16x8x128xi1>, vector<16x8x128xf32>
    %cst_35 = arith.constant 0.000000e+00 : f32
    %131 = vector.broadcast %cst_35 : f32 to vector<16x8x128xf32>
    %132 = arith.select %19, %8, %131 : vector<16x8x128xi1>, vector<16x8x128xf32>
    %133 = arith.addf %36, %132 : vector<16x8x128xf32>
    %134 = arith.addf %133, %130 : vector<16x8x128xf32>
    %c0_36 = arith.constant 0 : index
    %c0_37 = arith.constant 0 : index
    %c0_38 = arith.constant 0 : index
    %135 = vector.load %arg6[%c0_36, %c0_37, %c0_38] : memref<16x8x128xf32, #tpu.memory_space<vmem>>, vector<16x8x128xf32>
    tpu.vector_store %arg6[%c0_36, %c0_37, %c0_38], %134 {strides = array<i32>} : memref<16x8x128xf32, #tpu.memory_space<vmem>>, vector<16x8x128xf32>,
    return
  }
  func.func @transform_0(%arg0: i32) -> (i32, i32) {
    %c0_i32 = arith.constant 0 : i32
    %c0_i32_0 = arith.constant 0 : i32
    return %arg0, %c0_i32 : i32, i32
  }
  func.func @transform_1(%arg0: i32) -> (i32, i32) {
    %c0_i32 = arith.constant 0 : i32
    %c0_i32_0 = arith.constant 0 : i32
    %c0_i32_1 = arith.constant 0 : i32
    return %c0_i32, %c0_i32_0 : i32, i32
  }
  func.func @transform_2(%arg0: i32) -> (i32, i32) {
    %c0_i32 = arith.constant 0 : i32
    %c0_i32_0 = arith.constant 0 : i32
    %c0_i32_1 = arith.constant 0 : i32
    return %c0_i32, %c0_i32_0 : i32, i32
  }
  func.func @transform_3(%arg0: i32) -> (i32, i32, i32) {
    %c0_i32 = arith.constant 0 : i32
    %c0_i32_0 = arith.constant 0 : i32
    %c0_i32_1 = arith.constant 0 : i32
    return %arg0, %c0_i32, %c0_i32_0 : i32, i32, i32
  }
  func.func @transform_4(%arg0: i32) -> i32 {
    %c0_i32 = arith.constant 0 : i32
    %c0_i32_0 = arith.constant 0 : i32
    return %c0_i32 : i32
  }
  func.func @transform_5(%arg0: i32) -> (i32, i32, i32) {
    %c0_i32 = arith.constant 0 : i32
    %c0_i32_0 = arith.constant 0 : i32
    %c0_i32_1 = arith.constant 0 : i32
    return %arg0, %c0_i32, %c0_i32_0 : i32, i32, i32
  }
}

</mosaic_0001>

<bundles_post_ra>
// kernel: environment_features.1
= control target key start
LH: loop header
LB: loop body
LE: loop exit
PB: predicated region body
PF: predicated region fallthrough
CT: control target
= control target key end

     0   :  { %s4672_s0 = inlined_call_operand.vmem [shape: f32[512,192], index: 0, kind: input, shape index: {}]   ;;  %s4673_s1 = inlined_call_operand.vmem [shape: f32[192,128], index: 1, kind: input, shape index: {}]   ;;  %s4674_s2 = inlined_call_operand.vmem [shape: f32[1,128], index: 2, kind: input, shape index: {}]   ;;  %s4675_s3 = inlined_call_operand.vmem [shape: s32[64,8,1], index: 3, kind: input, shape index: {}]   ;;  %s4676_s4 = inlined_call_operand.<no memory space> [shape: f32[1], index: 4, kind: input, shape index: {}]   ;;  %s4677_s5 = inlined_call_operand.hbm [shape: f32[64,8,128], index: 5, kind: output, shape index: {}]  }
   0x1   :  { %10 = sst [smem:[#allocation2]] %s4676_s4 }
   0x2   :  { %11 = vsyncpa [#allocation4], 0 }
   0x3   :  { %13 = vsyncpa [#allocation4 + $0x1], 0  ;;  %s2686_s20 = smov 0   ;;  %s2688_s21 = smov 0  }
   0x4   :  { %s2690_s22 = smov 0   ;;  %s2692_s23 = smov 0  }
   0x5 LB: > { %s2707_s4 = sadd.s32 4294967295, %s2646_s23   ;;  %s2200_s24 = sadd.s32 4294967294, %s2646_s23   ;;  %s2646_s23 = sphi %s2692_s23, %s4901_s23   ;;  %s2642_s22 = sphi %s2690_s22, %s4900_s22   ;;  %s2638_s21 = sphi %s2688_s21, %s4899_s21   ;;  %s2634_s20 = sphi %s2686_s20, %s4898_s20  }
   0x6   : > { %s2711_s25 = sadd.s32 1, %s2646_s23   ;;  %s141_s26 = sadd.s32 1, %s2642_s22 }
   0x7   : > { %s138_s27 = ssub.s32 %s2646_s23, %s2711_s25  ;;  %p151_p0 = scmp.ne.s32.totalorder %s2642_s22, %s2638_s21 }
   0x8   : > { %p139_p1 = scmp.eq.s32.totalorder %s138_s27, 0  ;;  %p152_p2 = scmp.eq.s32.totalorder %s2707_s4, 3 }
   0x9   : > { %p157_p3 = scmp.ne.s32.totalorder %s2638_s21, %s2634_s20  ;;  %p158_p4 = scmp.eq.s32.totalorder %s2200_s24, 3 }
   0xa   : > { %s2722_s28 = scalar_select %p139_p1, %s2642_s22, %s141_s26  }
   0xb   : > { %p2724_p5 = por %p152_p2, %p151_p0  ;;  %p2728_p6 = por %p158_p4, %p157_p3 }
   0xc   : > { %p2203_p7 = scmp.ge.s32.totalorder %s2646_s23, 1  ;;  %p204_p8 = scmp.lt.s32.totalorder %s2646_s23, 5 }
   0xe   : > { %p205_p9 = pnand %p2203_p7, %p204_p8 }
  0x10   : > { %208 = sbr.rel (%p205_p9) target bundleno = 960 (0x3c0), region = 40 }
  0x17   : > { %v284_v0 = vld [vmem:[%s4673_s1] sm:$0xff]  ;;  %v285_v1 = vld [vmem:[%s4673_s1 + $0x8] sm:$0xff]  ;;  %v286_v2 = vld [vmem:[%s4673_s1 + $0x10] sm:$0xff]  ;;  %s2205_s12 = sshll.u32 %s2707_s4, 4  ;;  %v2648_v3 = vmov 0.0|0.0   ;;  %v2649_v6 = vmov 0  }
  0x18   : > { %2250 = vmatprep.subr.bf16.mxu0 %v2648_v3  ;;  %2286 = vmatprep.subr.bf16.mxu1 %v2648_v3  ;;  %v2251_v4 = vpack.c.bf16 %v285_v1, %v284_v0  ;;  %v287_v5 = vld [vmem:[%s4673_s1 + $0x18] sm:$0xff]  ;;  %p239_p10 = scmp.lt.s32.totalorder %s2205_s12, 63  ;;  %v288_v8 = vld [vmem:[%s4673_s1 + $0x20] sm:$0xff]  ;;  %v289_v9 = vld [vmem:[%s4673_s1 + $0x28] sm:$0xff]  ;;  %vm332_vm0 = vcmask 523264   ;;  %s2650_s10 = smov [#allocation3]  }
  0x19   : > { %2354 = vset.pattern.permute.xlu1 %v2649_v6  ;;  %2353 = vset.pattern.permute.xlu0 %v2649_v6  ;;  %v2254_v7 = vpack.c.bf16 %v287_v5, %v286_v2  ;;  %v2257_v10 = vpack.c.bf16 %v289_v9, %v288_v8  ;;  %v290_v11 = vld [vmem:[%s4673_s1 + $0x30] sm:$0xff]  ;;  %v291_v12 = vld [vmem:[%s4673_s1 + $0x38] sm:$0xff]  ;;  %v292_v16 = vld [vmem:[%s4673_s1 + $0x40] sm:$0xff]  ;;  %s2588_s11 = sshll.u32 %s2650_s10, 4  ;;  %s2589_s11 = int_to_ptr.vmem [resolvable:$false] %s2588_s11 }
  0x1a   : > { %2252 = vmatpush1.bf16.msra.mxu0 %v2251_v4  ;;  %2298 = vmatpush1.bf16.msra.mxu1 %v2251_v4  ;;  %s4903_s12 = smov (!%p239_p10, %s2205_s12), 63  ;;  %v2260_v15 = vpack.c.bf16 %v291_v12, %v290_v11  ;;  %v293_v17 = vld [vmem:[%s4673_s1 + $0x48] sm:$0xff]  ;;  %v294_v19 = vld [vmem:[%s4673_s1 + $0x50] sm:$0xff]  ;;  %v295_v20 = vld [vmem:[%s4673_s1 + $0x58] sm:$0xff]  ;;  %s2590_s13 = scalar_lea.vmem %s2589_s11, 4096 }
  0x1b   : > { %2253 = vmatprep.subr.bf16.mxu0 %v2648_v3  ;;  %2287 = vmatprep.subr.bf16.mxu1 %v2648_v3  ;;  %s2248_s19 = sshll.u32 %s4903_s12, 4  ;;  %s2209_s15 = sshll.u32 %s4903_s12, 3  ;;  %v2263_v18 = vpack.c.bf16 %v293_v17, %v292_v16  ;;  %v2266_v22 = vpack.c.bf16 %v295_v20, %v294_v19  ;;  %v296_v25 = vld [vmem:[%s4673_s1 + $0x60] sm:$0xff]  ;;  %v297_v26 = vld [vmem:[%s4673_s1 + $0x68] sm:$0xff]  ;;  %v298_v33 = vld [vmem:[%s4673_s1 + $0x70] sm:$0xff] }
  0x1c   : > { %s2763_s27 = scalar_lea.vmem %s4672_s0, %s2248_s19  ;;  %s2789_s18 = scalar_lea.vmem %s4675_s3, %s2209_s15  ;;  %v2269_v31 = vpack.c.bf16 %v297_v26, %v296_v25  ;;  %v299_v34 = vld [vmem:[%s4673_s1 + $0x78] sm:$0xff]  ;;  %v300_v40 = vld [vmem:[%s4673_s1 + $0x80] sm:$0xff]  ;;  %v301_v41 = vld [vmem:[%s4673_s1 + $0x88] sm:$0xff] }
  0x1d   : > { %v253_v13 = vld [vmem:[%s2763_s27 + $0x8] sm:$0xff]  ;;  %v2804_v24 = vld [vmem:[%s2789_s18 + $0x10] sm:$0xff]  ;;  %v2816_v28 = vld [vmem:[%s2789_s18 + $0x18] sm:$0xff]  ;;  %v2272_v39 = vpack.c.bf16 %v299_v34, %v298_v33  ;;  %v2275_v46 = vpack.c.bf16 %v301_v41, %v300_v40  ;;  %s2249_s12 = sshll.u32 %s2707_s4, 11 }
  0x1e   : > { %2255 = vmatpush1.bf16.msra.mxu0 %v2254_v7  ;;  %2299 = vmatpush1.bf16.msra.mxu1 %v2254_v7  ;;  %v269_v14 = vld [vmem:[%s2763_s27 + $0x88] sm:$0xff]  ;;  %v776_v27 = vadd.s32 3, %v2804_v24  ;;  %v2819_v29 = vld [vmem:[%s2789_s18] sm:$0xff]  ;;  %v777_v35 = vadd.s32 3, %v2816_v28  ;;  %v320_v38 = vld [vmem:[%s2789_s18 + $0x58] sm:$0xff]  ;;  %v1922_v4 = vcvt.s32.f32 %v2816_v28  ;;  %s4623_s8 = scalar_lea.hbm %s4677_s5, %s2249_s12 }
  0x1f   : > { %2256 = vmatprep.subr.bf16.mxu0 %v2648_v3  ;;  %2288 = vmatprep.subr.bf16.mxu1 %v2648_v3  ;;  %v2800_v21 = vld [vmem:[%s2789_s18 + $0x8] sm:$0xff]  ;;  %v774_v32 = vadd.s32 3, %v2819_v29  ;;  %v2836_v37 = vld [vmem:[%s2789_s18 + $0x20] sm:$0xff]  ;;  %v785_v43 = vadd.s32 3, %v320_v38  ;;  %v302_v47 = vld [vmem:[%s4673_s1 + $0x90] sm:$0xff]  ;;  %v1919_v63 = vcvt.s32.f32 %v2819_v29 }
  0x20   : > { %2211 = vmatprep.mubr.msk.f32.mxu0 %vm332_vm0, %v253_v13  ;;  %2219 = vmatprep.mubr.msk.f32.mxu1 %vm332_vm0, %v269_v14  ;;  %v775_v23 = vadd.s32 3, %v2800_v21  ;;  %v2822_v30 = vld [vmem:[%s2789_s18 + $0x48] sm:$0xff]  ;;  %v778_v42 = vadd.s32 3, %v2836_v37  ;;  %v303_v48 = vld [vmem:[%s4673_s1 + $0x98] sm:$0xff]  ;;  %v2862_v51 = vld [vmem:[%s2789_s18 + $0x30] sm:$0xff]  ;;  %v1923_v41 = vcvt.s32.f32 %v2836_v37 }
  0x21   : > { %791 = vperm.xlu0 %2353, %v774_v32   ;;  %v783_v36 = vadd.s32 3, %v2822_v30  ;;  %v2849_v44 = vld [vmem:[%s2789_s18 + $0x28] sm:$0xff]  ;;  %v324_v52 = vld [vmem:[%s2789_s18 + $0x78] sm:$0xff]  ;;  %v2278_v53 = vpack.c.bf16 %v303_v48, %v302_v47  ;;  %v304_v54 = vld [vmem:[%s4673_s1 + $0xa0] sm:$0xff]  ;;  %v780_v56 = vadd.s32 3, %v2862_v51  ;;  %v526_v48 = vlaneseq }
  0x22   : > { %2258 = vmatpush1.bf16.msra.mxu0 %v2257_v10  ;;  %2300 = vmatpush1.bf16.msra.mxu1 %v2257_v10  ;;  %v322_v45 = vld [vmem:[%s2789_s18 + $0x68] sm:$0xff]  ;;  %v779_v49 = vadd.s32 3, %v2849_v44  ;;  %v789_v57 = vadd.s32 3, %v324_v52  ;;  %v316_v58 = vld [vmem:[%s2789_s18 + $0x38] sm:$0xff]  ;;  %v306_v60 = vld [vmem:[%s4673_s1 + $0xb0] sm:$0xff]  ;;  %v1924_v10 = vcvt.s32.f32 %v2849_v44 }
  0x23   : > { %2259 = vmatprep.subr.bf16.mxu0 %v2648_v3  ;;  %2289 = vmatprep.subr.bf16.mxu1 %v2648_v3  ;;  %v787_v50 = vadd.s32 3, %v322_v45  ;;  %v305_v55 = vld [vmem:[%s4673_s1 + $0xa8] sm:$0xff]  ;;  %v307_v61 = vld [vmem:[%s4673_s1 + $0xb8] sm:$0xff]  ;;  %v781_v62 = vadd.s32 3, %v316_v58  ;;  %v2885_v0 = vld [vmem:[%s2789_s18 + $0x40] sm:$0xff]  ;;  %v1926_v17 = vcvt.s32.f32 %v316_v58  ;;  %v1925_v45 = vcvt.s32.f32 %v2862_v51 }
  0x24   : > { %794 = vperm.xlu1 %2354, %v775_v23   ;;  %v2281_v59 = vpack.c.bf16 %v305_v55, %v304_v54  ;;  %v2284_v1 = vpack.c.bf16 %v307_v61, %v306_v60  ;;  %v782_v2 = vadd.s32 3, %v2885_v0  ;;  %v2892_v5 = vld [vmem:[%s2789_s18 + $0x50] sm:$0xff]  ;;  %v252_v6 = vld [vmem:[%s2763_s27] sm:$0xff]  ;;  %v271_v8 = vld [vmem:[%s2763_s27 + $0x98] sm:$0xff]  ;;  %v1927_v47 = vcvt.s32.f32 %v2885_v0 }
  0x25   : > { %818 = vperm.xlu0 %2353, %v783_v36   ;;  %v268_v7 = vld [vmem:[%s2763_s27 + $0x80] sm:$0xff]  ;;  %v255_v9 = vld [vmem:[%s2763_s27 + $0x18] sm:$0xff]  ;;  %v270_v12 = vld [vmem:[%s2763_s27 + $0x90] sm:$0xff]  ;;  %v1921_v36 = vcvt.s32.f32 %v2804_v24 }
  0x26   : > { %2261 = vmatpush1.bf16.msra.mxu0 %v2260_v15  ;;  %2301 = vmatpush1.bf16.msra.mxu1 %v2260_v15  ;;  %v321_v11 = vld [vmem:[%s2789_s18 + $0x60] sm:$0xff]  ;;  %v254_v13 = vld [vmem:[%s2763_s27 + $0x10] sm:$0xff]  ;;  %v257_v14 = vld [vmem:[%s2763_s27 + $0x28] sm:$0xff] }
  0x27   : > { %2262 = vmatprep.subr.bf16.mxu0 %v2648_v3  ;;  %2290 = vmatprep.subr.bf16.mxu1 %v2648_v3  ;;  %v273_v15 = vld [vmem:[%s2763_s27 + $0xa8] sm:$0xff]  ;;  %v786_v16 = vadd.s32 3, %v321_v11  ;;  %v256_v19 = vld [vmem:[%s2763_s27 + $0x20] sm:$0xff]  ;;  %v275_v23 = vld [vmem:[%s2763_s27 + $0xb8] sm:$0xff] }
  0x28   : > { %797 = vperm.xlu1 %2354, %v776_v27   ;;  %v272_v20 = vld [vmem:[%s2763_s27 + $0xa0] sm:$0xff]  ;;  %v258_v26 = vld [vmem:[%s2763_s27 + $0x30] sm:$0xff]  ;;  %v261_v28 = vld [vmem:[%s2763_s27 + $0x48] sm:$0xff] }
  0x29   : > { %824 = vperm.xlu0 %2353, %v785_v43   ;;  %v274_v27 = vld [vmem:[%s2763_s27 + $0xb0] sm:$0xff]  ;;  %v277_v29 = vld [vmem:[%s2763_s27 + $0xc8] sm:$0xff]  ;;  %v260_v32 = vld [vmem:[%s2763_s27 + $0x40] sm:$0xff] }
  0x2a   : > { %2264 = vmatpush1.bf16.msra.mxu0 %v2263_v18  ;;  %2302 = vmatpush1.bf16.msra.mxu1 %v2263_v18  ;;  %v323_v18 = vld [vmem:[%s2789_s18 + $0x70] sm:$0xff]  ;;  %v276_v33 = vld [vmem:[%s2763_s27 + $0xc0] sm:$0xff]  ;;  %v263_v34 = vld [vmem:[%s2763_s27 + $0x58] sm:$0xff] }
  0x2b   : > { %2265 = vmatprep.subr.bf16.mxu0 %v2648_v3  ;;  %2291 = vmatprep.subr.bf16.mxu1 %v2648_v3  ;;  %v788_v25 = vadd.s32 3, %v323_v18  ;;  %v278_v38 = vld [vmem:[%s2763_s27 + $0xd0] sm:$0xff]  ;;  %v281_v40 = vld [vmem:[%s2763_s27 + $0xe8] sm:$0xff]  ;;  %v264_v24 = vld [vmem:[%s2763_s27 + $0x60] sm:$0xff] }
  0x2c   : > { %800 = vperm.xlu1 %2354, %v777_v35   ;;  %v279_v35 = vld [vmem:[%s2763_s27 + $0xd8] sm:$0xff]  ;;  %v282_v37 = vld [vmem:[%s2763_s27 + $0xf0] sm:$0xff] }
  0x2d   : > { %830 = vperm.xlu0 %2353, %v787_v50   ;;  %v267_v43 = vld [vmem:[%s2763_s27 + $0x78] sm:$0xff]  ;;  %v2954_v50 = vld [vmem:[%s4674_s2] ss:$0 sm:$0xff] }
  0x2e   : > { %2267 = vmatpush1.bf16.msra.mxu0 %v2266_v22  ;;  %2303 = vmatpush1.bf16.msra.mxu1 %v2266_v22  ;;  %v259_v22 = vld [vmem:[%s2763_s27 + $0x38] sm:$0xff] }
  0x2f   : > { %2268 = vmatprep.subr.bf16.mxu0 %v2648_v3  ;;  %2292 = vmatprep.subr.bf16.mxu1 %v2648_v3  ;;  %v283_v44 = vld [vmem:[%s2763_s27 + $0xf8] sm:$0xff] }
  0x30   : > { %803 = vperm.xlu1 %2354, %v778_v42   ;;  %v280_v42 = vld [vmem:[%s2763_s27 + $0xe0] sm:$0xff] }
  0x31   : > { %836 = vperm.xlu0 %2353, %v789_v57  }
  0x32   : > { %2270 = vmatpush1.bf16.msra.mxu0 %v2269_v31  ;;  %2304 = vmatpush1.bf16.msra.mxu1 %v2269_v31  ;;  %v1920_v31 = vcvt.s32.f32 %v2800_v21  ;;  %v262_v21 = vld [vmem:[%s2763_s27 + $0x50] sm:$0xff] }
  0x33   : > { %2271 = vmatprep.subr.bf16.mxu0 %v2648_v3  ;;  %2293 = vmatprep.subr.bf16.mxu1 %v2648_v3 }
  0x34   : > { %806 = vperm.xlu1 %2354, %v779_v49   ;;  %v2947_v49 = vand.u32 127, %v526_v48 }
  0x35   : > { %1937 = vperm.xlu0 %2353, %v1919_v63  }
  0x36   : > { %2273 = vmatpush1.bf16.msra.mxu0 %v2272_v39  ;;  %2305 = vmatpush1.bf16.msra.mxu1 %v2272_v39  ;;  %v265_v39 = vld [vmem:[%s2763_s27 + $0x68] sm:$0xff]  ;;  %vm528_vm1 = vcmp.ge.s32.totalorder %v2947_v49, 3  ;;  %vm529_vm2 = vcmp.lt.s32.totalorder %v2947_v49, 19 }
  0x37   : > { %2274 = vmatprep.subr.bf16.mxu0 %v2648_v3  ;;  %2294 = vmatprep.subr.bf16.mxu1 %v2648_v3  ;;  %vm2956_vm3 = vmand %vm528_vm1, %vm529_vm2 }
  0x38   : > { %809 = vperm.xlu1 %2354, %v780_v56  }
  0x39   : > { %1952 = vperm.xlu0 %2353, %v1922_v4  }
  0x3a   : > { %2276 = vmatpush1.bf16.msra.mxu0 %v2275_v46  ;;  %2306 = vmatpush1.bf16.msra.mxu1 %v2275_v46  ;;  %v266_v46 = vld [vmem:[%s2763_s27 + $0x70] sm:$0xff]  ;;  %s3770_s27 = sld [smem:[#allocation2]] }
  0x3b   : > { %2277 = vmatprep.subr.bf16.mxu0 %v2648_v3  ;;  %2295 = vmatprep.subr.bf16.mxu1 %v2648_v3 }
  0x3c   : > { %812 = vperm.xlu1 %2354, %v781_v62  }
  0x3d   : > { %1962 = vperm.xlu0 %2353, %v1924_v10  }
  0x3e   : > { %2279 = vmatpush1.bf16.msra.mxu0 %v2278_v53  ;;  %2307 = vmatpush1.bf16.msra.mxu1 %v2278_v53 }
  0x3f   : > { %2280 = vmatprep.subr.bf16.mxu0 %v2648_v3  ;;  %2296 = vmatprep.subr.bf16.mxu1 %v2648_v3 }
  0x40   : > { %815 = vperm.xlu1 %2354, %v782_v2  }
  0x41   : > { %1972 = vperm.xlu0 %2353, %v1926_v17  }
  0x42   : > { %2282 = vmatpush1.bf16.msra.mxu0 %v2281_v59  ;;  %2308 = vmatpush1.bf16.msra.mxu1 %v2281_v59 }
  0x43   : > { %2283 = vmatprep.subr.bf16.mxu0 %v2648_v3  ;;  %2297 = vmatprep.subr.bf16.mxu1 %v2648_v3  ;;  %v784_v3 = vadd.s32 3, %v2892_v5 }
  0x45   : > { %821 = vperm.xlu1 %2354, %v784_v3  }
  0x46   : > { %2285 = vmatpush1.bf16.msra.mxu0 %v2284_v1  ;;  %2309 = vmatpush1.bf16.msra.mxu1 %v2284_v1 }
  0x49   : > { %446 = vmatmul.mubr.f32.vlgmr.msra.gmra.mrb[0].mxu0 %v252_v6  ;;  %486 = vmatmul.mubr.f32.vlgmr.msra.gmra.mrb[0].mxu1 %v268_v7 }
  0x4a   : > { %2220 = vmatprep.mubr.msk.f32.mxu1 %vm332_vm0, %v271_v8  ;;  %2212 = vmatprep.mubr.msk.f32.mxu0 %vm332_vm0, %v255_v9 }
  0x4b   : > { %827 = vperm.xlu1 %2354, %v786_v16  }
  0x4d   : > { %491 = vmatmul.mubr.f32.gmra.mrb[2].mxu1 %v270_v12  ;;  %451 = vmatmul.mubr.f32.gmra.mrb[2].mxu0 %v254_v13 }
  0x4e   : > { %2213 = vmatprep.mubr.msk.f32.mxu0 %vm332_vm0, %v257_v14  ;;  %2221 = vmatprep.mubr.msk.f32.mxu1 %vm332_vm0, %v273_v15 }
  0x4f   : > { %833 = vperm.xlu1 %2354, %v788_v25  }
  0x51   : > { %456 = vmatmul.mubr.f32.gmra.mrb[4].mxu0 %v256_v19  ;;  %496 = vmatmul.mubr.f32.gmra.mrb[4].mxu1 %v272_v20 }
  0x52   : > { %2214 = vmatprep.mubr.msk.f32.mxu0 %vm332_vm0, %v259_v22  ;;  %2222 = vmatprep.mubr.msk.f32.mxu1 %vm332_vm0, %v275_v23 }
  0x53   : > { %1942 = vperm.xlu1 %2354, %v1920_v31  }
  0x55   : > { %461 = vmatmul.mubr.f32.gmra.mrb[6].mxu0 %v258_v26  ;;  %501 = vmatmul.mubr.f32.gmra.mrb[6].mxu1 %v274_v27 }
  0x56   : > { %2215 = vmatprep.mubr.msk.f32.mxu0 %vm332_vm0, %v261_v28  ;;  %2223 = vmatprep.mubr.msk.f32.mxu1 %vm332_vm0, %v277_v29 }
  0x57   : > { %1947 = vperm.xlu1 %2354, %v1921_v36  }
  0x59   : > { %466 = vmatmul.mubr.f32.gmra.mrb[8].mxu0 %v260_v32  ;;  %506 = vmatmul.mubr.f32.gmra.mrb[8].mxu1 %v276_v33 }
  0x5a   : > { %2216 = vmatprep.mubr.msk.f32.mxu0 %vm332_vm0, %v263_v34  ;;  %2224 = vmatprep.mubr.msk.f32.mxu1 %vm332_vm0, %v279_v35 }
  0x5b   : > { %1957 = vperm.xlu1 %2354, %v1923_v41  }
  0x5d   : > { %471 = vmatmul.mubr.f32.gmra.mrb[10].mxu0 %v262_v21  ;;  %511 = vmatmul.mubr.f32.gmra.mrb[10].mxu1 %v278_v38 }
  0x5e   : > { %2217 = vmatprep.mubr.msk.f32.mxu0 %vm332_vm0, %v265_v39  ;;  %2225 = vmatprep.mubr.msk.f32.mxu1 %vm332_vm0, %v281_v40 }
  0x5f   : > { %1967 = vperm.xlu1 %2354, %v1925_v45  }
  0x61   : > { %476 = vmatmul.mubr.f32.gmra.mrb[12].mxu0 %v264_v24  ;;  %516 = vmatmul.mubr.f32.gmra.mrb[12].mxu1 %v280_v42 }
  0x62   : > { %2218 = vmatprep.mubr.msk.f32.mxu0 %vm332_vm0, %v267_v43  ;;  %2226 = vmatprep.mubr.msk.f32.mxu1 %vm332_vm0, %v283_v44 }
  0x63   : > { %1977 = vperm.xlu1 %2354, %v1927_v47  }
  0x65   : > { %481 = vmatmul.mubr.f32.gmra.mrb[14].mxu0 %v266_v46  ;;  %521 = vmatmul.mubr.f32.gmra.mrb[14].mxu1 %v282_v37 }
 0x11c   : > { %v447_v51 = vpop.f32.mrb[0].mxu0  ;;  %v487_v52 = vpop.f32.mrb[0].mxu1 }
 0x11d   : > { %v2961_v54 = vadd.f32 %v2954_v50, %v447_v51  ;;  %v449_v55 = vpop.f32.mrb[1].mxu0  ;;  %v2964_v56 = vadd.f32 %v2954_v50, %v487_v52  ;;  %v489_v57 = vpop.f32.mrb[1].mxu1 }
 0x11f   : > { %v534_v58 = vsel %vm2956_vm3, %v2961_v54, -1e+30  ;;  %v542_v63 = vsel %vm2956_vm3, %v2964_v56, -1e+30  ;;  %v1417_v6 = vmul.f32 %v2961_v54, %v2961_v54  ;;  %v1425_v13 = vmul.f32 %v2964_v56, %v2964_v56 }
 0x120   : > { %v492_v59 = vpop.f32.mrb[2].mxu1  ;;  %550 = vmax.xlane.f32.xlu0 %v534_v58  ;;  %v452_v60 = vpop.f32.mrb[2].mxu0 }
 0x121   : > { %v2970_v61 = vadd.f32 %v2954_v50, %v492_v59  ;;  %v2973_v62 = vadd.f32 %v2954_v50, %v452_v60  ;;  %v454_v0 = vpop.f32.mrb[3].mxu0  ;;  %v494_v1 = vpop.f32.mrb[3].mxu1  ;;  %v1433_v12 = vsel %vm2956_vm3, %v1417_v6, 0.0  ;;  %v1441_v20 = vsel %vm2956_vm3, %v1425_v13, 0.0 }
 0x123   : > { %v543_v2 = vsel %vm2956_vm3, %v2970_v61, -1e+30  ;;  %v1418_v4 = vmul.f32 %v2973_v62, %v2973_v62  ;;  %v1426_v3 = vmul.f32 %v2970_v61, %v2970_v61  ;;  %v535_v28 = vsel %vm2956_vm3, %v2973_v62, -1e+30 }
 0x124   : > { %568 = vmax.xlane.f32.xlu1 %v543_v2  ;;  %566 = vmax.xlane.f32.xlu0 %v542_v63  ;;  %v457_v7 = vpop.f32.mrb[4].mxu0  ;;  %v497_v8 = vpop.f32.mrb[4].mxu1 }
 0x125   : > { %v1434_v9 = vsel %vm2956_vm3, %v1418_v4, 0.0  ;;  %v459_v10 = vpop.f32.mrb[5].mxu0  ;;  %v499_v11 = vpop.f32.mrb[5].mxu1  ;;  %v2994_v16 = vadd.f32 %v2954_v50, %v457_v7  ;;  %v1442_v17 = vsel %vm2956_vm3, %v1426_v3, 0.0  ;;  %v3004_v26 = vadd.f32 %v2954_v50, %v497_v8 }
 0x127   : > { %v536_v27 = vsel %vm2956_vm3, %v2994_v16, -1e+30  ;;  %v544_v36 = vsel %vm2956_vm3, %v3004_v26, -1e+30  ;;  %v1419_v21 = vmul.f32 %v2994_v16, %v2994_v16  ;;  %v1427_v44 = vmul.f32 %v3004_v26, %v3004_v26 }
 0x128   : > { %1451 = vadd.xlane.f32.xlu1 %v1434_v9  ;;  %1449 = vadd.xlane.f32.xlu0 %v1433_v12  ;;  %v462_v14 = vpop.f32.mrb[6].mxu0  ;;  %v502_v15 = vpop.f32.mrb[6].mxu1 }
 0x129   : > { %v464_v18 = vpop.f32.mrb[7].mxu0  ;;  %v504_v19 = vpop.f32.mrb[7].mxu1  ;;  %v3001_v25 = vadd.f32 %v2954_v50, %v462_v14  ;;  %v3013_v34 = vadd.f32 %v2954_v50, %v502_v15  ;;  %v1435_v42 = vsel %vm2956_vm3, %v1419_v21, 0.0  ;;  %v1443_v52 = vsel %vm2956_vm3, %v1427_v44, 0.0 }
 0x12a   : > { %v3120_v21 = vpop.permute.xlu0 %791 }
 0x12b   : > { %4721 = vst [vmem:[#allocation6_spill] sm:$0xff] %v3001_v25  ;;  %4722 = vst [vmem:[#allocation7_spill] sm:$0xff] %v3013_v34  ;;  %v537_v35 = vsel %vm2956_vm3, %v3001_v25, -1e+30  ;;  %v545_v24 = vsel %vm2956_vm3, %v3013_v34, -1e+30  ;;  %v1420_v43 = vmul.f32 %v3001_v25, %v3001_v25  ;;  %v1428_v55 = vmul.f32 %v3013_v34, %v3013_v34 }
 0x12c   : > { %1467 = vadd.xlane.f32.xlu1 %v1442_v17  ;;  %1465 = vadd.xlane.f32.xlu0 %v1441_v20  ;;  %v467_v22 = vpop.f32.mrb[8].mxu0  ;;  %v507_v23 = vpop.f32.mrb[8].mxu1 }
 0x12d   : > { %v469_v29 = vpop.f32.mrb[9].mxu0  ;;  %v509_v31 = vpop.f32.mrb[9].mxu1  ;;  %v3033_v48 = vadd.f32 %v2954_v50, %v467_v22  ;;  %v1436_v51 = vsel %vm2956_vm3, %v1420_v43, 0.0  ;;  %v3045_v60 = vadd.f32 %v2954_v50, %v507_v23  ;;  %v1444_v63 = vsel %vm2956_vm3, %v1428_v55, 0.0 }
 0x12e   : > { %v3101_v23 = vpop.permute.xlu1 %794  ;;  %v1929_v31 = vcvt.s32.f32 %v2892_v5 }
 0x12f   : > { %4723 = vst [vmem:[#allocation8_spill] sm:$0xff] %v3033_v48  ;;  %4725 = vst [vmem:[#allocation10_spill] sm:$0xff] %v3045_v60  ;;  %v538_v0 = vsel %vm2956_vm3, %v3033_v48, -1e+30  ;;  %v546_v4 = vsel %vm2956_vm3, %v3045_v60, -1e+30  ;;  %v1421_v6 = vmul.f32 %v3033_v48, %v3033_v48  ;;  %v1429_v3 = vmul.f32 %v3045_v60, %v3045_v60 }
 0x130   : > { %554 = vmax.xlane.f32.xlu1 %v536_v27  ;;  %552 = vmax.xlane.f32.xlu0 %v535_v28  ;;  %v472_v32 = vpop.f32.mrb[10].mxu0  ;;  %v512_v33 = vpop.f32.mrb[10].mxu1 }
 0x131   : > { %v474_v38 = vpop.f32.mrb[11].mxu0  ;;  %v514_v39 = vpop.f32.mrb[11].mxu1  ;;  %v3042_v59 = vadd.f32 %v2954_v50, %v472_v32  ;;  %v3053_v1 = vadd.f32 %v2954_v50, %v512_v33  ;;  %v1437_v8 = vsel %vm2956_vm3, %v1421_v6, 0.0  ;;  %v1445_v12 = vsel %vm2956_vm3, %v1429_v3, 0.0 }
 0x132   : > { %v3106_v28 = vpop.permute.xlu1 %797  ;;  %v1928_v32 = vcvt.s32.f32 %v2822_v30  ;;  %v3124_v39 = vpop.permute.xlu0 %818 }
 0x133   : > { %4724 = vst [vmem:[#allocation9_spill] sm:$0xff] %v3042_v59  ;;  %v539_v2 = vsel %vm2956_vm3, %v3042_v59, -1e+30  ;;  %v547_v7 = vsel %vm2956_vm3, %v3053_v1, -1e+30  ;;  %v1422_v9 = vmul.f32 %v3042_v59, %v3042_v59  ;;  %v1430_v13 = vmul.f32 %v3053_v1, %v3053_v1 }
 0x134   : > { %556 = vmax.xlane.f32.xlu1 %v537_v35  ;;  %570 = vmax.xlane.f32.xlu0 %v544_v36  ;;  %v477_v40 = vpop.f32.mrb[12].mxu0  ;;  %v517_v41 = vpop.f32.mrb[12].mxu1 }
 0x135   : > { %v479_v45 = vpop.f32.mrb[13].mxu0  ;;  %v519_v46 = vpop.f32.mrb[13].mxu1  ;;  %v3073_v10 = vadd.f32 %v2954_v50, %v477_v40  ;;  %v1438_v11 = vsel %vm2956_vm3, %v1422_v9, 0.0  ;;  %v3085_v15 = vadd.f32 %v2954_v50, %v517_v41  ;;  %v1446_v17 = vsel %vm2956_vm3, %v1430_v13, 0.0 }
 0x136   : > { %v3130_v30 = vpop.permute.xlu0 %824 }
 0x137   : > { %v540_v18 = vsel %vm2956_vm3, %v3073_v10, -1e+30  ;;  %v548_v22 = vsel %vm2956_vm3, %v3085_v15, -1e+30  ;;  %v1423_v5 = vmul.f32 %v3073_v10, %v3073_v10  ;;  %4732 = vst [vmem:[#allocation17_spill] sm:$0xff] %v3130_v30 }
 0x138   : > { %572 = vmax.xlane.f32.xlu1 %v545_v24  ;;  %1453 = vadd.xlane.f32.xlu0 %v1435_v42  ;;  %v482_v37 = vpop.f32.mrb[14].mxu0  ;;  %v522_v47 = vpop.f32.mrb[14].mxu1  ;;  %v1431_v42 = vmul.f32 %v3085_v15, %v3085_v15 }
 0x139   : > { %v484_v57 = vpop.f32.mrb[15].mxu0  ;;  %v524_v58 = vpop.f32.mrb[15].mxu1  ;;  %v3082_v14 = vadd.f32 %v2954_v50, %v482_v37  ;;  %v3093_v19 = vadd.f32 %v2954_v50, %v522_v47  ;;  %v1439_v41 = vsel %vm2956_vm3, %v1423_v5, 0.0 }
 0x13a   : > { %v3108_v50 = vpop.permute.xlu1 %800  ;;  %v3140_v44 = vpop.permute.xlu0 %830  ;;  %v1447_v46 = vsel %vm2956_vm3, %v1431_v42, 0.0 }
 0x13b   : > { %v541_v20 = vsel %vm2956_vm3, %v3082_v14, -1e+30  ;;  %v549_v27 = vsel %vm2956_vm3, %v3093_v19, -1e+30  ;;  %4726 = vst [vmem:[#allocation11_spill] sm:$0xff] %v3108_v50  ;;  %v1424_v24 = vmul.f32 %v3082_v14, %v3082_v14  ;;  %4734 = vst [vmem:[#allocation19_spill] sm:$0xff] %v3140_v44  ;;  %v1432_v37 = vmul.f32 %v3093_v19, %v3093_v19 }
 0x13c   : > { %1455 = vadd.xlane.f32.xlu1 %v1436_v51  ;;  %1469 = vadd.xlane.f32.xlu0 %v1443_v52 }
 0x13d   : > { %v1440_v45 = vsel %vm2956_vm3, %v1424_v24, 0.0  ;;  %v1448_v51 = vsel %vm2956_vm3, %v1432_v37, 0.0 }
 0x13e   : > { %v3110_v29 = vpop.permute.xlu1 %803  ;;  %v3152_v52 = vpop.permute.xlu0 %836 }
 0x13f   : > { %4727 = vst [vmem:[#allocation12_spill] sm:$0xff] %v3110_v29  ;;  %4736 = vst [vmem:[#allocation21_spill] sm:$0xff] %v3152_v52 }
 0x140   : > { %1471 = vadd.xlane.f32.xlu1 %v1444_v63  ;;  %558 = vmax.xlane.f32.xlu0 %v538_v0 }
 0x142   : > { %v3114_v33 = vpop.permute.xlu1 %806  ;;  %v3156_v57 = vpop.permute.xlu0 %1937 }
 0x143   : > { %4728 = vst [vmem:[#allocation13_spill] sm:$0xff] %v3114_v33  ;;  %4738 = vst [vmem:[#allocation23_spill] sm:$0xff] %v3156_v57 }
 0x144   : > { %560 = vmax.xlane.f32.xlu1 %v539_v2  ;;  %574 = vmax.xlane.f32.xlu0 %v546_v4 }
 0x146   : > { %v3116_v35 = vpop.permute.xlu1 %809  ;;  %v3160_v63 = vpop.permute.xlu0 %1952 }
 0x147   : > { %4729 = vst [vmem:[#allocation14_spill] sm:$0xff] %v3116_v35  ;;  %4740 = vst [vmem:[#allocation25_spill] sm:$0xff] %v3160_v63 }
 0x148   : > { %576 = vmax.xlane.f32.xlu1 %v547_v7  ;;  %1457 = vadd.xlane.f32.xlu0 %v1437_v8 }
 0x14a   : > { %v3118_v36 = vpop.permute.xlu1 %812  ;;  %v3164_v2 = vpop.permute.xlu0 %1962 }
 0x14b   : > { %4730 = vst [vmem:[#allocation15_spill] sm:$0xff] %v3118_v36  ;;  %4742 = vst [vmem:[#allocation27_spill] sm:$0xff] %v3164_v2 }
 0x14c   : > { %1459 = vadd.xlane.f32.xlu1 %v1438_v11  ;;  %1473 = vadd.xlane.f32.xlu0 %v1445_v12 }
 0x14e   : > { %v3122_v38 = vpop.permute.xlu1 %815  ;;  %v3168_v6 = vpop.permute.xlu0 %1972 }
 0x14f   : > { %4744 = vst [vmem:[#allocation29_spill] sm:$0xff] %v3168_v6 }
 0x150   : > { %1475 = vadd.xlane.f32.xlu1 %v1446_v17  ;;  %562 = vmax.xlane.f32.xlu0 %v540_v18 }
 0x152   : > { %v3126_v40 = vpop.permute.xlu1 %821 }
 0x153   : > { %4731 = vst [vmem:[#allocation16_spill] sm:$0xff] %v3126_v40 }
 0x154   : > { %564 = vmax.xlane.f32.xlu1 %v541_v20  ;;  %578 = vmax.xlane.f32.xlu0 %v548_v22 }
 0x156   : > { %v3138_v43 = vpop.permute.xlu1 %827 }
 0x157   : > { %4733 = vst [vmem:[#allocation18_spill] sm:$0xff] %v3138_v43 }
 0x158   : > { %580 = vmax.xlane.f32.xlu1 %v549_v27 }
 0x15a   : > { %v3148_v47 = vpop.permute.xlu1 %833 }
 0x15b   : > { %4735 = vst [vmem:[#allocation20_spill] sm:$0xff] %v3148_v47 }
 0x15e   : > { %v3154_v55 = vpop.permute.xlu1 %1942 }
 0x15f   : > { %4737 = vst [vmem:[#allocation22_spill] sm:$0xff] %v3154_v55 }
 0x162   : > { %v3158_v58 = vpop.permute.xlu1 %1947 }
 0x163   : > { %4739 = vst [vmem:[#allocation24_spill] sm:$0xff] %v3158_v58 }
 0x166   : > { %v3162_v0 = vpop.permute.xlu1 %1957 }
 0x167   : > { %4741 = vst [vmem:[#allocation26_spill] sm:$0xff] %v3162_v0 }
 0x169   : > { %1987 = vperm.xlu1 %2354, %v1929_v31  }
 0x16a   : > { %1982 = vperm.xlu0 %2353, %v1928_v32   ;;  %v3166_v4 = vpop.permute.xlu1 %1967 }
 0x16b   : > { %4743 = vst [vmem:[#allocation28_spill] sm:$0xff] %v3166_v4 }
 0x16e   : > { %v3170_v7 = vpop.permute.xlu1 %1977 }
 0x16f   : > { %4745 = vst [vmem:[#allocation30_spill] sm:$0xff] %v3170_v7 }
 0x189   : > { %1461 = vadd.xlane.f32.xlu0 %v1439_v41 }
 0x18d   : > { %1463 = vadd.xlane.f32.xlu1 %v1440_v45  ;;  %1477 = vadd.xlane.f32.xlu0 %v1447_v46 }
 0x191   : > { %1479 = vadd.xlane.f32.xlu1 %v1448_v51 }
 0x1ad   : > { %v3172_v8 = vpop.xlane.xlu0 %550 }
 0x1ae   : > { %v582_v9 = vsub.f32 %v2961_v54, %v3172_v8 }
 0x1b0   : > { %v598_v3 = vmul.f32 1.442695, %v582_v9 }
 0x1b1   : > { %v3176_v11 = vpop.xlane.xlu1 %568  ;;  %v3178_v12 = vpop.xlane.xlu0 %566 }
 0x1b2   : > { %2355 = vpow2.f32 %v598_v3  ;;  %v590_v13 = vsub.f32 %v2964_v56, %v3178_v12  ;;  %v591_v32 = vsub.f32 %v2970_v61, %v3176_v11 }
 0x1b4   : > { %v614_v17 = vmul.f32 1.442695, %v590_v13  ;;  %v616_v46 = vmul.f32 1.442695, %v591_v32 }
 0x1b5   : > { %v3182_v18 = vpop.xlane.xlu1 %1451  ;;  %v3184_v20 = vpop.xlane.xlu0 %1449 }
 0x1b6   : > { %2357 = vpow2.f32 %v614_v17  ;;  %vm1499_vm4 = vcmp.eq.f32.partialorder %v3184_v20, inf  ;;  %vm1506_vm8 = vcmp.eq.f32.partialorder %v3182_v18, inf  ;;  %vm1501_vm10 = vcmp.eq.f32.partialorder %v3184_v20, 0.0 }
 0x1b7   : > { %2359 = vrsqrt.f32 %v3182_v18  ;;  %vm1508_vm11 = vcmp.eq.f32.partialorder %v3182_v18, 0.0 }
 0x1b8   : > { %2361 = vrsqrt.f32 %v3184_v20 }
 0x1b9   : > { %v1468_v22 = vpop.xlane.xlu1 %1467  ;;  %v1466_v27 = vpop.xlane.xlu0 %1465 }
 0x1ba   : > { %2363 = vrsqrt.f32 %v1468_v22  ;;  %vm1562_vm5 = vcmp.eq.f32.partialorder %v1468_v22, inf  ;;  %v1565_v63 = vand.u32 2147483648, %v1468_v22  ;;  %vm1555_vm6 = vcmp.eq.f32.partialorder %v1466_v27, inf }
 0x1bb   : > { %2365 = vrsqrt.f32 %v1466_v27  ;;  %vm1557_vm7 = vcmp.eq.f32.partialorder %v1466_v27, 0.0  ;;  %v1558_v57 = vand.u32 2147483648, %v1466_v27  ;;  %vm1564_vm9 = vcmp.eq.f32.partialorder %v1468_v22, 0.0 }
 0x1bc   : > { %v2356_v31 = vpop.eup %2355 }
 0x1bd   : > { %v3190_v5 = vpop.xlane.xlu1 %554  ;;  %v3192_v41 = vpop.xlane.xlu0 %552  ;;  %v3196_v24 = vsel %vm2956_vm3, %v2356_v31, 0.0 }
 0x1be   : > { %v584_v42 = vsub.f32 %v2994_v16, %v3190_v5  ;;  %v583_v45 = vsub.f32 %v2973_v62, %v3192_v41  ;;  %646 = vadd.xlane.f32.xlu0 %v3196_v24 }
 0x1c0   : > { %v602_v37 = vmul.f32 1.442695, %v584_v42  ;;  %v600_v51 = vmul.f32 1.442695, %v583_v45  ;;  %v2358_v9 = vpop.eup %2357 }
 0x1c1   : > { %v3203_v3 = vpop.xlane.xlu1 %556  ;;  %v3205_v13 = vpop.xlane.xlu0 %570  ;;  %v3213_v4 = vsel %vm2956_vm3, %v2358_v9, 0.0 }
 0x1c2   : > { %4746 = vst [vmem:[#allocation31_spill] sm:$0xff] %v3203_v3  ;;  %v2360_v17 = vpop.eup %2359  ;;  %2367 = vpow2.f32 %v602_v37  ;;  %v585_v31 = vsub.f32 %v3001_v25, %v3203_v3  ;;  %v592_v6 = vsub.f32 %v3004_v26, %v3205_v13  ;;  %662 = vadd.xlane.f32.xlu0 %v3213_v4 }
 0x1c3   : > { %v2362_v32 = vpop.eup %2361  ;;  %2369 = vpow2.f32 %v600_v51  ;;  %v1505_v51 = vmul.f32 %v2360_v17, %v3182_v18 }
 0x1c4   : > { %v2364_v42 = vpop.eup %2363  ;;  %2371 = vpow2.f32 %v616_v46  ;;  %v1498_v45 = vmul.f32 %v2362_v32, %v3184_v20  ;;  %v618_v37 = vmul.f32 1.442695, %v592_v6  ;;  %v604_v7 = vmul.f32 1.442695, %v585_v31 }
 0x1c5   : > { %v2366_v2 = vpop.eup %2365  ;;  %v1561_v0 = vmul.f32 %v2364_v42, %v1468_v22  ;;  %v3218_v58 = vpop.xlane.xlu1 %572 }
 0x1c6   : > { %4747 = vst [vmem:[#allocation32_spill] sm:$0xff] %v3218_v58  ;;  %v3220_v9 = vpop.xlane.xlu0 %1453  ;;  %v1554_v55 = vmul.f32 %v2366_v2, %v1466_v27  ;;  %v593_v46 = vsub.f32 %v3013_v34, %v3218_v58  ;;  %2373 = vpow2.f32 %v618_v37  ;;  %v1500_v6 = vsel %vm1499_vm4, %v3184_v20, %v1498_v45 }
 0x1c7   : > { %v1563_v32 = vsel %vm1562_vm5, %v1468_v22, %v1561_v0  ;;  %2375 = vrsqrt.f32 %v3220_v9  ;;  %v1502_v2 = vand.u32 2147483648, %v3184_v20  ;;  %v1507_v37 = vsel %vm1506_vm8, %v3182_v18, %v1505_v51 }
 0x1c8   : > { %v1556_v42 = vsel %vm1555_vm6, %v1466_v27, %v1554_v55  ;;  %v620_v52 = vmul.f32 1.442695, %v593_v46  ;;  %v1566_v36 = vsel %vm1564_vm9, %v1565_v63, %v1563_v32  ;;  %2377 = vpow2.f32 %v604_v7 }
 0x1c9   : > { %v1559_v17 = vsel %vm1557_vm7, %v1558_v57, %v1556_v42  ;;  %v3231_v31 = vpop.xlane.xlu1 %1455  ;;  %v1509_v55 = vand.u32 2147483648, %v3182_v18  ;;  %v1503_v45 = vsel %vm1501_vm10, %v1502_v2, %v1500_v6  ;;  %v1618_v20 = vmax.f32 %v1566_v36, 1e-12 }
 0x1ca   : > { %v3233_v0 = vpop.xlane.xlu0 %1469  ;;  %v1617_v57 = vmax.f32 %v1559_v17, 1e-12  ;;  %2379 = vpow2.f32 %v620_v52  ;;  %v1609_v52 = vmax.f32 %v1503_v45, 1e-12  ;;  %vm1513_vm12 = vcmp.eq.f32.partialorder %v3220_v9, inf }
 0x1cb   : > { %2381 = vrsqrt.f32 %v3231_v31  ;;  %v1510_v6 = vsel %vm1508_vm11, %v1509_v55, %v1507_v37  ;;  %v1516_v22 = vand.u32 2147483648, %v3220_v9  ;;  %vm1515_vm13 = vcmp.eq.f32.partialorder %v3220_v9, 0.0 }
 0x1cc   : > { %v2368_v46 = vpop.eup %2367  ;;  %2383 = vrsqrt.f32 %v3233_v0  ;;  %v1610_v55 = vmax.f32 %v1510_v6, 1e-12  ;;  %vm1520_vm14 = vcmp.eq.f32.partialorder %v3231_v31, inf  ;;  %vm1522_vm15 = vcmp.eq.f32.partialorder %v3231_v31, 0.0 }
 0x1cd   : > { %v2370_v51 = vpop.eup %2369  ;;  %v3246_v63 = vpop.xlane.xlu1 %1471  ;;  %v3252_v32 = vsel %vm2956_vm3, %v2368_v46, 0.0  ;;  %vm1569_vm0 = vcmp.eq.f32.partialorder %v3233_v0, inf  ;;  %vm1571_vm1 = vcmp.eq.f32.partialorder %v3233_v0, 0.0 }
 0x1ce   : > { %v3248_v7 = vpop.xlane.xlu0 %558  ;;  %4749 = vst [vmem:[#allocation34_spill] sm:$0xff] %v3252_v32  ;;  %v2372_v18 = vpop.eup %2371  ;;  %650 = vadd.xlane.f32.xlu0 %v3252_v32  ;;  %2385 = vrsqrt.f32 %v3246_v63  ;;  %v3267_v17 = vsel %vm2956_vm3, %v2370_v51, 0.0  ;;  %vm1576_vm2 = vcmp.eq.f32.partialorder %v3246_v63, inf  ;;  %vm1578_vm4 = vcmp.eq.f32.partialorder %v3246_v63, 0.0 }
 0x1cf   : > { %4748 = vst [vmem:[#allocation33_spill] sm:$0xff] %v3248_v7  ;;  %v586_v2 = vsub.f32 %v3033_v48, %v3248_v7  ;;  %2387 = vrcp.f32 %v1617_v57  ;;  %648 = vadd.xlane.f32.xlu1 %v3267_v17  ;;  %v3301_v6 = vsel %vm2956_vm3, %v2372_v18, 0.0 }
 0x1d0   : > { %v2374_v36 = vpop.eup %2373  ;;  %2389 = vrcp.f32 %v1618_v20  ;;  %4753 = vst [vmem:[#allocation38_spill] sm:$0xff] %v3301_v6 }
 0x1d1   : > { %v606_v51 = vmul.f32 1.442695, %v586_v2  ;;  %v3279_v27 = vpop.xlane.xlu1 %560  ;;  %v2376_v45 = vpop.eup %2375  ;;  %v3295_v2 = vsel %vm2956_vm3, %v2374_v36, 0.0  ;;  %2391 = vrcp.f32 %v1609_v52 }
 0x1d2   : > { %4750 = vst [vmem:[#allocation35_spill] sm:$0xff] %v3279_v27  ;;  %v3281_v42 = vpop.xlane.xlu0 %574  ;;  %v587_v37 = vsub.f32 %v3042_v59, %v3279_v27  ;;  %4752 = vst [vmem:[#allocation37_spill] sm:$0xff] %v3295_v2  ;;  %v1512_v46 = vmul.f32 %v2376_v45, %v3220_v9  ;;  %666 = vadd.xlane.f32.xlu0 %v3295_v2  ;;  %v2378_v57 = vpop.eup %2377  ;;  %v1579_v27 = vand.u32 2147483648, %v3246_v63 }
 0x1d3   : > { %4751 = vst [vmem:[#allocation36_spill] sm:$0xff] %v3281_v42  ;;  %v594_v20 = vsub.f32 %v3045_v60, %v3281_v42  ;;  %2393 = vpow2.f32 %v606_v51  ;;  %664 = vadd.xlane.f32.xlu1 %v3301_v6 }
 0x1d4   : > { %v608_v47 = vmul.f32 1.442695, %v587_v37  ;;  %2395 = vrcp.f32 %v1610_v55  ;;  %v1514_v52 = vsel %vm1513_vm12, %v3220_v9, %v1512_v46  ;;  %v2380_v45 = vpop.eup %2379  ;;  %v1523_v37 = vand.u32 2147483648, %v3231_v31 }
 0x1d5   : > { %v622_v44 = vmul.f32 1.442695, %v594_v20  ;;  %v3310_v18 = vpop.xlane.xlu1 %576  ;;  %v1517_v51 = vsel %vm1515_vm13, %v1516_v22, %v1514_v52  ;;  %v2382_v20 = vpop.eup %2381  ;;  %v3321_v9 = vsel %vm2956_vm3, %v2378_v57, 0.0  ;;  %v3347_v30 = vsel %vm2956_vm3, %v2380_v45, 0.0 }
 0x1d6   : > { %4754 = vst [vmem:[#allocation39_spill] sm:$0xff] %v3310_v18  ;;  %v3312_v36 = vpop.xlane.xlu0 %1457  ;;  %2397 = vpow2.f32 %v608_v47  ;;  %v595_v55 = vsub.f32 %v3053_v1, %v3310_v18  ;;  %4755 = vst [vmem:[#allocation40_spill] sm:$0xff] %v3321_v9  ;;  %v2384_v46 = vpop.eup %2383  ;;  %v1611_v35 = vmax.f32 %v1517_v51, 1e-12  ;;  %v1519_v22 = vmul.f32 %v2382_v20, %v3231_v31 }
 0x1d7   : > { %2399 = vpow2.f32 %v622_v44  ;;  %652 = vadd.xlane.f32.xlu1 %v3321_v9  ;;  %v1568_v33 = vmul.f32 %v2384_v46, %v3233_v0  ;;  %v1572_v18 = vand.u32 2147483648, %v3233_v0  ;;  %4756 = vst [vmem:[#allocation41_spill] sm:$0xff] %v3347_v30  ;;  %vm1527_vm5 = vcmp.eq.f32.partialorder %v3312_v36, inf }
 0x1d8   : > { %v624_v52 = vmul.f32 1.442695, %v595_v55  ;;  %2401 = vrsqrt.f32 %v3312_v36  ;;  %v2386_v47 = vpop.eup %2385  ;;  %v1521_v55 = vsel %vm1520_vm14, %v3231_v31, %v1519_v22  ;;  %vm1529_vm6 = vcmp.eq.f32.partialorder %v3312_v36, 0.0 }
 0x1d9   : > { %v3330_v44 = vpop.xlane.xlu1 %1459  ;;  %v2388_v51 = vpop.eup %2387  ;;  %v1575_v20 = vmul.f32 %v2386_v47, %v3246_v63  ;;  %v1524_v43 = vsel %vm1522_vm15, %v1523_v37, %v1521_v55  ;;  %v1570_v9 = vsel %vm1569_vm0, %v3233_v0, %v1568_v33  ;;  %v4758_v0 = vsel %vm2956_vm3, %v2964_v56, 0.0 }
 0x1da   : > { %v3332_v57 = vpop.xlane.xlu0 %1473  ;;  %2403 = vpow2.f32 %v624_v52  ;;  %v2390_v46 = vpop.eup %2389  ;;  %v1612_v47 = vmax.f32 %v1524_v43, 1e-12  ;;  %v1573_v52 = vsel %vm1571_vm1, %v1572_v18, %v1570_v9  ;;  %v3367_v18 = vmul.f32 %v2388_v51, %v4758_v0 }
 0x1db   : > { %2405 = vrsqrt.f32 %v3330_v44  ;;  %v2392_v22 = vpop.eup %2391  ;;  %v1577_v31 = vsel %vm1576_vm2, %v3246_v63, %v1575_v20  ;;  %668 = vadd.xlane.f32.xlu1 %v3347_v30  ;;  %v1619_v37 = vmax.f32 %v1573_v52, 1e-12  ;;  %v1530_v63 = vand.u32 2147483648, %v3312_v36 }
 0x1dc   : > { %2407 = vrcp.f32 %v1611_v35  ;;  %v1580_v45 = vsel %vm1578_vm4, %v1579_v27, %v1577_v31  ;;  %vm1534_vm7 = vcmp.eq.f32.partialorder %v3330_v44, inf  ;;  %v1537_v27 = vand.u32 2147483648, %v3330_v44 }
 0x1dd   : > { %v2394_v33 = vpop.eup %2393  ;;  %2409 = vrsqrt.f32 %v3332_v57  ;;  %v3359_v35 = vpop.xlane.xlu1 %1475  ;;  %v1620_v55 = vmax.f32 %v1580_v45, 1e-12  ;;  %v4759_v20 = vsel %vm2956_vm3, %v2970_v61, 0.0  ;;  %vm1536_vm8 = vcmp.eq.f32.partialorder %v3330_v44, 0.0 }
 0x1de   : > { %v3361_v43 = vpop.xlane.xlu0 %562  ;;  %v2396_v9 = vpop.eup %2395  ;;  %2411 = vrcp.f32 %v1612_v47  ;;  %v3377_v52 = vmul.f32 %v2390_v46, %v4759_v20  ;;  %v3384_v31 = vsel %vm2956_vm3, %v2394_v33, 0.0  ;;  %vm1583_vm9 = vcmp.eq.f32.partialorder %v3332_v57, inf }
 0x1df   : > { %4757 = vst [vmem:[#allocation42_spill] sm:$0xff] %v3361_v43  ;;  %2413 = vrcp.f32 %v1619_v37  ;;  %v588_v47 = vsub.f32 %v3073_v10, %v3361_v43  ;;  %4760 = vst [vmem:[#allocation43_spill] sm:$0xff] %v3384_v31  ;;  %v4761_v37 = vsel %vm2956_vm3, %v2961_v54, 0.0  ;;  %654 = vadd.xlane.f32.xlu0 %v3384_v31  ;;  %vm1585_vm10 = vcmp.eq.f32.partialorder %v3332_v57, 0.0 }
 0x1e0   : > { %v2398_v51 = vpop.eup %2397  ;;  %2415 = vrcp.f32 %v1620_v55  ;;  %v3390_v45 = vmul.f32 %v2392_v22, %v4761_v37  ;;  %v4765_v22 = vsel %vm2956_vm3, %v2973_v62, 0.0  ;;  %v1705_v37 = vrot.slane %v3367_v18, 4 }
 0x1e1   : > { %v2400_v0 = vpop.eup %2399  ;;  %2417 = vrsqrt.f32 %v3359_v35  ;;  %v3395_v46 = vpop.xlane.xlu1 %564  ;;  %v3401_v33 = vsel %vm2956_vm3, %v2398_v51, 0.0  ;;  %v3407_v20 = vmul.f32 %v2396_v9, %v4765_v22  ;;  %v610_v30 = vmul.f32 1.442695, %v588_v47 }
 0x1e2   : > { %4762 = vst [vmem:[#allocation44_spill] sm:$0xff] %v3395_v46  ;;  %v3397_v55 = vpop.xlane.xlu0 %578  ;;  %4764 = vst [vmem:[#allocation46_spill] sm:$0xff] %v3401_v33  ;;  %v2402_v43 = vpop.eup %2401  ;;  %v589_v31 = vsub.f32 %v3082_v14, %v3395_v46  ;;  %656 = vadd.xlane.f32.xlu1 %v3401_v33  ;;  %v3417_v51 = vsel %vm2956_vm3, %v2400_v0, 0.0  ;;  %v1657_v9 = vrot.slane %v3390_v45, 4  ;;  %v1706_v47 = vadd.f32 %v1705_v37, %v3367_v18 }
 0x1e3   : > { %4763 = vst [vmem:[#allocation45_spill] sm:$0xff] %v3397_v55  ;;  %v596_v29 = vsub.f32 %v3085_v15, %v3397_v55  ;;  %4766 = vst [vmem:[#allocation47_spill] sm:$0xff] %v3417_v51  ;;  %v1526_v42 = vmul.f32 %v2402_v43, %v3312_v36  ;;  %v1663_v22 = vrot.slane %v3407_v20, 4  ;;  %2419 = vpow2.f32 %v610_v30  ;;  %670 = vadd.xlane.f32.xlu0 %v3417_v51 }
 0x1e4   : > { %v2404_v50 = vpop.eup %2403  ;;  %v612_v46 = vmul.f32 1.442695, %v589_v31  ;;  %v1711_v55 = vrot.slane %v3377_v52, 4  ;;  %v1658_v37 = vadd.f32 %v1657_v9, %v3390_v45  ;;  %vm1590_vm11 = vcmp.eq.f32.partialorder %v3359_v35, inf }
 0x1e5   : > { %v626_v7 = vmul.f32 1.442695, %v596_v29  ;;  %v2406_v2 = vpop.eup %2405  ;;  %v1528_v0 = vsel %vm1527_vm5, %v3312_v36, %v1526_v42  ;;  %v3428_v43 = vpop.xlane.xlu1 %580  ;;  %v3432_v33 = vsel %vm2956_vm3, %v2404_v50, 0.0  ;;  %v1664_v30 = vadd.f32 %v1663_v22, %v3407_v20 }
 0x1e6   : > { %4767 = vst [vmem:[#allocation48_spill] sm:$0xff] %v3428_v43  ;;  %4768 = vst [vmem:[#allocation49_spill] sm:$0xff] %v3432_v33  ;;  %v2408_v29 = vpop.eup %2407  ;;  %v1531_v31 = vsel %vm1529_vm6, %v1530_v63, %v1528_v0  ;;  %v1533_v58 = vmul.f32 %v2406_v2, %v3330_v44  ;;  %2421 = vpow2.f32 %v612_v46  ;;  %v597_v42 = vsub.f32 %v3093_v19, %v3428_v43 }
 0x1e7   : > { %672 = vadd.xlane.f32.xlu1 %v3432_v33  ;;  %v2410_v51 = vpop.eup %2409  ;;  %v1613_v32 = vmax.f32 %v1531_v31, 1e-12  ;;  %2423 = vpow2.f32 %v626_v7  ;;  %v1659_v50 = vrot.slane %v1658_v37, 2  ;;  %v1665_v6 = vrot.slane %v1664_v30, 2 }
 0x1e8   : > { %v2412_v9 = vpop.eup %2411  ;;  %v1535_v22 = vsel %vm1534_vm7, %v3330_v44, %v1533_v58  ;;  %v1582_v36 = vmul.f32 %v2410_v51, %v3332_v57  ;;  %v628_v63 = vmul.f32 1.442695, %v597_v42  ;;  %v1707_v2 = vrot.slane %v1706_v47, 2 }
 0x1e9   : > { %v2414_v46 = vpop.eup %2413  ;;  %2425 = vrcp.f32 %v1613_v32  ;;  %v1538_v0 = vsel %vm1536_vm8, %v1537_v27, %v1535_v22  ;;  %v1586_v43 = vand.u32 2147483648, %v3332_v57  ;;  %v1660_v31 = vadd.f32 %v1659_v50, %v1658_v37 }
 0x1ea   : > { %v2416_v7 = vpop.eup %2415  ;;  %v1614_v33 = vmax.f32 %v1538_v0, 1e-12  ;;  %v1584_v3 = vsel %vm1583_vm9, %v3332_v57, %v1582_v36  ;;  %2427 = vpow2.f32 %v628_v63  ;;  %v1666_v42 = vadd.f32 %v1665_v6, %v1664_v30 }
 0x1eb   : > { %v2418_v58 = vpop.eup %2417  ;;  %v1587_v51 = vsel %vm1585_vm10, %v1586_v43, %v1584_v3  ;;  %v1708_v40 = vadd.f32 %v1707_v2, %v1706_v47  ;;  %v1712_v32 = vadd.f32 %v1711_v55, %v3377_v52  ;;  %v1661_v37 = vrot.slane %v1660_v31, 1 }
 0x1ec   : > { %2429 = vrcp.f32 %v1614_v33  ;;  %v1621_v44 = vmax.f32 %v1587_v51, 1e-12  ;;  %v1589_v27 = vmul.f32 %v2418_v58, %v3359_v35  ;;  %v1593_v50 = vand.u32 2147483648, %v3359_v35 }
 0x1ed   : > { %v1713_v22 = vrot.slane %v1712_v32, 2  ;;  %v4769_v57 = vsel %vm2956_vm3, %v2994_v16, 0.0  ;;  %v2420_v3 = vpop.eup %2419  ;;  %vm1592_vm12 = vcmp.eq.f32.partialorder %v3359_v35, 0.0  ;;  %v4770_v55 = vsel %vm2956_vm3, %v3001_v25, 0.0 }
 0x1ee   : > { %v3461_v36 = vmul.f32 %v2408_v29, %v4769_v57  ;;  %2431 = vrcp.f32 %v1621_v44  ;;  %v1591_v6 = vsel %vm1590_vm11, %v3359_v35, %v1589_v27  ;;  %v3469_v33 = vmul.f32 %v2412_v9, %v4770_v55 }
 0x1ef   : > { %v1594_v47 = vsel %vm1592_vm12, %v1593_v50, %v1591_v6  ;;  %v3473_v43 = vsel %vm2956_vm3, %v2420_v3, 0.0  ;;  %v1667_v30 = vrot.slane %v1666_v42, 1  ;;  %v1709_v29 = vrot.slane %v1708_v40, 1 }
 0x1f0   : > { %4771 = vst [vmem:[#allocation50_spill] sm:$0xff] %v3473_v43  ;;  %v2422_v63 = vpop.eup %2421  ;;  %v1622_v2 = vmax.f32 %v1594_v47, 1e-12  ;;  %658 = vadd.xlane.f32.xlu0 %v3473_v43  ;;  %v1662_v0 = vadd.f32 %v1661_v37, %v1660_v31  ;;  %v1714_v58 = vadd.f32 %v1713_v22, %v1712_v32  ;;  %v1669_v35 = vrot.slane %v3461_v36, 4 }
 0x1f1   : > { %v2424_v51 = vpop.eup %2423  ;;  %v3479_v9 = vsel %vm2956_vm3, %v2422_v63, 0.0  ;;  %v1675_v44 = vrot.slane %v3469_v33, 4  ;;  %v4773_v27 = vsel %vm2956_vm3, %v3004_v26, 0.0  ;;  %v4774_v31 = vsel %vm2956_vm3, %v3013_v34, 0.0 }
 0x1f2   : > { %4772 = vst [vmem:[#allocation51_spill] sm:$0xff] %v3479_v9  ;;  %v3486_v50 = vmul.f32 %v2414_v46, %v4773_v27  ;;  %v3492_v32 = vmul.f32 %v2416_v7, %v4774_v31  ;;  %2433 = vrcp.f32 %v1622_v2  ;;  %660 = vadd.xlane.f32.xlu1 %v3479_v9  ;;  %v3497_v37 = vsel %vm2956_vm3, %v2424_v51, 0.0 }
 0x1f3   : > { %4775 = vst [vmem:[#allocation52_spill] sm:$0xff] %v3497_v37  ;;  %v1715_v22 = vrot.slane %v1714_v58, 1  ;;  %v1670_v57 = vadd.f32 %v1669_v35, %v3461_v36  ;;  %v2426_v3 = vpop.eup %2425  ;;  %v1676_v46 = vadd.f32 %v1675_v44, %v3469_v33  ;;  %v1486_v7 = vsel %vm2956_vm3, %v3042_v59, 0.0 }
 0x1f4   : > { %v1717_v6 = vrot.slane %v3486_v50, 4  ;;  %v1723_v55 = vrot.slane %v3492_v32, 4  ;;  %v2428_v47 = vpop.eup %2427  ;;  %674 = vadd.xlane.f32.xlu0 %v3497_v37  ;;  %v1668_v63 = vadd.f32 %v1667_v30, %v1666_v42  ;;  %v1710_v2 = vadd.f32 %v1709_v29, %v1708_v40 }
 0x1f5   : > { %v1671_v51 = vrot.slane %v1670_v57, 2  ;;  %v4776_v35 = vsel %vm2956_vm3, %v3033_v48, 0.0  ;;  %v3515_v44 = vsel %vm2956_vm3, %v2428_v47, 0.0  ;;  %v1677_v31 = vrot.slane %v1676_v46, 2 }
 0x1f6   : > { %v3511_v27 = vmul.f32 %v2426_v3, %v4776_v35  ;;  %4777 = vst [vmem:[#allocation53_spill] sm:$0xff] %v3515_v44  ;;  %v1718_v9 = vadd.f32 %v1717_v6, %v3486_v50  ;;  %v1724_v43 = vadd.f32 %v1723_v55, %v3492_v32  ;;  %v2430_v34 = vpop.eup %2429  ;;  %676 = vadd.xlane.f32.xlu1 %v3515_v44  ;;  %v1493_v44 = vsel %vm2956_vm3, %v3045_v60, 0.0 }
 0x1f7   : > { %v1753_v40 = vmul.f32 %v1662_v0, %v3390_v45  ;;  %v1716_v42 = vadd.f32 %v1715_v22, %v1714_v58  ;;  %v1672_v30 = vadd.f32 %v1671_v51, %v1670_v57  ;;  %v1678_v3 = vadd.f32 %v1677_v31, %v1676_v46 }
 0x1f8   : > { %v1681_v29 = vrot.slane %v3511_v27, 4  ;;  %v1719_v35 = vrot.slane %v1718_v9, 2  ;;  %v1725_v37 = vrot.slane %v1724_v43, 2  ;;  %v1636_v48 = vmul.f32 %v2430_v34, %v1486_v7  ;;  %v2432_v47 = vpop.eup %2431 }
 0x1f9   : > { %1769 = vadd.xlane.f32.xlu0 %v1753_v40  ;;  %v1754_v59 = vmul.f32 %v1668_v63, %v3407_v20  ;;  %v1673_v6 = vrot.slane %v1672_v30, 1  ;;  %v1679_v45 = vrot.slane %v1678_v3, 1  ;;  %v1761_v57 = vmul.f32 %v1710_v2, %v3367_v18 }
 0x1fa   : > { %v1682_v55 = vadd.f32 %v1681_v29, %v3511_v27  ;;  %v1720_v0 = vadd.f32 %v1719_v35, %v1718_v9  ;;  %v1726_v58 = vadd.f32 %v1725_v37, %v1724_v43  ;;  %v1687_v22 = vrot.slane %v1636_v48, 4 }
 0x1fb   : > { %1771 = vadd.xlane.f32.xlu1 %v1754_v59  ;;  %v1674_v46 = vadd.f32 %v1673_v6, %v1672_v30  ;;  %v1650_v7 = vmul.f32 %v2432_v47, %v1493_v44  ;;  %v1762_v51 = vmul.f32 %v1716_v42, %v3377_v52  ;;  %v1680_v40 = vadd.f32 %v1679_v45, %v1678_v3 }
 0x1fc   : > { %v1683_v34 = vrot.slane %v1682_v55, 2  ;;  %v1721_v20 = vrot.slane %v1720_v0, 1  ;;  %v1688_v63 = vadd.f32 %v1687_v22, %v1636_v48  ;;  %v2434_v31 = vpop.eup %2433  ;;  %v1727_v29 = vrot.slane %v1726_v58, 1 }
 0x1fd   : > { %1785 = vadd.xlane.f32.xlu0 %v1761_v57  ;;  %v1729_v60 = vrot.slane %v1650_v7, 4  ;;  %v1755_v9 = vmul.f32 %v1674_v46, %v3461_v36  ;;  %v1494_v59 = vsel %vm2956_vm3, %v3053_v1, 0.0  ;;  %v1756_v42 = vmul.f32 %v1680_v40, %v3469_v33 }
 0x1fe   : > { %v1684_v25 = vadd.f32 %v1683_v34, %v1682_v55  ;;  %v1689_v43 = vrot.slane %v1688_v63, 2  ;;  %v1722_v18 = vadd.f32 %v1721_v20, %v1720_v0  ;;  %v1652_v52 = vmul.f32 %v2434_v31, %v1494_v59 }
 0x1ff   : > { %1787 = vadd.xlane.f32.xlu1 %v1762_v51  ;;  %v1730_v2 = vadd.f32 %v1729_v60, %v1650_v7  ;;  %v1728_v30 = vadd.f32 %v1727_v29, %v1726_v58  ;;  %vm846_vm6 = vcmp.eq.s32.totalorder %v2947_v49, %v3122_v38  ;;  %vm839_vm7 = vcmp.eq.s32.totalorder %v2947_v49, %v3101_v23 }
 0x200   : > { %v1685_v37 = vrot.slane %v1684_v25, 1  ;;  %v1690_v44 = vadd.f32 %v1689_v43, %v1688_v63  ;;  %v1735_v35 = vrot.slane %v1652_v52, 4  ;;  %v1763_v36 = vmul.f32 %v1722_v18, %v3486_v50  ;;  %v3537_v63 = vpop.permute.xlu0 %1982 }
 0x201   : > { %1773 = vadd.xlane.f32.xlu0 %v1755_v9  ;;  %v1731_v3 = vrot.slane %v1730_v2, 2  ;;  %v1764_v0 = vmul.f32 %v1728_v30, %v3492_v32  ;;  %4778 = vst [vmem:[#allocation54_spill] sm:$0xff] %v3537_v63  ;;  %v3539_v32 = vpop.permute.xlu1 %1987  ;;  %vm847_vm8 = vcmp.eq.s32.totalorder %v2947_v49, %v3124_v39  ;;  %vm840_vm9 = vcmp.eq.s32.totalorder %v2947_v49, %v3106_v28  ;;  %v4780_v39 = vld [vmem:[#allocation16_spill] sm:$0xff] }
 0x202   : > { %v1691_v47 = vrot.slane %v1690_v44, 1  ;;  %v1686_v6 = vadd.f32 %v1685_v37, %v1684_v25  ;;  %v1736_v45 = vadd.f32 %v1735_v35, %v1652_v52  ;;  %4779 = vst [vmem:[#allocation55_spill] sm:$0xff] %v3539_v32  ;;  %vm848_vm10 = vcmp.eq.s32.totalorder %v2947_v49, %v4780_v39 }
 0x203   : > { %1775 = vadd.xlane.f32.xlu1 %v1756_v42  ;;  %v1732_v55 = vadd.f32 %v1731_v3, %v1730_v2  ;;  %vm531_vm11 = vcmp.ge.s32.totalorder %v2947_v49, 22  ;;  %vm532_vm12 = vcmp.lt.s32.totalorder %v2947_v49, 38 }
 0x204   : > { %v1692_v22 = vadd.f32 %v1691_v47, %v1690_v44  ;;  %v1737_v57 = vrot.slane %v1736_v45, 2  ;;  %v1757_v46 = vmul.f32 %v1686_v6, %v3511_v27 }
 0x205   : > { %1789 = vadd.xlane.f32.xlu0 %v1763_v36  ;;  %v1733_v60 = vrot.slane %v1732_v55, 1 }
 0x206   : > { %v1738_v58 = vadd.f32 %v1737_v57, %v1736_v45  ;;  %v1758_v34 = vmul.f32 %v1692_v22, %v1636_v48 }
 0x207   : > { %1791 = vadd.xlane.f32.xlu1 %v1764_v0  ;;  %v1734_v33 = vadd.f32 %v1733_v60, %v1732_v55 }
 0x208   : > { %v1739_v51 = vrot.slane %v1738_v58, 1 }
 0x209   : > { %1777 = vadd.xlane.f32.xlu0 %v1757_v46  ;;  %v1765_v20 = vmul.f32 %v1734_v33, %v1650_v7 }
 0x20a   : > { %v1740_v50 = vadd.f32 %v1739_v51, %v1738_v58  ;;  %v1487_v58 = vsel %vm2956_vm3, %v3073_v10, 0.0 }
 0x20b   : > { %1779 = vadd.xlane.f32.xlu1 %v1758_v34 }
 0x20c   : > { %v1766_v25 = vmul.f32 %v1740_v50, %v1652_v52  ;;  %v1488_v50 = vsel %vm2956_vm3, %v3082_v14, 0.0 }
 0x20d   : > { %1793 = vadd.xlane.f32.xlu0 %v1765_v20 }
 0x20f   : > { %1795 = vadd.xlane.f32.xlu1 %v1766_v25 }
 0x216   : > { %v1462_v31 = vpop.xlane.xlu0 %1461 }
 0x217   : > { %2435 = vrsqrt.f32 %v1462_v31  ;;  %vm1541_vm13 = vcmp.eq.f32.partialorder %v1462_v31, inf  ;;  %v1544_v7 = vand.u32 2147483648, %v1462_v31  ;;  %vm1543_vm14 = vcmp.eq.f32.partialorder %v1462_v31, 0.0 }
 0x21a   : > { %v1464_v40 = vpop.xlane.xlu1 %1463  ;;  %v1478_v29 = vpop.xlane.xlu0 %1477 }
 0x21b   : > { %2437 = vrsqrt.f32 %v1464_v40  ;;  %vm1548_vm15 = vcmp.eq.f32.partialorder %v1464_v40, inf  ;;  %vm1550_vm0 = vcmp.eq.f32.partialorder %v1464_v40, 0.0  ;;  %v1551_v44 = vand.u32 2147483648, %v1464_v40 }
 0x21c   : > { %2439 = vrsqrt.f32 %v1478_v29  ;;  %vm1597_vm1 = vcmp.eq.f32.partialorder %v1478_v29, inf  ;;  %v1600_v3 = vand.u32 2147483648, %v1478_v29  ;;  %vm1599_vm2 = vcmp.eq.f32.partialorder %v1478_v29, 0.0 }
 0x21e   : > { %v1480_v27 = vpop.xlane.xlu1 %1479 }
 0x21f   : > { %2441 = vrsqrt.f32 %v1480_v27  ;;  %vm1604_vm4 = vcmp.eq.f32.partialorder %v1480_v27, inf  ;;  %v1607_v22 = vand.u32 2147483648, %v1480_v27  ;;  %vm1606_vm5 = vcmp.eq.f32.partialorder %v1480_v27, 0.0 }
 0x221   : > { %v2436_v48 = vpop.eup %2435 }
 0x222   : > { %v1540_v9 = vmul.f32 %v2436_v48, %v1462_v31 }
 0x224   : > { %v1542_v43 = vsel %vm1541_vm13, %v1462_v31, %v1540_v9  ;;  %vm3607_vm13 = vmand %vm531_vm11, %vm532_vm12  ;;  %vm1850_vm12 = vcmp.eq.s32.totalorder %v2947_v49, 1 }
 0x225   : > { %v2438_v59 = vpop.eup %2437  ;;  %v1545_v18 = vsel %vm1543_vm14, %v1544_v7, %v1542_v43 }
 0x226   : > { %v2440_v37 = vpop.eup %2439  ;;  %v1615_v2 = vmax.f32 %v1545_v18, 1e-12  ;;  %v1547_v52 = vmul.f32 %v2438_v59, %v1464_v40  ;;  %v1496_v59 = vsel %vm2956_vm3, %v3093_v19, 0.0 }
 0x227   : > { %v1596_v42 = vmul.f32 %v2440_v37, %v1478_v29 }
 0x228   : > { %2443 = vrcp.f32 %v1615_v2  ;;  %v1549_v30 = vsel %vm1548_vm15, %v1464_v40, %v1547_v52 }
 0x229   : > { %v2442_v35 = vpop.eup %2441  ;;  %v1552_v47 = vsel %vm1550_vm0, %v1551_v44, %v1549_v30  ;;  %v1598_v36 = vsel %vm1597_vm1, %v1478_v29, %v1596_v42  ;;  %v1495_v29 = vsel %vm2956_vm3, %v3085_v15, 0.0  ;;  %vm838_vm3 = vcmp.eq.s32.totalorder %v2947_v49, %v3120_v21 }
 0x22a   : > { %v1616_v6 = vmax.f32 %v1552_v47, 1e-12  ;;  %v1601_v55 = vsel %vm1599_vm2, %v1600_v3, %v1598_v36  ;;  %v1603_v45 = vmul.f32 %v2442_v35, %v1480_v27 }
 0x22b   : > { %v1623_v0 = vmax.f32 %v1601_v55, 1e-12 }
 0x22c   : > { %2445 = vrcp.f32 %v1616_v6  ;;  %v1605_v60 = vsel %vm1604_vm4, %v1480_v27, %v1603_v45 }
 0x22d   : > { %2447 = vrcp.f32 %v1623_v0  ;;  %v1608_v57 = vsel %vm1606_vm5, %v1607_v22, %v1605_v60 }
 0x22e   : > { %v1624_v46 = vmax.f32 %v1608_v57, 1e-12 }
 0x230   : > { %2449 = vrcp.f32 %v1624_v46 }
 0x232   : > { %v2444_v33 = vpop.eup %2443 }
 0x233   : > { %v1638_v34 = vmul.f32 %v2444_v33, %v1487_v58 }
 0x235   : > { %v1693_v51 = vrot.slane %v1638_v34, 4 }
 0x236   : > { %v2446_v20 = vpop.eup %2445 }
 0x237   : > { %v2448_v25 = vpop.eup %2447  ;;  %v1694_v31 = vadd.f32 %v1693_v51, %v1638_v34  ;;  %v1640_v40 = vmul.f32 %v2446_v20, %v1488_v50 }
 0x238   : > { %v1654_v27 = vmul.f32 %v2448_v25, %v1495_v29 }
 0x239   : > { %v1695_v48 = vrot.slane %v1694_v31, 2  ;;  %v1699_v9 = vrot.slane %v1640_v40, 4 }
 0x23a   : > { %v2450_v7 = vpop.eup %2449  ;;  %v1741_v43 = vrot.slane %v1654_v27, 4 }
 0x23b   : > { %v1696_v18 = vadd.f32 %v1695_v48, %v1694_v31  ;;  %v1700_v37 = vadd.f32 %v1699_v9, %v1640_v40  ;;  %v1656_v2 = vmul.f32 %v2450_v7, %v1496_v59 }
 0x23c   : > { %v1742_v52 = vadd.f32 %v1741_v43, %v1654_v27 }
 0x23d   : > { %v1697_v44 = vrot.slane %v1696_v18, 1  ;;  %v1701_v42 = vrot.slane %v1700_v37, 2  ;;  %v1747_v30 = vrot.slane %v1656_v2, 4 }
 0x23e   : > { %v1743_v3 = vrot.slane %v1742_v52, 2 }
 0x23f   : > { %v1698_v35 = vadd.f32 %v1697_v44, %v1696_v18  ;;  %v1702_v47 = vadd.f32 %v1701_v42, %v1700_v37  ;;  %v1748_v36 = vadd.f32 %v1747_v30, %v1656_v2 }
 0x240   : > { %v1744_v6 = vadd.f32 %v1743_v3, %v1742_v52 }
 0x241   : > { %v1759_v55 = vmul.f32 %v1698_v35, %v1638_v34  ;;  %v1703_v45 = vrot.slane %v1702_v47, 1  ;;  %v1749_v0 = vrot.slane %v1748_v36, 2 }
 0x242   : > { %v1745_v22 = vrot.slane %v1744_v6, 1 }
 0x243   : > { %1781 = vadd.xlane.f32.xlu0 %v1759_v55  ;;  %v1704_v60 = vadd.f32 %v1703_v45, %v1702_v47  ;;  %v1750_v53 = vadd.f32 %v1749_v0, %v1748_v36 }
 0x244   : > { %v1746_v57 = vadd.f32 %v1745_v22, %v1744_v6 }
 0x245   : > { %v1760_v46 = vmul.f32 %v1704_v60, %v1640_v40  ;;  %v1751_v33 = vrot.slane %v1750_v53, 1 }
 0x246   : > { %v1767_v58 = vmul.f32 %v1746_v57, %v1654_v27 }
 0x247   : > { %1783 = vadd.xlane.f32.xlu1 %v1760_v46  ;;  %v1752_v51 = vadd.f32 %v1751_v33, %v1750_v53 }
 0x248   : > { %1797 = vadd.xlane.f32.xlu0 %v1767_v58 }
 0x249   : > { %v1768_v20 = vmul.f32 %v1752_v51, %v1656_v2 }
 0x24b   : > { %1799 = vadd.xlane.f32.xlu1 %v1768_v20  ;;  %v647_v50 = vpop.xlane.xlu0 %646 }
 0x24c   : > { %2451 = vlog2.f32 %v647_v50 }
 0x24f   : > { %v663_v25 = vpop.xlane.xlu0 %662 }
 0x250   : > { %2453 = vlog2.f32 %v663_v25 }
 0x251   : > { %2455 = vrcp.f32 %v647_v50 }
 0x252   : > { %2457 = vrcp.f32 %v663_v25 }
 0x256   : > { %v2452_v34 = vpop.eup %2451 }
 0x257   : > { %v679_v31 = vmul.f32 0.6931472, %v2452_v34 }
 0x259   : > { %v710_v29 = vadd.f32 %v679_v31, %v3172_v8 }
 0x25a   : > { %v2454_v48 = vpop.eup %2453 }
 0x25b   : > { %v651_v9 = vpop.xlane.xlu0 %650  ;;  %v726_v40 = vsub.f32 %v2961_v54, %v710_v29  ;;  %v695_v27 = vmul.f32 0.6931472, %v2454_v48  ;;  %v2456_v18 = vpop.eup %2455 }
 0x25c   : > { %2459 = vlog2.f32 %v651_v9  ;;  %v649_v7 = vpop.xlane.xlu1 %648  ;;  %v3562_v21 = vmul.f32 %v2456_v18, %v3196_v24  ;;  %v2458_v44 = vpop.eup %2457 }
 0x25d   : > { %v854_v43 = vsel %vm838_vm3, %v726_v40, 0.0  ;;  %2461 = vlog2.f32 %v649_v7  ;;  %v718_v59 = vadd.f32 %v695_v27, %v3178_v12  ;;  %v3566_v35 = vmul.f32 %v2458_v44, %v3213_v4  ;;  %v4781_v27 = vld [vmem:[#allocation31_spill] sm:$0xff] }
 0x25e   : > { %870 = vadd.xlane.f32.xlu1 %v854_v43  ;;  %v1353_v30 = vmul.f32 %v3562_v21, %v726_v40 }
 0x25f   : > { %v667_v37 = vpop.xlane.xlu0 %666  ;;  %v734_v8 = vsub.f32 %v2964_v56, %v718_v59  ;;  %v4782_v59 = vld [vmem:[#allocation38_spill] sm:$0xff] }
 0x260   : > { %v665_v2 = vpop.xlane.xlu1 %664  ;;  %2463 = vlog2.f32 %v667_v37 }
 0x261   : > { %2465 = vlog2.f32 %v665_v2  ;;  %v862_v52 = vsel %vm846_vm6, %v734_v8, 0.0  ;;  %v1361_v24 = vmul.f32 %v3566_v35, %v734_v8 }
 0x262   : > { %886 = vadd.xlane.f32.xlu0 %v862_v52 }
 0x264   : > { %v653_v42 = vpop.xlane.xlu1 %652 }
 0x265   : > { %2467 = vlog2.f32 %v653_v42 }
 0x266   : > { %v2460_v12 = vpop.eup %2459  ;;  %2469 = vrcp.f32 %v649_v7  ;;  %1369 = vadd.xlane.f32.xlu0 %v1353_v30  ;;  %v4784_v30 = vld [vmem:[#allocation6_spill] sm:$0xff] }
 0x267   : > { %v683_v3 = vmul.f32 0.6931472, %v2460_v12  ;;  %v2462_v47 = vpop.eup %2461  ;;  %2471 = vrcp.f32 %v651_v9 }
 0x268   : > { %v681_v38 = vmul.f32 0.6931472, %v2462_v47  ;;  %2473 = vrcp.f32 %v665_v2  ;;  %v669_v36 = vpop.xlane.xlu1 %668 }
 0x269   : > { %2475 = vlog2.f32 %v669_v36  ;;  %v712_v6 = vadd.f32 %v683_v3, %v3190_v5  ;;  %v4785_v3 = vld [vmem:[#allocation32_spill] sm:$0xff] }
 0x26a   : > { %v2464_v55 = vpop.eup %2463  ;;  %1385 = vadd.xlane.f32.xlu0 %v1361_v24  ;;  %v711_v45 = vadd.f32 %v681_v38, %v3192_v41  ;;  %2477 = vrcp.f32 %v667_v37  ;;  %v4783_v37 = vld [vmem:[#allocation34_spill] sm:$0xff]  ;;  %v4786_v38 = vld [vmem:[#allocation37_spill] sm:$0xff] }
 0x26b   : > { %v2466_v0 = vpop.eup %2465  ;;  %v699_v22 = vmul.f32 0.6931472, %v2464_v55  ;;  %v728_v57 = vsub.f32 %v2994_v16, %v712_v6  ;;  %v4787_v55 = vmov 0 }
 0x26c   : > { %v697_v60 = vmul.f32 0.6931472, %v2466_v0  ;;  %v727_v4 = vsub.f32 %v2973_v62, %v711_v45  ;;  %v655_v53 = vpop.xlane.xlu0 %654  ;;  %v4788_v55 = vsel %vm3607_vm13, 4294967295, %v4787_v55 }
 0x26d   : > { %2479 = vlog2.f32 %v655_v53  ;;  %v720_v58 = vadd.f32 %v699_v22, %v3205_v13  ;;  %v856_v31 = vsel %vm840_vm9, %v728_v57, 0.0  ;;  %4789 = vst [vmem:[#allocation16_spill] sm:$0xff] %v4788_v55  ;;  %v4791_v22 = vld [vmem:[#allocation11_spill] sm:$0xff] }
 0x26e   : > { %v855_v46 = vsel %vm839_vm7, %v727_v4, 0.0  ;;  %v719_v5 = vadd.f32 %v697_v60, %v3176_v11  ;;  %vm841_vm14 = vcmp.eq.s32.totalorder %v2947_v49, %v4791_v22 }
 0x26f   : > { %v657_v33 = vpop.xlane.xlu1 %656  ;;  %v2468_v41 = vpop.eup %2467  ;;  %872 = vadd.xlane.f32.xlu0 %v855_v46  ;;  %v736_v29 = vsub.f32 %v3004_v26, %v720_v58  ;;  %v4793_v46 = vld [vmem:[#allocation9_spill] sm:$0xff] }
 0x270   : > { %v2470_v51 = vpop.eup %2469  ;;  %v735_v20 = vsub.f32 %v2970_v61, %v719_v5  ;;  %v685_v25 = vmul.f32 0.6931472, %v2468_v41  ;;  %2481 = vrcp.f32 %v657_v33  ;;  %v671_v23 = vpop.xlane.xlu0 %670 }
 0x271   : > { %v2472_v50 = vpop.eup %2471  ;;  %2483 = vlog2.f32 %v671_v23  ;;  %v3584_v9 = vmul.f32 %v2470_v51, %v3267_v17  ;;  %v864_v43 = vsel %vm848_vm10, %v736_v29, 0.0  ;;  %v4794_v51 = vld [vmem:[#allocation7_spill] sm:$0xff] }
 0x272   : > { %v2474_v34 = vpop.eup %2473  ;;  %v863_v11 = vsel %vm847_vm8, %v735_v20, 0.0  ;;  %2485 = vrcp.f32 %v671_v23  ;;  %v713_v7 = vadd.f32 %v685_v25, %v4781_v27  ;;  %v3594_v8 = vmul.f32 %v2472_v50, %v4783_v37  ;;  %v4795_v23 = vld [vmem:[#allocation8_spill] sm:$0xff]  ;;  %v4800_v27 = vld [vmem:[#allocation17_spill] sm:$0xff] }
 0x273   : > { %v2476_v48 = vpop.eup %2475  ;;  %888 = vadd.xlane.f32.xlu1 %v863_v11  ;;  %874 = vadd.xlane.f32.xlu0 %v856_v31  ;;  %2487 = vlog2.f32 %v657_v33  ;;  %v1354_v28 = vmul.f32 %v3584_v9, %v727_v4  ;;  %v3591_v18 = vmul.f32 %v2474_v34, %v4782_v59  ;;  %v2053_v33 = vsel %vm3607_vm13, %v4793_v46, 0.0  ;;  %v4796_v11 = vld [vmem:[#allocation47_spill] sm:$0xff] }
 0x274   : > { %v673_v13 = vpop.xlane.xlu1 %672  ;;  %v701_v40 = vmul.f32 0.6931472, %v2476_v48  ;;  %v2478_v17 = vpop.eup %2477  ;;  %v1355_v44 = vmul.f32 %v3594_v8, %v728_v57  ;;  %v729_v12 = vsub.f32 %v4784_v30, %v713_v7  ;;  %v4798_v48 = vld [vmem:[#allocation36_spill] sm:$0xff]  ;;  %vm849_vm0 = vcmp.eq.s32.totalorder %v2947_v49, %v4800_v27  ;;  %v4811_v27 = vld [vmem:[#allocation50_spill] sm:$0xff] }
 0x275   : > { %2489 = vrcp.f32 %v673_v13  ;;  %v1362_v52 = vmul.f32 %v3591_v18, %v735_v20  ;;  %v3603_v24 = vmul.f32 %v2478_v17, %v4786_v38  ;;  %vm1833_vm8 = vcmp.eq.s32.totalorder %v2947_v49, 0 }
 0x276   : > { %2491 = vrcp.f32 %v653_v42  ;;  %v721_v47 = vadd.f32 %v701_v40, %v4785_v3  ;;  %v857_v41 = vsel %vm841_vm14, %v729_v12, 0.0 }
 0x277   : > { %1371 = vadd.xlane.f32.xlu1 %v1354_v28  ;;  %890 = vadd.xlane.f32.xlu0 %v864_v43  ;;  %v2480_v2 = vpop.eup %2479  ;;  %2493 = vrcp.f32 %v669_v36  ;;  %v4790_v36 = vld [vmem:[#allocation33_spill] sm:$0xff]  ;;  %v1363_v4 = vmul.f32 %v3603_v24, %v736_v29  ;;  %v4799_v28 = vld [vmem:[#allocation12_spill] sm:$0xff] }
 0x278   : > { %v687_v42 = vmul.f32 0.6931472, %v2480_v2  ;;  %2495 = vlog2.f32 %v673_v13  ;;  %v737_v20 = vsub.f32 %v4794_v51, %v721_v47  ;;  %vm842_vm15 = vcmp.eq.s32.totalorder %v2947_v49, %v4799_v28  ;;  %v4801_v43 = vld [vmem:[#allocation49_spill] sm:$0xff]  ;;  %v4802_v2 = vld [vmem:[#allocation10_spill] sm:$0xff] }
 0x279   : > { %2497 = vrcp.f32 %v655_v53  ;;  %v4792_v53 = vld [vmem:[#allocation46_spill] sm:$0xff] }
 0x27a   : > { %v2482_v6 = vpop.eup %2481  ;;  %v714_v45 = vadd.f32 %v687_v42, %v4790_v36  ;;  %v865_v17 = vsel %vm849_vm0, %v737_v20, 0.0  ;;  %v4804_v36 = vld [vmem:[#allocation40_spill] sm:$0xff]  ;;  %vm1884_vm0 = vcmp.eq.s32.totalorder %v2947_v49, 19 }
 0x27b   : > { %1387 = vadd.xlane.f32.xlu1 %v1362_v52  ;;  %1373 = vadd.xlane.f32.xlu0 %v1355_v44  ;;  %v2484_v0 = vpop.eup %2483  ;;  %v3616_v57 = vmul.f32 %v2482_v6, %v4792_v53  ;;  %v2060_v52 = vsel %vm3607_vm13, %v4802_v2, 0.0 }
 0x27c   : > { %v2486_v5 = vpop.eup %2485  ;;  %v703_v58 = vmul.f32 0.6931472, %v2484_v0  ;;  %v730_v34 = vsub.f32 %v4795_v23, %v714_v45  ;;  %v2061_v0 = vsel %vm3607_vm13, %v3053_v1, 0.0 }
 0x27d   : > { %v659_v60 = vpop.xlane.xlu0 %658  ;;  %v2488_v50 = vpop.eup %2487  ;;  %v767_v31 = vmul.f32 %v2486_v5, %v4796_v11  ;;  %v3625_v13 = vadd.f32 %v2053_v33, %v3616_v57  ;;  %v4808_v11 = vld [vmem:[#allocation41_spill] sm:$0xff] }
 0x27e   : > { %2499 = vlog2.f32 %v659_v60  ;;  %v722_v39 = vadd.f32 %v703_v58, %v4798_v48  ;;  %v689_v37 = vmul.f32 0.6931472, %v2488_v50  ;;  %v858_v42 = vsel %vm842_vm15, %v730_v34, 0.0  ;;  %v4807_v58 = vld [vmem:[#allocation35_spill] sm:$0xff] }
 0x27f   : > { %2501 = vrcp.f32 %v659_v60  ;;  %v661_v25 = vpop.xlane.xlu1 %660  ;;  %4797 = vst [vmem:[#allocation31_spill] sm:$0xff] %v3625_v13  ;;  %v2490_v29 = vpop.eup %2489  ;;  %876 = vadd.xlane.f32.xlu1 %v857_v41  ;;  %1389 = vadd.xlane.f32.xlu0 %v1363_v4  ;;  %v3639_v38 = vadd.f32 %v2060_v52, %v767_v31  ;;  %v4806_v4 = vld [vmem:[#allocation18_spill] sm:$0xff]  ;;  %v4810_v48 = vld [vmem:[#allocation43_spill] sm:$0xff]  ;;  %vm1867_vm15 = vcmp.eq.s32.totalorder %v2947_v49, 2 }
 0x280   : > { %v2492_v40 = vpop.eup %2491  ;;  %2503 = vrcp.f32 %v661_v25  ;;  %v3633_v59 = vmul.f32 %v2490_v29, %v4801_v43  ;;  %v738_v47 = vsub.f32 %v4802_v2, %v722_v39  ;;  %vm850_vm1 = vcmp.eq.s32.totalorder %v2947_v49, %v4806_v4  ;;  %v4813_v52 = vld [vmem:[#allocation42_spill] sm:$0xff] }
 0x281   : > { %v675_v7 = vpop.xlane.xlu0 %674  ;;  %v2494_v44 = vpop.eup %2493  ;;  %4803 = vst [vmem:[#allocation38_spill] sm:$0xff] %v3639_v38  ;;  %v3642_v45 = vmul.f32 %v2492_v40, %v4804_v36  ;;  %v715_v41 = vadd.f32 %v689_v37, %v4807_v58 }
 0x282   : > { %2505 = vlog2.f32 %v675_v7  ;;  %v2496_v6 = vpop.eup %2495  ;;  %v3648_v60 = vadd.f32 %v2061_v0, %v3633_v59  ;;  %v866_v5 = vsel %vm850_vm1, %v738_v47, 0.0  ;;  %v3655_v29 = vmul.f32 %v2494_v44, %v4808_v11 }
 0x283   : > { %2507 = vrcp.f32 %v675_v7  ;;  %v677_v3 = vpop.xlane.xlu1 %676  ;;  %892 = vadd.xlane.f32.xlu1 %v865_v17  ;;  %878 = vadd.xlane.f32.xlu0 %v858_v42  ;;  %v2498_v22 = vpop.eup %2497  ;;  %v1356_v53 = vmul.f32 %v3642_v45, %v729_v12  ;;  %v705_v33 = vmul.f32 0.6931472, %v2496_v6  ;;  %v731_v37 = vsub.f32 %v4793_v46, %v715_v41  ;;  %v4812_v17 = vld [vmem:[#allocation39_spill] sm:$0xff] }
 0x284   : > { %2509 = vrcp.f32 %v677_v3  ;;  %4805 = vst [vmem:[#allocation34_spill] sm:$0xff] %v3648_v60  ;;  %4809 = vst [vmem:[#allocation6_spill] sm:$0xff] %v3655_v29  ;;  %v3658_v39 = vmul.f32 %v2498_v22, %v4810_v48  ;;  %v2054_v42 = vsel %vm3607_vm13, %v3073_v10, 0.0  ;;  %v2055_v46 = vsel %vm3607_vm13, %v3082_v14, 0.0  ;;  %v4816_v22 = vld [vmem:[#allocation13_spill] sm:$0xff] }
 0x285   : > { %2511 = vlog2.f32 %v661_v25  ;;  %v1364_v25 = vmul.f32 %v3655_v29, %v737_v20  ;;  %v723_v2 = vadd.f32 %v705_v33, %v4812_v17  ;;  %vm843_vm2 = vcmp.eq.s32.totalorder %v2947_v49, %v4816_v22  ;;  %v4819_v48 = vld [vmem:[#allocation45_spill] sm:$0xff] }
 0x286   : > { %2513 = vlog2.f32 %v677_v3  ;;  %v1357_v12 = vmul.f32 %v3658_v39, %v730_v34  ;;  %v4815_v34 = vld [vmem:[#allocation51_spill] sm:$0xff]  ;;  %v1365_v4 = vmul.f32 %v767_v31, %v738_v47  ;;  %v859_v41 = vsel %vm843_vm2, %v731_v37, 0.0 }
 0x287   : > { %1375 = vadd.xlane.f32.xlu1 %v1356_v53  ;;  %894 = vadd.xlane.f32.xlu0 %v866_v5  ;;  %v4817_v53 = vld [vmem:[#allocation52_spill] sm:$0xff]  ;;  %v2063_v31 = vsel %vm3607_vm13, %v3093_v19, 0.0  ;;  %v2062_v47 = vsel %vm3607_vm13, %v3085_v15, 0.0  ;;  %vm1901_vm1 = vcmp.eq.s32.totalorder %v2947_v49, 20  ;;  %vm1918_vm2 = vcmp.eq.s32.totalorder %v2947_v49, 21 }
 0x288   : > { %v2500_v50 = vpop.eup %2499 }
 0x289   : > { %v2502_v40 = vpop.eup %2501  ;;  %v691_v28 = vmul.f32 0.6931472, %v2500_v50  ;;  %v739_v50 = vsub.f32 %v3053_v1, %v723_v2  ;;  %v4822_v1 = vld [vmem:[#allocation19_spill] sm:$0xff] }
 0x28a   : > { %v3663_v7 = vmul.f32 %v2502_v40, %v4811_v27  ;;  %v2504_v43 = vpop.eup %2503  ;;  %v4821_v27 = vld [vmem:[#allocation14_spill] sm:$0xff]  ;;  %vm851_vm5 = vcmp.eq.s32.totalorder %v2947_v49, %v4822_v1 }
 0x28b   : > { %v716_v44 = vadd.f32 %v691_v28, %v4813_v52  ;;  %1391 = vadd.xlane.f32.xlu1 %v1364_v25  ;;  %1377 = vadd.xlane.f32.xlu0 %v1357_v12  ;;  %v3675_v3 = vmul.f32 %v2504_v43, %v4815_v34  ;;  %v4820_v25 = vld [vmem:[#allocation53_spill] sm:$0xff]  ;;  %vm844_vm4 = vcmp.eq.s32.totalorder %v2947_v49, %v4821_v27  ;;  %v867_v2 = vsel %vm851_vm5, %v739_v50, 0.0 }
 0x28c   : > { %v2506_v6 = vpop.eup %2505  ;;  %v3672_v20 = vadd.f32 %v2054_v42, %v3663_v7  ;;  %v1358_v34 = vmul.f32 %v3616_v57, %v731_v37  ;;  %v4829_v37 = vld [vmem:[#allocation21_spill] sm:$0xff] }
 0x28d   : > { %v2508_v36 = vpop.eup %2507  ;;  %v707_v0 = vmul.f32 0.6931472, %v2506_v6  ;;  %v3684_v5 = vadd.f32 %v2055_v46, %v3675_v3  ;;  %v732_v11 = vsub.f32 %v3073_v10, %v716_v44  ;;  %v4825_v6 = vld [vmem:[#allocation20_spill] sm:$0xff]  ;;  %vm853_vm7 = vcmp.eq.s32.totalorder %v2947_v49, %v4829_v37 }
 0x28e   : > { %4814 = vst [vmem:[#allocation32_spill] sm:$0xff] %v3672_v20  ;;  %v771_v33 = vmul.f32 %v2508_v36, %v4817_v53  ;;  %v2510_v58 = vpop.eup %2509  ;;  %vm852_vm3 = vcmp.eq.s32.totalorder %v2947_v49, %v4825_v6  ;;  %v4826_v46 = vld [vmem:[#allocation44_spill] sm:$0xff] }
 0x28f   : > { %4818 = vst [vmem:[#allocation37_spill] sm:$0xff] %v3684_v5  ;;  %v724_v40 = vadd.f32 %v707_v0, %v4819_v48  ;;  %v2512_v28 = vpop.eup %2511  ;;  %880 = vadd.xlane.f32.xlu1 %v859_v41  ;;  %1393 = vadd.xlane.f32.xlu0 %v1365_v4  ;;  %v773_v12 = vmul.f32 %v2510_v58, %v4820_v25  ;;  %v860_v52 = vsel %vm844_vm4, %v732_v11, 0.0  ;;  %v4827_v53 = vld [vmem:[#allocation48_spill] sm:$0xff]  ;;  %v4828_v41 = vld [vmem:[#allocation15_spill] sm:$0xff]  ;;  %vm2031_vm4 = vcmp.eq.s32.totalorder %v2947_v49, 38 }
 0x290   : > { %v3702_v43 = vadd.f32 %v2062_v47, %v771_v33  ;;  %v693_v17 = vmul.f32 0.6931472, %v2512_v28  ;;  %v2514_v42 = vpop.eup %2513  ;;  %v1366_v4 = vmul.f32 %v3633_v59, %v739_v50  ;;  %vm845_vm6 = vcmp.eq.s32.totalorder %v2947_v49, %v4828_v41  ;;  %v2579_v28 = vld [vmem:[%s2789_s18 + $0x58] sm:$0xff]  ;;  %v2580_v59 = vld [vmem:[%s2789_s18 + $0x60] sm:$0xff]  ;;  %v3719_v50 = vpop.xlane.xlu1 %1771 }
 0x291   : > { %v3700_v10 = vadd.f32 %v2063_v31, %v773_v12  ;;  %v740_v44 = vsub.f32 %v3085_v15, %v724_v40  ;;  %v709_v36 = vmul.f32 0.6931472, %v2514_v42  ;;  %v1930_v25 = vcvt.s32.f32 %v2579_v28  ;;  %v3721_v31 = vpop.xlane.xlu0 %1769 }
 0x292   : > { %4824 = vst [vmem:[#allocation11_spill] sm:$0xff] %v3702_v43  ;;  %v717_v22 = vadd.f32 %v693_v17, %v4826_v46  ;;  %v1359_v1 = vmul.f32 %v3663_v7, %v732_v11 }
 0x293   : > { %4823 = vst [vmem:[#allocation33_spill] sm:$0xff] %v3700_v10  ;;  %896 = vadd.xlane.f32.xlu1 %v867_v2  ;;  %882 = vadd.xlane.f32.xlu0 %v860_v52  ;;  %v868_v0 = vsel %vm852_vm3, %v740_v44, 0.0  ;;  %v725_v58 = vadd.f32 %v709_v36, %v4827_v53  ;;  %v1367_v17 = vmul.f32 %v771_v33, %v740_v44  ;;  %v2581_v44 = vld [vmem:[%s2789_s18 + $0x68] sm:$0xff] }
 0x294   : > { %v733_v15 = vsub.f32 %v3082_v14, %v717_v22  ;;  %v1931_v14 = vcvt.s32.f32 %v2580_v59  ;;  %v3723_v47 = vpop.xlane.xlu1 %1787  ;;  %v1932_v46 = vcvt.s32.f32 %v2581_v44 }
 0x295   : > { %v741_v57 = vsub.f32 %v3093_v19, %v725_v58  ;;  %v3725_v27 = vpop.xlane.xlu0 %1785 }
 0x296   : > { %v861_v48 = vsel %vm845_vm6, %v733_v15, 0.0 }
 0x297   : > { %1379 = vadd.xlane.f32.xlu1 %v1358_v34  ;;  %898 = vadd.xlane.f32.xlu0 %v868_v0  ;;  %v869_v40 = vsel %vm853_vm7, %v741_v57, 0.0  ;;  %v1360_v34 = vmul.f32 %v3675_v3, %v733_v15  ;;  %v1368_v36 = vmul.f32 %v773_v12, %v741_v57  ;;  %v2583_v3 = vld [vmem:[%s2789_s18 + $0x70] sm:$0xff] }
 0x298   : > { %v3727_v19 = vpop.xlane.xlu1 %1775  ;;  %v1933_v12 = vcvt.s32.f32 %v2583_v3 }
 0x299   : > { %v3730_v2 = vpop.xlane.xlu0 %1773  ;;  %v2230_v20 = vadd.f32 -1.0, %v3727_v19 }
 0x29a   : > { %v2229_v43 = vadd.f32 -1.0, %v3730_v2 }
 0x29b   : > { %1395 = vadd.xlane.f32.xlu1 %v1366_v4  ;;  %v2582_v4 = vld [vmem:[%s2789_s18 + $0x78] sm:$0xff]  ;;  %s235_s18 = sand.u32 1, %s2638_s21  }
 0x29c   : > { %v3732_v52 = vpop.xlane.xlu1 %1791  ;;  %v1934_v53 = vcvt.s32.f32 %v2582_v4  ;;  %s2204_s19 = sshll.u32 %s235_s18, 7  ;;  %s4631_s4 = scalar_lea.sflag [#allocation4], %s235_s18 }
 0x29d   : > { %4830 = vst [vmem:[#allocation46_spill] sm:$0xff] %v3732_v52  ;;  %v3734_v42 = vpop.xlane.xlu0 %1789  ;;  %s4093_s24 = scalar_lea.vmem [#allocation3], %s2204_s19 }
 0x29e   : > { %s2126_s26 = sshll.u32 %s4093_s24, 4  ;;  %s4625_s26 = int_to_ptr.vmem [resolvable:$true] %s2126_s26 }
 0x29f   : > { %884 = vadd.xlane.f32.xlu1 %v861_v48  ;;  %s2584_s9 = scalar_lea.vmem %s4625_s26, 2048  ;;  %p2591_p0 = scmp.lt.s32.totalorder %s4625_s26, %s2589_s11 }
 0x2a0   : > { %v3736_v6 = vpop.xlane.xlu1 %1779  ;;  %p2585_p11 = scmp.ne.s32.totalorder %s4625_s26, %s2584_s9  ;;  %p2592_p1 = scmp.lt.s32.totalorder %s2590_s13, %s2584_s9 }
 0x2a1   : > { %4831 = vst [vmem:[#allocation9_spill] sm:$0xff] %v3736_v6  ;;  %v3739_v0 = vpop.xlane.xlu0 %1777 }
 0x2a2   : > { %4832 = vst [vmem:[#allocation8_spill] sm:$0xff] %v3739_v0  ;;  %p2586_p12 = pnand %p2585_p11, %p2724_p5  ;;  %p2593_p2 = por %p2592_p1, %p2591_p0 }
 0x2a3   : > { %900 = vadd.xlane.f32.xlu1 %v869_v40 }
 0x2a4   : > { %v3741_v7 = vpop.xlane.xlu1 %1795  ;;  %p2587_p13 = pneg %p2586_p12 }
 0x2a5   : > { %4833 = vst [vmem:[#allocation47_spill] sm:$0xff] %v3741_v7  ;;  %v3745_v11 = vpop.xlane.xlu0 %1793 }
 0x2a6   : > { %4835 = vst [vmem:[#allocation12_spill] sm:$0xff] %v3745_v11  ;;  %v3879_v11 = vmul.f32 0.125, %v2229_v43  ;;  %p2594_p3 = pnand %p2593_p2, %p2587_p13 }
 0x2a8   : > { %4845 = vst [vmem:[#allocation39_spill] sm:$0xff] %v3879_v11 }
 0x2ad   : > { %1992 = vperm.xlu0 %2353, %v1930_v25  }
 0x2b4   : > { %1997 = vperm.xlu1 %2354, %v1931_v14  }
 0x2cc   : > { %1381 = vadd.xlane.f32.xlu0 %v1359_v1 }
 0x2d0   : > { %1397 = vadd.xlane.f32.xlu0 %v1367_v17  ;;  %v3748_v22 = vpop.xlane.xlu0 %1781 }
 0x2d1   : > { %4836 = vst [vmem:[#allocation17_spill] sm:$0xff] %v3748_v22 }
 0x2d4   : > { %v3743_v33 = vpop.xlane.xlu1 %1783 }
 0x2d5   : > { %4834 = vst [vmem:[#allocation36_spill] sm:$0xff] %v3743_v33  ;;  %v3754_v41 = vpop.xlane.xlu0 %1797 }
 0x2d6   : > { %4838 = vst [vmem:[#allocation10_spill] sm:$0xff] %v3754_v41 }
 0x2d8   : > { %1383 = vadd.xlane.f32.xlu1 %v1360_v34  ;;  %v3751_v58 = vpop.xlane.xlu1 %1799 }
 0x2d9   : > { %4837 = vst [vmem:[#allocation49_spill] sm:$0xff] %v3751_v58  ;;  %v2236_v58 = vadd.f32 -1.0, %v3723_v47  ;;  %v2237_v47 = vadd.f32 -1.0, %v3734_v42 }
 0x2db   : > { %v3873_v19 = vmul.f32 0.125, %v2236_v58 }
 0x2dc   : > { %1399 = vadd.xlane.f32.xlu1 %v1368_v36 }
 0x2dd   : > { %4844 = vst [vmem:[#allocation50_spill] sm:$0xff] %v3873_v19 }
 0x2e6   : > { %2002 = vperm.xlu0 %2353, %v1932_v46  }
 0x2ea   : > { %2012 = vperm.xlu0 %2353, %v1934_v53  }
 0x2eb   : > { %v871_v15 = vpop.xlane.xlu1 %870 }
 0x2ec   : > { %v3756_v48 = vsub.f32 0.0, %v871_v15  ;;  %v2056_v15 = vsel %vm3607_vm13, %v2964_v56, 0.0  ;;  %v2058_v56 = vsel %vm3607_vm13, %v3004_v26, 0.0 }
 0x2ed   : > { %2007 = vperm.xlu1 %2354, %v1933_v12   ;;  %v2048_v12 = vsel %vm3607_vm13, %v2961_v54, 0.0  ;;  %v2050_v54 = vsel %vm3607_vm13, %v2994_v16, 0.0  ;;  %v3805_v16 = vadd.f32 %v2056_v15, %v3566_v35  ;;  %v2227_v35 = vadd.f32 -1.0, %v3721_v31 }
 0x2ee   : > { %v935_v57 = vrot.slane %v3756_v48, 4 }
 0x2ef   : > { %v887_v40 = vpop.xlane.xlu0 %886 }
 0x2f0   : > { %v936_v37 = vadd.f32 %v935_v57, %v3756_v48  ;;  %v3760_v28 = vsub.f32 0.0, %v887_v40  ;;  %v2057_v40 = vsel %vm3607_vm13, %v2970_v61, 0.0  ;;  %v3802_v61 = vadd.f32 %v2048_v12, %v3562_v21 }
 0x2f2   : > { %v937_v25 = vrot.slane %v936_v37, 2  ;;  %v983_v59 = vrot.slane %v3760_v28, 4 }
 0x2f3   : > { %v3763_v1 = vpop.xlane.xlu0 %1369 }
 0x2f4   : > { %v938_v14 = vadd.f32 %v937_v25, %v936_v37  ;;  %v984_v17 = vadd.f32 %v983_v59, %v3760_v28  ;;  %v2049_v37 = vsel %vm3607_vm13, %v2973_v62, 0.0 }
 0x2f6   : > { %v939_v34 = vrot.slane %v938_v14, 1  ;;  %v985_v36 = vrot.slane %v984_v17, 2 }
 0x2f7   : > { %v3766_v46 = vpop.xlane.xlu0 %1385 }
 0x2f8   : > { %v940_v44 = vadd.f32 %v939_v34, %v938_v14  ;;  %v986_v4 = vadd.f32 %v985_v36, %v984_v17  ;;  %v2051_v14 = vsel %vm3607_vm13, %v4784_v30, 0.0  ;;  %v2052_v34 = vsel %vm3607_vm13, %v4795_v23, 0.0 }
 0x2f9   : > { %v3813_v36 = vadd.f32 %v2049_v37, %v3584_v9  ;;  %v3816_v30 = vadd.f32 %v2050_v54, %v3594_v8  ;;  %v3837_v31 = vadd.f32 %v2051_v14, %v3642_v45 }
 0x2fa   : > { %v3768_v53 = vmul.f32 0.125, %v940_v44  ;;  %v987_v3 = vrot.slane %v986_v4, 1 }
 0x2fb   : > { %4839 = vst [vmem:[#allocation40_spill] sm:$0xff] %v3816_v30  ;;  %4842 = vst [vmem:[#allocation41_spill] sm:$0xff] %v3837_v31 }
 0x2fc   : > { %v3780_v57 = vsub.f32 %v3756_v48, %v3768_v53  ;;  %v988_v25 = vadd.f32 %v987_v3, %v986_v4  ;;  %v873_v59 = vpop.xlane.xlu0 %872  ;;  %v3820_v4 = vadd.f32 %v2057_v40, %v3591_v18  ;;  %v2228_v3 = vadd.f32 -1.0, %v3719_v50 }
 0x2fd   : > { %v3799_v17 = vsub.f32 0.0, %v873_v59  ;;  %v3834_v18 = vadd.f32 %v2058_v56, %v3603_v24  ;;  %v3840_v50 = vstv %s3770_s27 }
 0x2fe   : > { %v1064_v62 = vmul.f32 %v3780_v57, %v3780_v57  ;;  %v3810_v26 = vmul.f32 0.125, %v988_v25  ;;  %4840 = vst [vmem:[#allocation18_spill] sm:$0xff] %v3820_v4  ;;  %v3845_v25 = vadd.f32 %v2052_v34, %v3658_v39 }
 0x2ff   : > { %v941_v21 = vrot.slane %v3799_v17, 4  ;;  %4841 = vst [vmem:[#allocation35_spill] sm:$0xff] %v3834_v18 }
 0x300   : > { %v1080_v44 = vrot.slane %v1064_v62, 4  ;;  %v3826_v23 = vsub.f32 %v3760_v28, %v3810_v26  ;;  %v889_v9 = vpop.xlane.xlu1 %888  ;;  %v875_v12 = vpop.xlane.xlu0 %874  ;;  %4843 = vst [vmem:[#allocation43_spill] sm:$0xff] %v3845_v25 }
 0x301   : > { %v942_v8 = vadd.f32 %v941_v21, %v3799_v17  ;;  %v3829_v37 = vsub.f32 0.0, %v889_v9  ;;  %v3831_v54 = vsub.f32 0.0, %v875_v12  ;;  %v3848_v21 = vmul.f32 0.125, %v2227_v35 }
 0x302   : > { %v1081_v15 = vadd.f32 %v1080_v44, %v1064_v62  ;;  %v1072_v40 = vmul.f32 %v3826_v23, %v3826_v23  ;;  %v3850_v9 = vmul.f32 0.125, %v2228_v3  ;;  %v2235_v12 = vadd.f32 -1.0, %v3725_v27 }
 0x303   : > { %v943_v62 = vrot.slane %v942_v8, 2  ;;  %v989_v44 = vrot.slane %v3829_v37, 4  ;;  %v947_v45 = vrot.slane %v3831_v54, 4 }
 0x304   : > { %v1082_v59 = vrot.slane %v1081_v15, 2  ;;  %v1128_v24 = vrot.slane %v1072_v40, 4  ;;  %v3854_v56 = vpop.xlane.xlu1 %1371  ;;  %v891_v14 = vpop.xlane.xlu0 %890 }
 0x305   : > { %v944_v34 = vadd.f32 %v943_v62, %v942_v8  ;;  %v990_v10 = vadd.f32 %v989_v44, %v3829_v37  ;;  %v948_v3 = vadd.f32 %v947_v45, %v3831_v54  ;;  %v3860_v5 = vsub.f32 0.0, %v891_v14 }
 0x306   : > { %v1083_v39 = vadd.f32 %v1082_v59, %v1081_v15  ;;  %v1129_v35 = vadd.f32 %v1128_v24, %v1072_v40  ;;  %v3870_v24 = vmul.f32 0.125, %v2235_v12 }
 0x307   : > { %v945_v41 = vrot.slane %v944_v34, 1  ;;  %v991_v60 = vrot.slane %v990_v10, 2  ;;  %v949_v27 = vrot.slane %v948_v3, 2  ;;  %v995_v15 = vrot.slane %v3860_v5, 4 }
 0x308   : > { %v1084_v33 = vrot.slane %v1083_v39, 1  ;;  %v1130_v7 = vrot.slane %v1129_v35, 2  ;;  %v3865_v8 = vpop.xlane.xlu1 %1387  ;;  %v3867_v59 = vpop.xlane.xlu0 %1373 }
 0x309   : > { %v946_v62 = vadd.f32 %v945_v41, %v944_v34  ;;  %v992_v44 = vadd.f32 %v991_v60, %v990_v10  ;;  %v950_v45 = vadd.f32 %v949_v27, %v948_v3  ;;  %v996_v14 = vadd.f32 %v995_v15, %v3860_v5 }
 0x30a   : > { %v1085_v40 = vadd.f32 %v1084_v33, %v1083_v39  ;;  %v1131_v2 = vadd.f32 %v1130_v7, %v1129_v35  ;;  %v3883_v10 = vmul.f32 0.125, %v2230_v20  ;;  %v3885_v7 = vmul.f32 0.125, %v2237_v47 }
 0x30b   : > { %v3877_v13 = vmul.f32 0.125, %v946_v62  ;;  %v993_v38 = vrot.slane %v992_v44, 1  ;;  %v951_v42 = vrot.slane %v950_v45, 1  ;;  %v997_v33 = vrot.slane %v996_v14, 2 }
 0x30c   : > { %v3875_v22 = vmul.f32 0.14285715, %v1085_v40  ;;  %v1132_v6 = vrot.slane %v1131_v2, 1  ;;  %v877_v41 = vpop.xlane.xlu1 %876  ;;  %v3881_v60 = vpop.xlane.xlu0 %1389  ;;  %4846 = vst [vmem:[#allocation42_spill] sm:$0xff] %v3883_v10  ;;  %4847 = vst [vmem:[#allocation51_spill] sm:$0xff] %v3885_v7  ;;  %v3899_v20 = vsel %vm1833_vm8, %v3756_v48, 0.0 }
 0x30d   : > { %v3892_v43 = vsub.f32 %v3799_v17, %v3877_v13  ;;  %v994_v39 = vadd.f32 %v993_v38, %v992_v44  ;;  %v952_v34 = vadd.f32 %v951_v42, %v950_v45  ;;  %v998_v3 = vadd.f32 %v997_v33, %v996_v14 }
 0x30e   : > { %2515 = vrsqrt.f32 %v3875_v22  ;;  %v1133_v12 = vadd.f32 %v1132_v6, %v1131_v2  ;;  %v3901_v27 = vsub.f32 0.0, %v877_v41  ;;  %v3914_v62 = vsel %vm1833_vm8, %v3760_v28, 0.0 }
 0x30f   : > { %v1065_v6 = vmul.f32 %v3892_v43, %v3892_v43  ;;  %v3907_v47 = vmul.f32 0.125, %v994_v39  ;;  %v3909_v38 = vmul.f32 0.125, %v952_v34  ;;  %v999_v44 = vrot.slane %v998_v3, 1 }
 0x310   : > { %v3903_v15 = vmul.f32 0.14285715, %v1133_v12  ;;  %v893_v40 = vpop.xlane.xlu1 %892  ;;  %v953_v2 = vrot.slane %v3901_v27, 4  ;;  %v879_v14 = vpop.xlane.xlu0 %878  ;;  %vm1195_vm9 = vcmp.eq.f32.partialorder %v3875_v22, inf  ;;  %vm1197_vm10 = vcmp.eq.f32.partialorder %v3875_v22, 0.0 }
 0x311   : > { %4848 = vst [vmem:[#allocation13_spill] sm:$0xff] %v3907_v47  ;;  %4849 = vst [vmem:[#allocation52_spill] sm:$0xff] %v3909_v38  ;;  %v3917_v45 = vsub.f32 0.0, %v893_v40  ;;  %v1086_v33 = vrot.slane %v1065_v6, 4  ;;  %v3926_v41 = vsub.f32 %v3829_v37, %v3907_v47  ;;  %v3930_v12 = vsub.f32 %v3831_v54, %v3909_v38 }
 0x312   : > { %2517 = vrsqrt.f32 %v3903_v15  ;;  %v1000_v39 = vadd.f32 %v999_v44, %v998_v3  ;;  %v1198_v34 = vand.u32 2147483648, %v3875_v22  ;;  %v954_v40 = vadd.f32 %v953_v2, %v3901_v27 }
 0x313   : > { %v1001_v35 = vrot.slane %v3917_v45, 4  ;;  %v3935_v58 = vsub.f32 0.0, %v879_v14  ;;  %v1087_v29 = vadd.f32 %v1086_v33, %v1065_v6  ;;  %v1073_v42 = vmul.f32 %v3926_v41, %v3926_v41 }
 0x314   : > { %v1066_v55 = vmul.f32 %v3930_v12, %v3930_v12  ;;  %v3941_v51 = vmul.f32 0.125, %v1000_v39  ;;  %vm1251_vm11 = vcmp.eq.f32.partialorder %v3903_v15, inf  ;;  %v955_v3 = vrot.slane %v954_v40, 2 }
 0x315   : > { %v1002_v44 = vadd.f32 %v1001_v35, %v3917_v45  ;;  %v959_v2 = vrot.slane %v3935_v58, 4  ;;  %vm1253_vm14 = vcmp.eq.f32.partialorder %v3903_v15, 0.0  ;;  %v1088_v6 = vrot.slane %v1087_v29, 2 }
 0x316   : > { %4850 = vst [vmem:[#allocation45_spill] sm:$0xff] %v3941_v51  ;;  %v1134_v14 = vrot.slane %v1073_v42, 4  ;;  %v1092_v33 = vrot.slane %v1066_v55, 4  ;;  %v3950_v52 = vsub.f32 %v3860_v5, %v3941_v51  ;;  %v956_v31 = vadd.f32 %v955_v3, %v954_v40 }
 0x317   : > { %v1003_v10 = vrot.slane %v1002_v44, 2  ;;  %v960_v35 = vadd.f32 %v959_v2, %v3935_v58  ;;  %v1089_v0 = vadd.f32 %v1088_v6, %v1087_v29  ;;  %v1254_v38 = vand.u32 2147483648, %v3903_v15 }
 0x318   : > { %v2516_v25 = vpop.eup %2515  ;;  %4851 = vst [vmem:[#allocation53_spill] sm:$0xff] %v3950_v52  ;;  %v1135_v18 = vadd.f32 %v1134_v14, %v1073_v42  ;;  %v1093_v32 = vadd.f32 %v1092_v33, %v1066_v55  ;;  %v1074_v7 = vmul.f32 %v3950_v52, %v3950_v52  ;;  %v957_v51 = vrot.slane %v956_v31, 1 }
 0x319   : > { %v1194_v39 = vmul.f32 %v2516_v25, %v3875_v22  ;;  %v961_v4 = vrot.slane %v960_v35, 2  ;;  %v1090_v40 = vrot.slane %v1089_v0, 1  ;;  %v1004_v14 = vadd.f32 %v1003_v10, %v1002_v44 }
 0x31a   : > { %v1136_v3 = vrot.slane %v1135_v18, 2  ;;  %v1094_v2 = vrot.slane %v1093_v32, 2  ;;  %v1140_v55 = vrot.slane %v1074_v7, 4  ;;  %v958_v6 = vadd.f32 %v957_v51, %v956_v31 }
 0x31b   : > { %v1196_v30 = vsel %vm1195_vm9, %v3875_v22, %v1194_v39  ;;  %v1091_v47 = vadd.f32 %v1090_v40, %v1089_v0  ;;  %v962_v19 = vadd.f32 %v961_v4, %v960_v35 }
 0x31c   : > { %v1199_v25 = vsel %vm1197_vm10, %v1198_v34, %v1196_v30  ;;  %v2518_v29 = vpop.eup %2517  ;;  %v1137_v52 = vadd.f32 %v1136_v3, %v1135_v18  ;;  %v1095_v39 = vadd.f32 %v1094_v2, %v1093_v32  ;;  %v1141_v11 = vadd.f32 %v1140_v55, %v1074_v7  ;;  %v895_v55 = vpop.xlane.xlu0 %894 }
 0x31d   : > { %v1305_v42 = vadd.f32 1e-05, %v1199_v25  ;;  %v1250_v33 = vmul.f32 %v2518_v29, %v3903_v15  ;;  %v3963_v63 = vmul.f32 0.125, %v958_v6  ;;  %v3968_v30 = vmul.f32 0.14285715, %v1091_v47 }
 0x31e   : > { %v1138_v34 = vrot.slane %v1137_v52, 1  ;;  %v1096_v25 = vrot.slane %v1095_v39, 1  ;;  %v1142_v0 = vrot.slane %v1141_v11, 2  ;;  %v963_v18 = vrot.slane %v962_v19, 1 }
 0x31f   : > { %2519 = vrcp.f32 %v1305_v42  ;;  %v1252_v22 = vsel %vm1251_vm11, %v3903_v15, %v1250_v33  ;;  %v3975_v32 = vsub.f32 %v3901_v27, %v3963_v63  ;;  %v4852_v7 = vsub.f32 %v3756_v48, %v3840_v50 }
 0x320   : > { %v1255_v51 = vsel %vm1253_vm14, %v1254_v38, %v1252_v22  ;;  %2521 = vrsqrt.f32 %v3968_v30  ;;  %v1139_v31 = vadd.f32 %v1138_v34, %v1137_v52  ;;  %v1097_v10 = vadd.f32 %v1096_v25, %v1095_v39 }
 0x321   : > { %v1313_v4 = vadd.f32 1e-05, %v1255_v51  ;;  %v1851_v15 = vsel %vm1850_vm12, %v4852_v7, %v3899_v20  ;;  %v1401_v47 = vsub.f32 0.0, %v3763_v1  ;;  %v1835_v38 = vsel %vm1833_vm8, %v3799_v17, 0.0  ;;  %v4048_v7 = vpop.xlane.xlu1 %1375 }
 0x322   : > { %v1143_v44 = vadd.f32 %v1142_v0, %v1141_v11  ;;  %v3991_v52 = vmul.f32 0.14285715, %v1139_v31  ;;  %v3993_v35 = vmul.f32 0.14285715, %v1097_v10  ;;  %v1067_v48 = vmul.f32 %v3975_v32, %v3975_v32 }
 0x323   : > { %2523 = vrcp.f32 %v1313_v4  ;;  %v4853_v1 = vsub.f32 %v3760_v28, %v3840_v50  ;;  %v1409_v11 = vsub.f32 0.0, %v3766_v46  ;;  %v964_v3 = vadd.f32 %v963_v18, %v962_v19 }
 0x324   : > { %v1144_v40 = vrot.slane %v1143_v44, 1  ;;  %v928_v2 = vsub.f32 %v3829_v37, %v3840_v50  ;;  %2525 = vrsqrt.f32 %v3991_v52  ;;  %v4854_v29 = vsub.f32 %v3799_v17, %v3840_v50 }
 0x325   : > { %v1859_v20 = vsel %vm1850_vm12, %v4853_v1, %v3914_v62  ;;  %v1005_v28 = vrot.slane %v1004_v14, 1  ;;  %v921_v62 = vsub.f32 %v3831_v54, %v3840_v50  ;;  %2527 = vrsqrt.f32 %v3993_v35 }
 0x326   : > { %v4013_v42 = vsel %vm1850_vm12, %v4854_v29, %v1835_v38  ;;  %v1145_v19 = vadd.f32 %v1144_v40, %v1143_v44  ;;  %v4021_v6 = vsel %vm1833_vm8, %v3829_v37, 0.0  ;;  %vm1202_vm5 = vcmp.eq.f32.partialorder %v3968_v30, inf }
 0x327   : > { %v4027_v17 = vsel %vm1833_vm8, %v3831_v54, 0.0  ;;  %v1098_v33 = vrot.slane %v1067_v48, 4  ;;  %v4029_v39 = vmul.f32 0.125, %v964_v3  ;;  %vm1204_vm3 = vcmp.eq.f32.partialorder %v3968_v30, 0.0 }
 0x328   : > { %v1205_v34 = vand.u32 2147483648, %v3968_v30  ;;  %v4033_v25 = vmul.f32 0.14285715, %v1145_v19  ;;  %v4035_v51 = vsub.f32 0.0, %v895_v55  ;;  %vm1258_vm6 = vcmp.eq.f32.partialorder %v3991_v52, inf }
 0x329   : > { %v2520_v22 = vpop.eup %2519  ;;  %v1099_v18 = vadd.f32 %v1098_v33, %v1067_v48  ;;  %v4042_v4 = vsub.f32 %v3935_v58, %v4029_v39  ;;  %v1006_v31 = vadd.f32 %v1005_v28, %v1004_v14  ;;  %vm1260_vm7 = vcmp.eq.f32.partialorder %v3991_v52, 0.0  ;;  %v4855_v33 = vld [vmem:[#allocation23_spill] sm:$0xff] }
 0x32a   : > { %v1322_v0 = vmul.f32 %v2520_v22, %v3780_v57  ;;  %2529 = vrsqrt.f32 %v4033_v25  ;;  %v1261_v10 = vand.u32 2147483648, %v3991_v52  ;;  %vm1209_vm9 = vcmp.eq.f32.partialorder %v3993_v35, inf  ;;  %v2522_v57 = vpop.eup %2521 }
 0x32b   : > { %vm1211_vm10 = vcmp.eq.f32.partialorder %v3993_v35, 0.0  ;;  %v1100_v44 = vrot.slane %v1099_v18, 2  ;;  %v1068_v14 = vmul.f32 %v4042_v4, %v4042_v4  ;;  %v1201_v1 = vmul.f32 %v2522_v57, %v3968_v30 }
 0x32c   : > { %v1868_v38 = vsel %vm1867_vm15, %v1322_v0, %v1851_v15  ;;  %v1212_v40 = vand.u32 2147483648, %v3993_v35  ;;  %v1007_v3 = vrot.slane %v4035_v51, 4  ;;  %v4065_v19 = vmul.f32 0.125, %v1006_v31 }
 0x32d   : > { %v1885_v48 = vsel %vm1884_vm0, %v1401_v47, %v1868_v38  ;;  %v2524_v29 = vpop.eup %2523  ;;  %v1101_v28 = vadd.f32 %v1100_v44, %v1099_v18  ;;  %v1104_v55 = vrot.slane %v1068_v14, 4  ;;  %v1203_v0 = vsel %vm1202_vm5, %v3968_v30, %v1201_v1 }
 0x32e   : > { %v1902_v15 = vsel %vm1901_vm1, %v3848_v21, %v1885_v48  ;;  %v1338_v47 = vmul.f32 %v2524_v29, %v3826_v23  ;;  %v1008_v57 = vadd.f32 %v1007_v3, %v4035_v51  ;;  %v2526_v38 = vpop.eup %2525  ;;  %v1206_v18 = vsel %vm1204_vm3, %v1205_v34, %v1203_v0  ;;  %v4084_v3 = vpop.xlane.xlu1 %1391 }
 0x32f   : > { %v2015_v22 = vsel %vm1918_vm2, %v4855_v33, %v1902_v15  ;;  %v1102_v31 = vrot.slane %v1101_v28, 1  ;;  %v1105_v44 = vadd.f32 %v1104_v55, %v1068_v14  ;;  %v2528_v48 = vpop.eup %2527  ;;  %v1306_v29 = vadd.f32 1e-05, %v1206_v18  ;;  %v4091_v55 = vpop.xlane.xlu0 %1377 }
 0x330   : > { %v2032_v21 = vsel %vm2031_vm4, %v3768_v53, %v2015_v22  ;;  %v1876_v23 = vsel %vm1867_vm15, %v1338_v47, %v1859_v20  ;;  %v1257_v1 = vmul.f32 %v2526_v38, %v3991_v52  ;;  %v1208_v30 = vmul.f32 %v2528_v48, %v3993_v35 }
 0x331   : > { %v2080_v15 = vadd.f32 %v3802_v61, %v2032_v21  ;;  %v1893_v53 = vsel %vm1884_vm0, %v1409_v11, %v1876_v23  ;;  %v1103_v34 = vadd.f32 %v1102_v31, %v1101_v28  ;;  %v1106_v14 = vrot.slane %v1105_v44, 2  ;;  %v4856_v11 = vld [vmem:[#allocation30_spill] sm:$0xff] }
 0x332   : > { %v1910_v61 = vsel %vm1901_vm1, %v3870_v24, %v1893_v53  ;;  %2531 = vrcp.f32 %v1306_v29  ;;  %v1259_v46 = vsel %vm1258_vm6, %v3991_v52, %v1257_v1  ;;  %v1009_v20 = vrot.slane %v1008_v57, 2  ;;  %v881_v23 = vpop.xlane.xlu1 %880 }
 0x333   : > { %2096 = vst [vmem:[%s4093_s24] sm:$0xff] %v2080_v15  ;;  %v2023_v28 = vsel %vm1918_vm2, %v4856_v11, %v1910_v61  ;;  %v1262_v33 = vsel %vm1260_vm7, %v1261_v10, %v1259_v46  ;;  %v1210_v22 = vsel %vm1209_vm9, %v3993_v35, %v1208_v30  ;;  %v4110_v47 = vmul.f32 0.14285715, %v1103_v34 }
 0x334   : > { %v2530_v24 = vpop.eup %2529  ;;  %v2040_v0 = vsel %vm2031_vm4, %v3810_v26, %v2023_v28  ;;  %v1314_v38 = vadd.f32 1e-05, %v1262_v33  ;;  %v1213_v21 = vsel %vm1211_vm10, %v1212_v40, %v1210_v22  ;;  %v1107_v18 = vadd.f32 %v1106_v14, %v1105_v44 }
 0x335   : > { %v2088_v52 = vadd.f32 %v3805_v16, %v2040_v0  ;;  %v1307_v10 = vadd.f32 1e-05, %v1213_v21  ;;  %2533 = vrsqrt.f32 %v4110_v47  ;;  %v1264_v31 = vmul.f32 %v2530_v24, %v4033_v25  ;;  %v4125_v16 = vpop.xlane.xlu0 %1393 }
 0x336   : > { %2535 = vrcp.f32 %v1314_v38  ;;  %vm1265_vm11 = vcmp.eq.f32.partialorder %v4033_v25, inf  ;;  %v1268_v48 = vand.u32 2147483648, %v4033_v25  ;;  %v1108_v15 = vrot.slane %v1107_v18, 1  ;;  %v897_v28 = vpop.xlane.xlu1 %896 }
 0x337   : > { %2104 = vst [vmem:[%s4093_s24 + $0x40] sm:$0xff] %v2088_v52  ;;  %2537 = vrcp.f32 %v1307_v10  ;;  %v1266_v26 = vsel %vm1265_vm11, %v4033_v25, %v1264_v31  ;;  %vm1267_vm14 = vcmp.eq.f32.partialorder %v4033_v25, 0.0  ;;  %v1010_v35 = vadd.f32 %v1009_v20, %v1008_v57 }
 0x338   : > { %v929_v40 = vsub.f32 %v3860_v5, %v3840_v50  ;;  %v1269_v44 = vsel %vm1267_vm14, %v1268_v48, %v1266_v26  ;;  %v1109_v29 = vadd.f32 %v1108_v15, %v1107_v18  ;;  %v4131_v1 = vsub.f32 %v3917_v45, %v4065_v19 }
 0x339   : > { %v1402_v53 = vsub.f32 0.0, %v3854_v56  ;;  %v1315_v30 = vadd.f32 1e-05, %v1269_v44  ;;  %v1844_v34 = vsel %vm1833_vm8, %v3860_v5, 0.0  ;;  %v1011_v25 = vrot.slane %v1010_v35, 1 }
 0x33a   : > { %v1860_v57 = vsel %vm1850_vm12, %v928_v2, %v4021_v6  ;;  %v4143_v14 = vmul.f32 0.14285715, %v1109_v29  ;;  %v1075_v61 = vmul.f32 %v4131_v1, %v4131_v1  ;;  %v4147_v46 = vsub.f32 0.0, %v881_v23 }
 0x33b   : > { %v1410_v56 = vsub.f32 0.0, %v3865_v8  ;;  %v1853_v5 = vsel %vm1850_vm12, %v921_v62, %v4027_v17  ;;  %2539 = vrcp.f32 %v1315_v30  ;;  %v1012_v37 = vadd.f32 %v1011_v25, %v1010_v35  ;;  %v883_v62 = vpop.xlane.xlu0 %882  ;;  %v4857_v35 = vld [vmem:[#allocation22_spill] sm:$0xff] }
 0x33c   : > { %v2532_v20 = vpop.eup %2531  ;;  %v1403_v2 = vsub.f32 0.0, %v3867_v59  ;;  %v1861_v6 = vsel %vm1850_vm12, %v929_v40, %v1844_v34  ;;  %2541 = vrsqrt.f32 %v4143_v14  ;;  %v1146_v11 = vrot.slane %v1075_v61, 4 }
 0x33d   : > { %v1324_v8 = vmul.f32 %v2532_v20, %v3892_v43  ;;  %v1411_v33 = vsub.f32 0.0, %v3881_v60  ;;  %vm1216_vm5 = vcmp.eq.f32.partialorder %v4110_v47, inf  ;;  %v965_v54 = vrot.slane %v4147_v46, 4 }
 0x33e   : > { %vm1218_vm3 = vcmp.eq.f32.partialorder %v4110_v47, 0.0  ;;  %v1219_v59 = vand.u32 2147483648, %v4110_v47  ;;  %v1147_v17 = vadd.f32 %v1146_v11, %v1075_v61  ;;  %v4166_v22 = vmul.f32 0.125, %v1012_v37  ;;  %v4858_v11 = vld [vmem:[#allocation50_spill] sm:$0xff] }
 0x33f   : > { %v2534_v24 = vpop.eup %2533  ;;  %v1869_v0 = vsel %vm1867_vm15, %v1324_v8, %v4013_v42  ;;  %v1226_v43 = vand.u32 2147483648, %v4143_v14  ;;  %v966_v60 = vadd.f32 %v965_v54, %v4147_v46  ;;  %v4173_v38 = vsub.f32 0.0, %v897_v28  ;;  %v4860_v54 = vld [vmem:[#allocation39_spill] sm:$0xff] }
 0x340   : > { %v2536_v21 = vpop.eup %2535  ;;  %v1886_v18 = vsel %vm1884_vm0, %v1402_v53, %v1869_v0  ;;  %v1215_v52 = vmul.f32 %v2534_v24, %v4110_v47  ;;  %v1148_v10 = vrot.slane %v1147_v17, 2  ;;  %vm1223_vm6 = vcmp.eq.f32.partialorder %v4143_v14, inf  ;;  %v4863_v24 = vld [vmem:[#allocation24_spill] sm:$0xff] }
 0x341   : > { %v4179_v31 = vsub.f32 0.0, %v883_v62  ;;  %v2538_v48 = vpop.eup %2537  ;;  %v1903_v42 = vsel %vm1901_vm1, %v3850_v9, %v1886_v18  ;;  %v1340_v15 = vmul.f32 %v2536_v21, %v3926_v41  ;;  %vm1225_vm7 = vcmp.eq.f32.partialorder %v4143_v14, 0.0  ;;  %v4861_v62 = vld [vmem:[#allocation53_spill] sm:$0xff]  ;;  %v4229_v18 = vpop.xlane.xlu1 %1379 }
 0x342   : > { %v967_v23 = vrot.slane %v966_v60, 2  ;;  %v4188_v26 = vsub.f32 %v4035_v51, %v4166_v22  ;;  %v2016_v40 = vsel %vm1918_vm2, %v4857_v35, %v1903_v42  ;;  %v1326_v44 = vmul.f32 %v2538_v48, %v3930_v12  ;;  %v4865_v48 = vld [vmem:[#allocation52_spill] sm:$0xff] }
 0x343   : > { %v1217_v29 = vsel %vm1216_vm5, %v4110_v47, %v1215_v52  ;;  %v1149_v9 = vadd.f32 %v1148_v10, %v1147_v17  ;;  %v2033_v41 = vsel %vm2031_vm4, %v3877_v13, %v2016_v40  ;;  %v1877_v53 = vsel %vm1867_vm15, %v1340_v15, %v1860_v57  ;;  %v4862_v17 = vld [vmem:[#allocation13_spill] sm:$0xff]  ;;  %v4864_v52 = vld [vmem:[#allocation18_spill] sm:$0xff]  ;;  %v4866_v35 = vld [vmem:[#allocation40_spill] sm:$0xff] }
 0x344   : > { %v1220_v30 = vsel %vm1218_vm3, %v1219_v59, %v1217_v29  ;;  %v968_v34 = vadd.f32 %v967_v23, %v966_v60  ;;  %v2081_v25 = vadd.f32 %v3813_v36, %v2033_v41  ;;  %v1894_v12 = vsel %vm1884_vm0, %v1410_v56, %v1877_v53  ;;  %v4859_v36 = vld [vmem:[#allocation54_spill] sm:$0xff]  ;;  %v4867_v41 = vld [vmem:[#allocation51_spill] sm:$0xff] }
 0x345   : > { %v1870_v61 = vsel %vm1867_vm15, %v1326_v44, %v1853_v5  ;;  %v1308_v37 = vadd.f32 1e-05, %v1220_v30  ;;  %v2540_v20 = vpop.eup %2539  ;;  %v1911_v13 = vsel %vm1901_vm1, %v4858_v11, %v1894_v12  ;;  %v1150_v47 = vrot.slane %v1149_v9, 1 }
 0x346   : > { %v1887_v57 = vsel %vm1884_vm0, %v1403_v2, %v1870_v61  ;;  %v969_v28 = vrot.slane %v968_v34, 1  ;;  %v2542_v8 = vpop.eup %2541  ;;  %2097 = vst [vmem:[%s4093_s24 + $0x8] sm:$0xff] %v2081_v25  ;;  %v2024_v56 = vsel %vm1918_vm2, %v4859_v36, %v1911_v13  ;;  %v1342_v59 = vmul.f32 %v2540_v20, %v4861_v62  ;;  %v4868_v25 = vld [vmem:[#allocation55_spill] sm:$0xff]  ;;  %v899_v13 = vpop.xlane.xlu0 %898 }
 0x347   : > { %v1904_v5 = vsel %vm1901_vm1, %v4860_v54, %v1887_v57  ;;  %2543 = vrcp.f32 %v1308_v37  ;;  %v2041_v2 = vsel %vm2031_vm4, %v4862_v17, %v2024_v56  ;;  %v1151_v60 = vadd.f32 %v1150_v47, %v1149_v9  ;;  %v4870_v57 = vld [vmem:[#allocation35_spill] sm:$0xff]  ;;  %v4279_v56 = vpop.xlane.xlu1 %1395  ;;  %v4871_v54 = vld [vmem:[#allocation8_spill] sm:$0xff] }
 0x348   : > { %v2017_v0 = vsel %vm1918_vm2, %v4863_v24, %v1904_v5  ;;  %v1222_v21 = vmul.f32 %v2542_v8, %v4143_v14  ;;  %v2089_v10 = vadd.f32 %v4864_v52, %v2041_v2  ;;  %v1878_v15 = vsel %vm1867_vm15, %v1342_v59, %v1861_v6 }
 0x349   : > { %v2034_v42 = vsel %vm2031_vm4, %v4865_v48, %v2017_v0  ;;  %v970_v23 = vadd.f32 %v969_v28, %v968_v34  ;;  %v1895_v44 = vsel %vm1884_vm0, %v1411_v33, %v1878_v15  ;;  %v4240_v29 = vmul.f32 0.14285715, %v1151_v60 }
 0x34a   : > { %v2082_v40 = vadd.f32 %v4866_v35, %v2034_v42  ;;  %v1224_v9 = vsel %vm1223_vm6, %v4143_v14, %v1222_v21  ;;  %2105 = vst [vmem:[%s4093_s24 + $0x48] sm:$0xff] %v2089_v10  ;;  %v1912_v53 = vsel %vm1901_vm1, %v4867_v41, %v1895_v44  ;;  %v1076_v34 = vmul.f32 %v4188_v26, %v4188_v26  ;;  %v4869_v14 = vld [vmem:[#allocation45_spill] sm:$0xff] }
 0x34b   : > { %v1227_v6 = vsel %vm1225_vm7, %v1226_v43, %v1224_v9  ;;  %v4251_v30 = vmul.f32 0.125, %v970_v23  ;;  %v922_v33 = vsub.f32 %v3901_v27, %v3840_v50  ;;  %v2025_v12 = vsel %vm1918_vm2, %v4868_v25, %v1912_v53  ;;  %v885_v41 = vpop.xlane.xlu1 %884 }
 0x34c   : > { %2098 = vst [vmem:[%s4093_s24 + $0x10] sm:$0xff] %v2082_v40  ;;  %v923_v61 = vsub.f32 %v3935_v58, %v3840_v50  ;;  %2545 = vrsqrt.f32 %v4240_v29  ;;  %v2042_v43 = vsel %vm2031_vm4, %v4869_v14, %v2025_v12  ;;  %v1837_v37 = vsel %vm1833_vm8, %v3901_v27, 0.0 }
 0x34d   : > { %v1309_v20 = vadd.f32 1e-05, %v1227_v6  ;;  %v4272_v11 = vsub.f32 %v4147_v46, %v4251_v30  ;;  %v2090_v47 = vadd.f32 %v4870_v57, %v2042_v43  ;;  %v1838_v28 = vsel %vm1833_vm8, %v3935_v58, 0.0  ;;  %v4873_v43 = vld [vmem:[#allocation25_spill] sm:$0xff] }
 0x34e   : > { %v1152_v8 = vrot.slane %v1076_v34, 4  ;;  %v1013_v36 = vrot.slane %v4173_v38, 4  ;;  %v2231_v5 = vadd.f32 -1.0, %v4871_v54  ;;  %v971_v62 = vrot.slane %v4179_v31, 4 }
 0x34f   : > { %2547 = vrcp.f32 %v1309_v20  ;;  %v1069_v27 = vmul.f32 %v4272_v11, %v4272_v11  ;;  %2106 = vst [vmem:[%s4093_s24 + $0x50] sm:$0xff] %v2090_v47  ;;  %v1404_v59 = vsub.f32 0.0, %v4048_v7  ;;  %v4288_v58 = vsub.f32 0.0, %v899_v13 }
 0x350   : > { %v1153_v17 = vadd.f32 %v1152_v8, %v1076_v34  ;;  %v1014_v2 = vadd.f32 %v1013_v36, %v4173_v38  ;;  %v1854_v0 = vsel %vm1850_vm12, %v922_v33, %v1837_v37  ;;  %v1855_v60 = vsel %vm1850_vm12, %v923_v61, %v1838_v28  ;;  %v4872_v33 = vld [vmem:[#allocation42_spill] sm:$0xff] }
 0x351   : > { %v2544_v24 = vpop.eup %2543  ;;  %v1110_v21 = vrot.slane %v1069_v27, 4  ;;  %v972_v52 = vadd.f32 %v971_v62, %v4179_v31  ;;  %v1405_v48 = vsub.f32 0.0, %v4091_v55  ;;  %vm1272_vm9 = vcmp.eq.f32.partialorder %v4240_v29, inf }
 0x352   : > { %v1328_v10 = vmul.f32 %v2544_v24, %v3975_v32  ;;  %v1154_v7 = vrot.slane %v1153_v17, 2  ;;  %v1015_v42 = vrot.slane %v1014_v2, 2  ;;  %v1019_v35 = vrot.slane %v4288_v58, 4 }
 0x353   : > { %v1111_v15 = vadd.f32 %v1110_v21, %v1069_v27  ;;  %v973_v23 = vrot.slane %v972_v52, 2  ;;  %vm1274_vm10 = vcmp.eq.f32.partialorder %v4240_v29, 0.0  ;;  %v1275_v12 = vand.u32 2147483648, %v4240_v29  ;;  %v4874_v27 = vld [vmem:[#allocation41_spill] sm:$0xff] }
 0x354   : > { %v1871_v40 = vsel %vm1867_vm15, %v1328_v10, %v1854_v0  ;;  %v1155_v44 = vadd.f32 %v1154_v7, %v1153_v17  ;;  %v1016_v9 = vadd.f32 %v1015_v42, %v1014_v2  ;;  %v1020_v6 = vadd.f32 %v1019_v35, %v4288_v58 }
 0x355   : > { %v1888_v32 = vsel %vm1884_vm0, %v1404_v59, %v1871_v40  ;;  %v1112_v55 = vrot.slane %v1111_v15, 2  ;;  %v974_v53 = vadd.f32 %v973_v23, %v972_v52  ;;  %v901_v52 = vpop.xlane.xlu1 %900  ;;  %v1821_v23 = vmul.f32 0.125, %v2231_v5 }
 0x356   : > { %v2546_v34 = vpop.eup %2545  ;;  %v1905_v25 = vsel %vm1901_vm1, %v4872_v33, %v1888_v32  ;;  %v1156_v61 = vrot.slane %v1155_v44, 1  ;;  %v1017_v14 = vrot.slane %v1016_v9, 1  ;;  %v1021_v8 = vrot.slane %v1020_v6, 2 }
 0x357   : > { %v2018_v37 = vsel %vm1918_vm2, %v4873_v43, %v1905_v25  ;;  %v1271_v20 = vmul.f32 %v2546_v34, %v4240_v29  ;;  %v1113_v13 = vadd.f32 %v1112_v55, %v1111_v15  ;;  %v975_v57 = vrot.slane %v974_v53, 1  ;;  %v4876_v55 = vld [vmem:[#allocation26_spill] sm:$0xff] }
 0x358   : > { %v2035_v47 = vsel %vm2031_vm4, %v3963_v63, %v2018_v37  ;;  %v1157_v28 = vadd.f32 %v1156_v61, %v1155_v44  ;;  %v1018_v36 = vadd.f32 %v1017_v14, %v1016_v9  ;;  %v1022_v63 = vadd.f32 %v1021_v8, %v1020_v6  ;;  %v4875_v9 = vld [vmem:[#allocation46_spill] sm:$0xff]  ;;  %v4877_v61 = vld [vmem:[#allocation43_spill] sm:$0xff] }
 0x359   : > { %v2548_v54 = vpop.eup %2547  ;;  %v2083_v62 = vadd.f32 %v4874_v27, %v2035_v47  ;;  %v1273_v59 = vsel %vm1272_vm9, %v4240_v29, %v1271_v20  ;;  %v1114_v17 = vrot.slane %v1113_v13, 1  ;;  %v976_v2 = vadd.f32 %v975_v57, %v974_v53  ;;  %v4878_v37 = vld [vmem:[#allocation7_spill] sm:$0xff] }
 0x35a   : > { %v1276_v24 = vsel %vm1274_vm10, %v1275_v12, %v1273_v59  ;;  %v1330_v0 = vmul.f32 %v2548_v54, %v4042_v4  ;;  %v4323_v21 = vmul.f32 0.14285715, %v1157_v28  ;;  %v4328_v15 = vmul.f32 0.125, %v1018_v36 }
 0x35b   : > { %2099 = vst [vmem:[%s4093_s24 + $0x18] sm:$0xff] %v2083_v62  ;;  %v1316_v10 = vadd.f32 1e-05, %v1276_v24  ;;  %v1115_v7 = vadd.f32 %v1114_v17, %v1113_v13  ;;  %v4326_v42 = vmul.f32 0.125, %v976_v2  ;;  %v4333_v29 = vsub.f32 0.0, %v885_v41 }
 0x35c   : > { %v1872_v35 = vsel %vm1867_vm15, %v1330_v0, %v1855_v60  ;;  %2549 = vrsqrt.f32 %v4323_v21  ;;  %v4339_v44 = vsub.f32 0.0, %v901_v52  ;;  %v2238_v32 = vadd.f32 -1.0, %v4875_v9 }
 0x35d   : > { %2551 = vrcp.f32 %v1316_v10  ;;  %v1889_v4 = vsel %vm1884_vm0, %v1405_v48, %v1872_v35  ;;  %v4337_v40 = vmul.f32 0.14285715, %v1115_v7  ;;  %v4346_v60 = vsub.f32 %v4179_v31, %v4326_v42 }
 0x35e   : > { %v1906_v5 = vsel %vm1901_vm1, %v1821_v23, %v1889_v4  ;;  %v4350_v41 = vsub.f32 %v4173_v38, %v4328_v15  ;;  %v930_v48 = vsub.f32 %v3917_v45, %v3840_v50  ;;  %v1023_v6 = vrot.slane %v1022_v63, 1 }
 0x35f   : > { %v2019_v53 = vsel %vm1918_vm2, %v4876_v55, %v1906_v5  ;;  %2553 = vrsqrt.f32 %v4337_v40  ;;  %v1845_v34 = vsel %vm1833_vm8, %v3917_v45, 0.0  ;;  %v1070_v25 = vmul.f32 %v4346_v60, %v4346_v60 }
 0x360   : > { %v2036_v33 = vsel %vm2031_vm4, %v4029_v39, %v2019_v53  ;;  %v1077_v12 = vmul.f32 %v4350_v41, %v4350_v41  ;;  %v977_v43 = vrot.slane %v4333_v29, 4  ;;  %v2059_v13 = vsel %vm3607_vm13, %v4878_v37, 0.0  ;;  %v4880_v39 = vld [vmem:[#allocation6_spill] sm:$0xff] }
 0x361   : > { %v2084_v14 = vadd.f32 %v4877_v61, %v2036_v33  ;;  %v1025_v45 = vrot.slane %v4339_v44, 4  ;;  %v1828_v57 = vmul.f32 0.125, %v2238_v32  ;;  %v1116_v47 = vrot.slane %v1070_v25, 4 }
 0x362   : > { %v1158_v28 = vrot.slane %v1077_v12, 4  ;;  %v2075_v8 = vadd.f32 %v2059_v13, %v4880_v39  ;;  %v1862_v36 = vsel %vm1850_vm12, %v930_v48, %v1845_v34  ;;  %v978_v54 = vadd.f32 %v977_v43, %v4333_v29 }
 0x363   : > { %2100 = vst [vmem:[%s4093_s24 + $0x20] sm:$0xff] %v2084_v14  ;;  %v1026_v27 = vadd.f32 %v1025_v45, %v4339_v44  ;;  %v1024_v62 = vadd.f32 %v1023_v6, %v1022_v63  ;;  %v1412_v59 = vsub.f32 0.0, %v4084_v3  ;;  %vm1279_vm13 = vcmp.eq.f32.partialorder %v4323_v21, inf }
 0x364   : > { %v1117_v17 = vadd.f32 %v1116_v47, %v1070_v25  ;;  %v1159_v2 = vadd.f32 %v1158_v28, %v1077_v12  ;;  %vm1281_vm11 = vcmp.eq.f32.partialorder %v4323_v21, 0.0  ;;  %v979_v24 = vrot.slane %v978_v54, 2 }
 0x365   : > { %v1027_v0 = vrot.slane %v1026_v27, 2  ;;  %v4383_v52 = vmul.f32 0.125, %v1024_v62  ;;  %v1282_v7 = vand.u32 2147483648, %v4323_v21  ;;  %vm1230_vm14 = vcmp.eq.f32.partialorder %v4337_v40, inf }
 0x366   : > { %v2550_v10 = vpop.eup %2549  ;;  %v1118_v23 = vrot.slane %v1117_v17, 2  ;;  %v1160_v35 = vrot.slane %v1159_v2, 2  ;;  %vm1232_vm5 = vcmp.eq.f32.partialorder %v4337_v40, 0.0  ;;  %v980_v4 = vadd.f32 %v979_v24, %v978_v54 }
 0x367   : > { %v2552_v63 = vpop.eup %2551  ;;  %v1278_v3 = vmul.f32 %v2550_v10, %v4323_v21  ;;  %v4391_v9 = vsub.f32 %v4288_v58, %v4383_v52  ;;  %v1233_v48 = vand.u32 2147483648, %v4337_v40  ;;  %v1028_v33 = vadd.f32 %v1027_v0, %v1026_v27  ;;  %v1993_v27 = vpop.permute.xlu0 %1992 }
 0x368   : > { %v1344_v32 = vmul.f32 %v2552_v63, %v4131_v1  ;;  %v1119_v5 = vadd.f32 %v1118_v23, %v1117_v17  ;;  %v1161_v55 = vadd.f32 %v1160_v35, %v1159_v2  ;;  %v981_v34 = vrot.slane %v980_v4, 1  ;;  %v4882_v35 = vld [vmem:[#allocation12_spill] sm:$0xff] }
 0x369   : > { %v2554_v53 = vpop.eup %2553  ;;  %v1280_v6 = vsel %vm1279_vm13, %v4323_v21, %v1278_v3  ;;  %v1078_v25 = vmul.f32 %v4391_v9, %v4391_v9  ;;  %v1029_v0 = vrot.slane %v1028_v33, 1  ;;  %v2239_v63 = vadd.f32 -1.0, %v4882_v35 }
 0x36a   : > { %v1879_v12 = vsel %vm1867_vm15, %v1344_v32, %v1862_v36  ;;  %v1283_v1 = vsel %vm1281_vm11, %v1282_v7, %v1280_v6  ;;  %v1120_v61 = vrot.slane %v1119_v5, 1  ;;  %v1229_v14 = vmul.f32 %v2554_v53, %v4337_v40  ;;  %v4881_v7 = vld [vmem:[#allocation9_spill] sm:$0xff] }
 0x36b   : > { %v1896_v43 = vsel %vm1884_vm0, %v1412_v59, %v1879_v12  ;;  %v1317_v37 = vadd.f32 1e-05, %v1283_v1  ;;  %v1162_v20 = vrot.slane %v1161_v55, 1  ;;  %v982_v13 = vadd.f32 %v981_v34, %v980_v4 }
 0x36c   : > { %v1121_v45 = vadd.f32 %v1120_v61, %v1119_v5  ;;  %v1231_v47 = vsel %vm1230_vm14, %v4337_v40, %v1229_v14  ;;  %v1913_v28 = vsel %vm1901_vm1, %v1828_v57, %v1896_v43  ;;  %v1164_v39 = vrot.slane %v1078_v25, 4 }
 0x36d   : > { %2555 = vrcp.f32 %v1317_v37  ;;  %v1234_v21 = vsel %vm1232_vm5, %v1233_v48, %v1231_v47  ;;  %v1163_v36 = vadd.f32 %v1162_v20, %v1161_v55  ;;  %v4414_v54 = vmul.f32 0.125, %v982_v13 }
 0x36e   : > { %v4416_v62 = vmul.f32 0.14285715, %v1121_v45  ;;  %v1310_v59 = vadd.f32 1e-05, %v1234_v21  ;;  %v2026_v17 = vsel %vm1918_vm2, %v1993_v27, %v1913_v28  ;;  %v1165_v2 = vadd.f32 %v1164_v39, %v1078_v25 }
 0x36f   : > { %v4420_v24 = vmul.f32 0.14285715, %v1163_v36  ;;  %v4424_v57 = vsub.f32 %v4333_v29, %v4414_v54  ;;  %v2043_v40 = vsel %vm2031_vm4, %v4065_v19, %v2026_v17  ;;  %v2232_v23 = vadd.f32 -1.0, %v4881_v7 }
 0x370   : > { %2557 = vrsqrt.f32 %v4416_v62  ;;  %v2091_v10 = vadd.f32 %v2075_v8, %v2043_v40  ;;  %v1166_v4 = vrot.slane %v1165_v2, 2  ;;  %v931_v32 = vsub.f32 %v4035_v51, %v3840_v50  ;;  %v1998_v40 = vpop.permute.xlu1 %1997 }
 0x371   : > { %2559 = vrcp.f32 %v1310_v59  ;;  %v1071_v3 = vmul.f32 %v4424_v57, %v4424_v57  ;;  %v1030_v19 = vadd.f32 %v1029_v0, %v1028_v33  ;;  %v924_v5 = vsub.f32 %v4147_v46, %v3840_v50 }
 0x372   : > { %2561 = vrsqrt.f32 %v4420_v24  ;;  %2107 = vst [vmem:[%s4093_s24 + $0x58] sm:$0xff] %v2091_v10  ;;  %v1846_v8 = vsel %vm1833_vm8, %v4035_v51, 0.0  ;;  %v1167_v55 = vadd.f32 %v1166_v4, %v1165_v2  ;;  %v1839_v53 = vsel %vm1833_vm8, %v4147_v46, 0.0 }
 0x373   : > { %v1122_v48 = vrot.slane %v1071_v3, 4  ;;  %v4446_v6 = vmul.f32 0.125, %v1030_v19  ;;  %v1822_v34 = vmul.f32 0.125, %v2232_v23  ;;  %v1829_v25 = vmul.f32 0.125, %v2239_v63 }
 0x374   : > { %v1168_v1 = vrot.slane %v1167_v55, 1  ;;  %v1863_v61 = vsel %vm1850_vm12, %v931_v32, %v1846_v8  ;;  %v1413_v14 = vsub.f32 0.0, %v4125_v16  ;;  %v1406_v51 = vsub.f32 0.0, %v4229_v18 }
 0x375   : > { %v1123_v12 = vadd.f32 %v1122_v48, %v1071_v3  ;;  %v4454_v43 = vsub.f32 %v4339_v44, %v4446_v6  ;;  %v1856_v37 = vsel %vm1850_vm12, %v924_v5, %v1839_v53  ;;  %vm1286_vm3 = vcmp.eq.f32.partialorder %v4420_v24, inf  ;;  %v4883_v5 = vld [vmem:[#allocation38_spill] sm:$0xff] }
 0x376   : > { %v1169_v13 = vadd.f32 %v1168_v1, %v1167_v55  ;;  %vm1237_vm6 = vcmp.eq.f32.partialorder %v4416_v62, inf  ;;  %vm1239_vm7 = vcmp.eq.f32.partialorder %v4416_v62, 0.0  ;;  %vm1288_vm9 = vcmp.eq.f32.partialorder %v4420_v24, 0.0 }
 0x377   : > { %v2556_v33 = vpop.eup %2555  ;;  %v1124_v20 = vrot.slane %v1123_v12, 2  ;;  %v1079_v16 = vmul.f32 %v4454_v43, %v4454_v43  ;;  %v1289_v21 = vand.u32 2147483648, %v4420_v24  ;;  %v1240_v27 = vand.u32 2147483648, %v4416_v62 }
 0x378   : > { %v1346_v46 = vmul.f32 %v2556_v33, %v4188_v26  ;;  %v1191_v47 = vmul.f32 0.14285715, %v1169_v13  ;;  %v4885_v33 = vld [vmem:[#allocation31_spill] sm:$0xff] }
 0x379   : > { %v1125_v26 = vadd.f32 %v1124_v20, %v1123_v12  ;;  %v1170_v35 = vrot.slane %v1079_v16, 4 }
 0x37a   : > { %v2558_v18 = vpop.eup %2557  ;;  %v1880_v45 = vsel %vm1867_vm15, %v1346_v46, %v1863_v61  ;;  %2563 = vrsqrt.f32 %v1191_v47  ;;  %v4886_v46 = vld [vmem:[#allocation17_spill] sm:$0xff]  ;;  %vm1293_vm10 = vcmp.eq.f32.partialorder %v1191_v47, inf  ;;  %vm1295_vm13 = vcmp.eq.f32.partialorder %v1191_v47, 0.0 }
 0x37b   : > { %v2560_v28 = vpop.eup %2559  ;;  %v1897_v39 = vsel %vm1884_vm0, %v1413_v14, %v1880_v45  ;;  %v1236_v36 = vmul.f32 %v2558_v18, %v4416_v62  ;;  %v1126_v2 = vrot.slane %v1125_v26, 1  ;;  %v932_v18 = vsub.f32 %v4173_v38, %v3840_v50 }
 0x37c   : > { %v2562_v59 = vpop.eup %2561  ;;  %v1332_v17 = vmul.f32 %v2560_v28, %v4272_v11  ;;  %v1914_v0 = vsel %vm1901_vm1, %v1829_v25, %v1897_v39  ;;  %v925_v45 = vsub.f32 %v4179_v31, %v3840_v50  ;;  %v1840_v39 = vsel %vm1833_vm8, %v4179_v31, 0.0 }
 0x37d   : > { %v1285_v10 = vmul.f32 %v2562_v59, %v4420_v24  ;;  %v2027_v7 = vsel %vm1918_vm2, %v1998_v40, %v1914_v0  ;;  %v1238_v23 = vsel %vm1237_vm6, %v4416_v62, %v1236_v36  ;;  %v1127_v63 = vadd.f32 %v1126_v2, %v1125_v26  ;;  %v4884_v62 = vld [vmem:[#allocation27_spill] sm:$0xff] }
 0x37e   : > { %v1873_v11 = vsel %vm1867_vm15, %v1332_v17, %v1856_v37  ;;  %v2044_v3 = vsel %vm2031_vm4, %v4166_v22, %v2027_v7  ;;  %v1241_v4 = vsel %vm1239_vm7, %v1240_v27, %v1238_v23  ;;  %v2233_v37 = vadd.f32 -1.0, %v4886_v46  ;;  %v4887_v27 = vld [vmem:[#allocation47_spill] sm:$0xff]  ;;  %v4890_v46 = vld [vmem:[#allocation34_spill] sm:$0xff] }
 0x37f   : > { %v1890_v32 = vsel %vm1884_vm0, %v1406_v51, %v1873_v11  ;;  %v1287_v19 = vsel %vm1286_vm3, %v4420_v24, %v1285_v10  ;;  %v2092_v8 = vadd.f32 %v4883_v5, %v2044_v3  ;;  %v1311_v48 = vadd.f32 1e-05, %v1241_v4  ;;  %v1382_v51 = vpop.xlane.xlu0 %1381 }
 0x380   : > { %v1907_v55 = vsel %vm1901_vm1, %v1822_v34, %v1890_v32  ;;  %v1290_v22 = vsel %vm1288_vm9, %v1289_v21, %v1287_v19  ;;  %v1184_v53 = vmul.f32 0.14285715, %v1127_v63  ;;  %v1171_v34 = vadd.f32 %v1170_v35, %v1079_v16  ;;  %v1384_v19 = vpop.xlane.xlu1 %1383 }
 0x381   : > { %v2020_v25 = vsel %vm1918_vm2, %v4884_v62, %v1907_v55  ;;  %v1318_v12 = vadd.f32 1e-05, %v1290_v22  ;;  %2108 = vst [vmem:[%s4093_s24 + $0x60] sm:$0xff] %v2092_v8  ;;  %2565 = vrcp.f32 %v1311_v48  ;;  %v1847_v16 = vsel %vm1833_vm8, %v4173_v38, 0.0  ;;  %v4888_v62 = vld [vmem:[#allocation28_spill] sm:$0xff] }
 0x382   : > { %v2037_v1 = vsel %vm2031_vm4, %v4251_v30, %v2020_v25  ;;  %2567 = vrsqrt.f32 %v1184_v53  ;;  %v1172_v24 = vrot.slane %v1171_v34, 2  ;;  %v1296_v30 = vand.u32 2147483648, %v1191_v47 }
 0x383   : > { %v2085_v61 = vadd.f32 %v4885_v33, %v2037_v1  ;;  %2569 = vrcp.f32 %v1318_v12  ;;  %v2240_v59 = vadd.f32 -1.0, %v4887_v27  ;;  %v1823_v17 = vmul.f32 0.125, %v2233_v37  ;;  %v1398_v23 = vpop.xlane.xlu0 %1397  ;;  %v4889_v33 = vld [vmem:[#allocation32_spill] sm:$0xff]  ;;  %v4891_v37 = vld [vmem:[#allocation10_spill] sm:$0xff] }
 0x384   : > { %v2564_v14 = vpop.eup %2563  ;;  %v1173_v13 = vadd.f32 %v1172_v24, %v1171_v34  ;;  %v1864_v10 = vsel %vm1850_vm12, %v932_v18, %v1847_v16  ;;  %v1414_v38 = vsub.f32 0.0, %v4279_v56  ;;  %v1407_v7 = vsub.f32 0.0, %v1382_v51 }
 0x385   : > { %2101 = vst [vmem:[%s4093_s24 + $0x28] sm:$0xff] %v2085_v61  ;;  %v1292_v20 = vmul.f32 %v2564_v14, %v1191_v47  ;;  %v1857_v31 = vsel %vm1850_vm12, %v925_v45, %v1840_v39  ;;  %vm1244_vm11 = vcmp.eq.f32.partialorder %v1184_v53, inf  ;;  %v1247_v32 = vand.u32 2147483648, %v1184_v53  ;;  %v1400_v14 = vpop.xlane.xlu1 %1399 }
 0x386   : > { %v1174_v28 = vrot.slane %v1173_v13, 1  ;;  %vm1246_vm14 = vcmp.eq.f32.partialorder %v1184_v53, 0.0  ;;  %v1830_v5 = vmul.f32 0.125, %v2240_v59  ;;  %v933_v51 = vsub.f32 %v4288_v58, %v3840_v50 }
 0x387   : > { %v1294_v26 = vsel %vm1293_vm10, %v1191_v47, %v1292_v20  ;;  %v2003_v55 = vpop.permute.xlu0 %2002  ;;  %v2241_v20 = vadd.f32 -1.0, %v4891_v37  ;;  %v1415_v16 = vsub.f32 0.0, %v1398_v23 }
 0x388   : > { %v1297_v21 = vsel %vm1295_vm13, %v1296_v30, %v1294_v26  ;;  %v1175_v40 = vadd.f32 %v1174_v28, %v1173_v13  ;;  %v1848_v13 = vsel %vm1833_vm8, %v4288_v58, 0.0  ;;  %v4892_v26 = vld [vmem:[#allocation36_spill] sm:$0xff]  ;;  %v926_v58 = vsub.f32 %v4333_v29, %v3840_v50 }
 0x389   : > { %v1319_v2 = vadd.f32 1e-05, %v1297_v21  ;;  %v2234_v28 = vadd.f32 -1.0, %v4892_v26  ;;  %v1831_v39 = vmul.f32 0.125, %v2241_v20  ;;  %v2008_v27 = vpop.permute.xlu1 %2007 }
 0x38a   : > { %v1192_v63 = vmul.f32 0.14285715, %v1175_v40 }
 0x38b   : > { %v2566_v36 = vpop.eup %2565  ;;  %2571 = vrcp.f32 %v1319_v2 }
 0x38c   : > { %v2568_v0 = vpop.eup %2567  ;;  %v1334_v47 = vmul.f32 %v2566_v36, %v4346_v60  ;;  %2573 = vrsqrt.f32 %v1192_v63  ;;  %vm1300_vm5 = vcmp.eq.f32.partialorder %v1192_v63, inf  ;;  %vm1302_vm3 = vcmp.eq.f32.partialorder %v1192_v63, 0.0 }
 0x38d   : > { %v2570_v35 = vpop.eup %2569  ;;  %v1243_v11 = vmul.f32 %v2568_v0, %v1184_v53 }
 0x38e   : > { %v1348_v3 = vmul.f32 %v2570_v35, %v4350_v41  ;;  %v1874_v4 = vsel %vm1867_vm15, %v1334_v47, %v1857_v31  ;;  %v1408_v35 = vsub.f32 0.0, %v1384_v19  ;;  %v4893_v31 = vld [vmem:[#allocation11_spill] sm:$0xff] }
 0x38f   : > { %v1891_v56 = vsel %vm1884_vm0, %v1407_v7, %v1874_v4  ;;  %v1245_v60 = vsel %vm1244_vm11, %v1184_v53, %v1243_v11 }
 0x390   : > { %v1881_v8 = vsel %vm1867_vm15, %v1348_v3, %v1864_v10  ;;  %v1908_v41 = vsel %vm1901_vm1, %v1823_v17, %v1891_v56  ;;  %v1248_v48 = vsel %vm1246_vm14, %v1247_v32, %v1245_v60  ;;  %v1841_v17 = vsel %vm1833_vm8, %v4333_v29, 0.0  ;;  %v4895_v56 = vld [vmem:[#allocation37_spill] sm:$0xff] }
 0x391   : > { %v1898_v22 = vsel %vm1884_vm0, %v1414_v38, %v1881_v8  ;;  %v2021_v25 = vsel %vm1918_vm2, %v4888_v62, %v1908_v41  ;;  %v1312_v53 = vadd.f32 1e-05, %v1248_v48  ;;  %v1858_v29 = vsel %vm1850_vm12, %v926_v58, %v1841_v17  ;;  %v4896_v8 = vld [vmem:[#allocation49_spill] sm:$0xff] }
 0x392   : > { %v2038_v12 = vsel %vm2031_vm4, %v4326_v42, %v2021_v25  ;;  %v1915_v1 = vsel %vm1901_vm1, %v1830_v5, %v1898_v22  ;;  %v934_v5 = vsub.f32 %v4339_v44, %v3840_v50  ;;  %v2242_v41 = vadd.f32 -1.0, %v4896_v8 }
 0x393   : > { %v2086_v61 = vadd.f32 %v4889_v33, %v2038_v12  ;;  %2575 = vrcp.f32 %v1312_v53  ;;  %v2028_v34 = vsel %vm1918_vm2, %v2003_v55, %v1915_v1  ;;  %v1849_v48 = vsel %vm1833_vm8, %v4339_v44, 0.0  ;;  %v2013_v12 = vpop.permute.xlu0 %2012  ;;  %v4897_v33 = vld [vmem:[#allocation33_spill] sm:$0xff] }
 0x394   : > { %v2045_v24 = vsel %vm2031_vm4, %v4328_v15, %v2028_v34  ;;  %v1865_v15 = vsel %vm1850_vm12, %v933_v51, %v1848_v13  ;;  %v1416_v62 = vsub.f32 0.0, %v1400_v14  ;;  %v1832_v25 = vmul.f32 0.125, %v2242_v41 }
 0x395   : > { %2102 = vst [vmem:[%s4093_s24 + $0x30] sm:$0xff] %v2086_v61  ;;  %v2093_v42 = vadd.f32 %v4890_v46, %v2045_v24  ;;  %v2572_v18 = vpop.eup %2571 }
 0x396   : > { %v1350_v45 = vmul.f32 %v2572_v18, %v4391_v9  ;;  %v2574_v30 = vpop.eup %2573  ;;  %v1303_v9 = vand.u32 2147483648, %v1192_v63 }
 0x397   : > { %2109 = vst [vmem:[%s4093_s24 + $0x68] sm:$0xff] %v2093_v42  ;;  %v1299_v36 = vmul.f32 %v2574_v30, %v1192_v63 }
 0x398   : > { %v1882_v21 = vsel %vm1867_vm15, %v1350_v45, %v1865_v15 }
 0x399   : > { %v1899_v59 = vsel %vm1884_vm0, %v1415_v16, %v1882_v21  ;;  %v1301_v2 = vsel %vm1300_vm5, %v1192_v63, %v1299_v36  ;;  %v1824_v63 = vmul.f32 0.125, %v2234_v28 }
 0x39a   : > { %v1916_v40 = vsel %vm1901_vm1, %v1831_v39, %v1899_v59  ;;  %v1304_v10 = vsel %vm1302_vm3, %v1303_v9, %v1301_v2 }
 0x39b   : > { %v2029_v38 = vsel %vm1918_vm2, %v2008_v27, %v1916_v40  ;;  %v1320_v7 = vadd.f32 1e-05, %v1304_v10 }
 0x39c   : > { %v2046_v23 = vsel %vm2031_vm4, %v4383_v52, %v2029_v38  ;;  %v4894_v52 = vld [vmem:[#allocation29_spill] sm:$0xff] }
 0x39d   : > { %v2576_v0 = vpop.eup %2575  ;;  %v2094_v11 = vadd.f32 %v4893_v31, %v2046_v23  ;;  %2577 = vrcp.f32 %v1320_v7 }
 0x39e   : > { %v1336_v47 = vmul.f32 %v2576_v0, %v4424_v57 }
 0x39f   : > { %2110 = vst [vmem:[%s4093_s24 + $0x70] sm:$0xff] %v2094_v11 }
 0x3a0   : > { %v1875_v3 = vsel %vm1867_vm15, %v1336_v47, %v1858_v29 }
 0x3a1   : > { %v1892_v4 = vsel %vm1884_vm0, %v1408_v35, %v1875_v3 }
 0x3a2   : > { %v1909_v57 = vsel %vm1901_vm1, %v1824_v63, %v1892_v4 }
 0x3a3   : > { %v2022_v32 = vsel %vm1918_vm2, %v4894_v52, %v1909_v57 }
 0x3a4   : > { %v2039_v19 = vsel %vm2031_vm4, %v4414_v54, %v2022_v32  ;;  %v1866_v54 = vsel %vm1850_vm12, %v934_v5, %v1849_v48 }
 0x3a5   : > { %v2087_v60 = vadd.f32 %v4895_v56, %v2039_v19 }
 0x3a7   : > { %2103 = vst [vmem:[%s4093_s24 + $0x38] sm:$0xff] %v2087_v60  ;;  %v2578_v55 = vpop.eup %2577 }
 0x3a8   : > { %v1352_v22 = vmul.f32 %v2578_v55, %v4454_v43 }
 0x3aa   : > { %v1883_v50 = vsel %vm1867_vm15, %v1352_v22, %v1866_v54 }
 0x3ab   : > { %v1900_v53 = vsel %vm1884_vm0, %v1416_v62, %v1883_v50 }
 0x3ac   : > { %v1917_v44 = vsel %vm1901_vm1, %v1832_v25, %v1900_v53 }
 0x3ad   : > { %v2030_v43 = vsel %vm1918_vm2, %v2013_v12, %v1917_v44 }
 0x3ae   : > { %v2047_v1 = vsel %vm2031_vm4, %v4446_v6, %v2030_v43 }
 0x3af   : > { %v2095_v61 = vadd.f32 %v4897_v33, %v2047_v1 }
 0x3b1   : > { %2111 = vst [vmem:[%s4093_s24 + $0x78] sm:$0xff] %v2095_v61 }
 0x3b2   : > { %2597 = shalt.err (!%p2594_p3)
}
 0x3b3   : > { %s2598_s14 = scalar_lea.hbm %s4623_s8, 2048  ;;  %s2602_s17 = scalar_lea.hbm %s4677_s5, 8192 }
 0x3b4   : > { %p2599_p4 = scmp.ne.s32.totalorder %s4623_s8, %s2598_s14  ;;  %p2603_p9 = scmp.lt.u32.totalorder %s4623_s8, %s4677_s5 }
 0x3b5   : > { %p2604_p10 = scmp.lt.u32.totalorder %s2602_s17, %s2598_s14  ;;  %p2606_p12 = scmp.lt.u32.totalorder %s2598_s14, %s4623_s8 }
 0x3b6   : > { %p2600_p7 = pnand %p2599_p4, %p2724_p5 }
 0x3b7   : > { %p2605_p11 = por %p2604_p10, %p2603_p9 }
 0x3b8   : > { %p2601_p8 = pneg %p2600_p7 }
 0x3b9   : > { %p2607_p13 = por %p2606_p12, %p2605_p11 }
 0x3bb   : > { %p2608_p0 = pnand %p2607_p13, %p2601_p8 }
 0x3bd   : > { %2611 = shalt.err (!%p2608_p0)
}
 0x3be   : > { %s2651_s19 = smov 128   ;;  %s2652_s24 = smov 8  }
 0x3bf   : > { %2310 = dma.vmem_to_hbm [thread:$0]  (%p2724_p5), %s4625_s26, 2048, %s4623_s8, %s4631_s4, %s2651_s19, %s2651_s19, %s2652_s24  }
 0x3c0 PF: > { %p2316_p1 = scmp.ge.s32.totalorder %s2646_s23, 2  ;;  %s2141_s12 = sand.u32 1, %s2634_s20  }
 0x3c1   : > { %s2142_s6 = scalar_lea.sflag [#allocation4], %s2141_s12 }
 0x3c2   : > { %p2313_p2 = pnand %p2316_p1, %p2728_p6 }
 0x3c4   : > { %2629 = dma.done.wait (!%p2313_p2), %s2142_s6, 2048  }
 0x3c5   : > { %2631 = vsyncadd (!%p2313_p2), %s2142_s6, 4294965248  ;;  %p16_p3 = scmp.ge.s32.totalorder %s2711_s25, 6   ;;  %s4898_s20 = smov %s2638_s21 }
 0x3c6   : > { %s4899_s21 = smov %s2642_s22  ;;  %s4900_s22 = smov %s2722_s28 }
 0x3c7   : > { %s4901_s23 = smov %s2711_s25  ;;  %18 = sbr.rel (!%p16_p3) target bundleno = 5 (0x5), region = 78 }
 0x3ce   :  { %2147 = vsyncpa [#allocation4], 1 }
 0x3cf   :  { %2149 = vsyncpa [#allocation4 + $0x1], 1 }

</bundles_post_ra>
